<compile_context>
chip_gen: v6e
topology: v6e:2x2x1
jax: 0.10.0
libtpu: 0.0.40
codegen_flags: <defaults>
</compile_context>

<pallas_src>
import functools

import jax
import jax.numpy as jnp
from jax.experimental import pallas as pl
from jax.experimental.pallas import tpu as pltpu


# ----------------------------------------------------------------------------
# In-kernel helpers (trace-time functions, inlined into the fused kernels)
# ----------------------------------------------------------------------------
def _layernorm(x, g, b, eps=1e-5):
    mu = jnp.mean(x, axis=-1, keepdims=True)
    var = jnp.mean((x - mu) ** 2, axis=-1, keepdims=True)
    return (x - mu) * jax.lax.rsqrt(var + eps) * g + b


def _attention(q, k, v, nhead, *, causal):
    """q:(Sq,E) k,v:(Sk,E). Per-head scaled dot-product attention, heads concatenated."""
    Sq, E = q.shape
    Sk = k.shape[0]
    Dh = E // nhead
    scale = 1.0 / (Dh ** 0.5)

    if causal:
        row = jax.lax.broadcasted_iota(jnp.int32, (Sq, Sk), 0)
        col = jax.lax.broadcasted_iota(jnp.int32, (Sq, Sk), 1)
        mask = jnp.where(col > row, jnp.float32(-1e8), jnp.float32(0.0))

    outs = []
    for h in range(nhead):
        qh = q[:, h * Dh:(h + 1) * Dh]
        kh = k[:, h * Dh:(h + 1) * Dh]
        vh = v[:, h * Dh:(h + 1) * Dh]
        # q @ k.T via dot_general (trans_b path), no explicit transpose.
        s = jax.lax.dot_general(
            qh, kh, (((1,), (1,)), ((), ())),
            preferred_element_type=jnp.float32) * scale
        if causal:
            s = s + mask
        s = s - jnp.max(s, axis=-1, keepdims=True)
        p = jnp.exp(s)
        p = p * pl.reciprocal(jnp.sum(p, axis=-1, keepdims=True), approx=False)
        outs.append(jnp.dot(p, vh, preferred_element_type=jnp.float32))
    return jnp.concatenate(outs, axis=-1)


def _dot(a, b):
    return jnp.dot(a, b, preferred_element_type=jnp.float32)


# ----------------------------------------------------------------------------
# Fused Pallas kernels
# ----------------------------------------------------------------------------
def _embed_kernel(p_ref, w_ref, b_ref, pos_ref, o_ref):
    # conv-as-im2col matmul + bias + learned position embedding, one batch element.
    y = _dot(p_ref[0], w_ref[...]) + b_ref[...] + pos_ref[...]
    o_ref[0] = y.astype(o_ref.dtype)


def _encoder_layer_kernel(x_ref, wqkv_ref, bqkv_ref, wo_ref, bo_ref,
                          ln1g_ref, ln1b_ref,
                          w1_ref, b1_ref, w2_ref, b2_ref,
                          ln2g_ref, ln2b_ref,
                          fng_ref, fnb_ref,
                          o_ref, *, nhead, final_norm):
    x = x_ref[0]                     # (S, E)
    E = x.shape[-1]

    # --- self attention (fused QKV) ---
    qkv = _dot(x, wqkv_ref[...]) + bqkv_ref[...]
    q, k, v = qkv[:, :E], qkv[:, E:2 * E], qkv[:, 2 * E:]
    sa = _attention(q, k, v, nhead, causal=False)
    sa = _dot(sa, wo_ref[...]) + bo_ref[...]
    x = _layernorm(x + sa, ln1g_ref[...], ln1b_ref[...])

    # --- feed-forward (kept entirely in VMEM) ---
    h = jnp.maximum(_dot(x, w1_ref[...]) + b1_ref[...], 0.0)
    h = _dot(h, w2_ref[...]) + b2_ref[...]
    x = _layernorm(x + h, ln2g_ref[...], ln2b_ref[...])

    if final_norm:                   # encoder-stack final LayerNorm fused into last layer
        x = _layernorm(x, fng_ref[...], fnb_ref[...])
    o_ref[0] = x.astype(o_ref.dtype)


def _decoder_layer_kernel(x_ref, mem_ref,
                          sa_wqkv_ref, sa_bqkv_ref, sa_wo_ref, sa_bo_ref,
                          ln1g_ref, ln1b_ref,
                          ca_wq_ref, ca_bq_ref, ca_wkv_ref, ca_bkv_ref,
                          ca_wo_ref, ca_bo_ref,
                          ln2g_ref, ln2b_ref,
                          ff_w1_ref, ff_b1_ref, ff_w2_ref, ff_b2_ref,
                          ln3g_ref, ln3b_ref,
                          o_ref, *, nhead):
    x = x_ref[0]                     # (T, E)
    mem = mem_ref[0]                 # (S, E)
    E = x.shape[-1]

    # --- masked self attention (causal mask generated in-kernel) ---
    qkv = _dot(x, sa_wqkv_ref[...]) + sa_bqkv_ref[...]
    q, k, v = qkv[:, :E], qkv[:, E:2 * E], qkv[:, 2 * E:]
    sa = _attention(q, k, v, nhead, causal=True)
    sa = _dot(sa, sa_wo_ref[...]) + sa_bo_ref[...]
    x = _layernorm(x + sa, ln1g_ref[...], ln1b_ref[...])

    # --- cross attention (fused KV projection of memory) ---
    q = _dot(x, ca_wq_ref[...]) + ca_bq_ref[...]
    kv = _dot(mem, ca_wkv_ref[...]) + ca_bkv_ref[...]
    k, v = kv[:, :E], kv[:, E:]
    ca = _attention(q, k, v, nhead, causal=False)
    ca = _dot(ca, ca_wo_ref[...]) + ca_bo_ref[...]
    x = _layernorm(x + ca, ln2g_ref[...], ln2b_ref[...])

    # --- feed-forward ---
    h = jnp.maximum(_dot(x, ff_w1_ref[...]) + ff_b1_ref[...], 0.0)
    h = _dot(h, ff_w2_ref[...]) + ff_b2_ref[...]
    x = _layernorm(x + h, ln3g_ref[...], ln3b_ref[...])
    o_ref[0] = x.astype(o_ref.dtype)


def _head_kernel(x_ref, dng_ref, dnb_ref,
                 w1_ref, b1_ref, lng_ref, lnb_ref, w2_ref, b2_ref, o_ref):
    # decoder-stack final norm + point-forecast head: Linear -> LN -> ReLU -> Linear
    x = _layernorm(x_ref[0], dng_ref[...], dnb_ref[...])
    h = _dot(x, w1_ref[...]) + b1_ref[...]
    h = jnp.maximum(_layernorm(h, lng_ref[...], lnb_ref[...]), 0.0)
    y = _dot(h, w2_ref[...]) + b2_ref[...]
    o_ref[0] = y.astype(o_ref.dtype)


# ----------------------------------------------------------------------------
# pallas_call wrappers (one launch per fused block; grid over batch)
# ----------------------------------------------------------------------------
_PARALLEL_B = pltpu.CompilerParams(dimension_semantics=("parallel",))


def _full_spec(arr):
    # full-extent block, identical for every grid step (weights / shared tables)
    return pl.BlockSpec(arr.shape, lambda b: (0,) * arr.ndim)


def ts_embed(patches, w, b, pos):
    B, S, KC = patches.shape
    E = w.shape[1]
    return pl.pallas_call(
        _embed_kernel,
        out_shape=jax.ShapeDtypeStruct((B, S, E), jnp.float32),
        grid=(B,),
        in_specs=[pl.BlockSpec((1, S, KC), lambda b: (b, 0, 0)),
                  _full_spec(w), _full_spec(b), _full_spec(pos)],
        out_specs=pl.BlockSpec((1, S, E), lambda b: (b, 0, 0)),
        compiler_params=_PARALLEL_B,
    )(patches, w, b, pos)


def encoder_layer(x, p, fng, fnb, *, nhead, final_norm):
    B, S, E = x.shape
    args = (x, p["wqkv"], p["bqkv"], p["wo"], p["bo"],
            p["ln1_g"], p["ln1_b"],
            p["ff_w1"], p["ff_b1"], p["ff_w2"], p["ff_b2"],
            p["ln2_g"], p["ln2_b"], fng, fnb)
    in_specs = [pl.BlockSpec((1, S, E), lambda b: (b, 0, 0))] + \
               [_full_spec(a) for a in args[1:]]
    return pl.pallas_call(
        functools.partial(_encoder_layer_kernel, nhead=nhead, final_norm=final_norm),
        out_shape=jax.ShapeDtypeStruct((B, S, E), jnp.float32),
        grid=(B,),
        in_specs=in_specs,
        out_specs=pl.BlockSpec((1, S, E), lambda b: (b, 0, 0)),
        compiler_params=_PARALLEL_B,
    )(*args)


def decoder_layer(x, mem, p, *, nhead):
    B, T, E = x.shape
    S = mem.shape[1]
    args = (x, mem,
            p["sa_wqkv"], p["sa_bqkv"], p["sa_wo"], p["sa_bo"],
            p["ln1_g"], p["ln1_b"],
            p["ca_wq"], p["ca_bq"], p["ca_wkv"], p["ca_bkv"],
            p["ca_wo"], p["ca_bo"],
            p["ln2_g"], p["ln2_b"],
            p["ff_w1"], p["ff_b1"], p["ff_w2"], p["ff_b2"],
            p["ln3_g"], p["ln3_b"])
    in_specs = [pl.BlockSpec((1, T, E), lambda b: (b, 0, 0)),
                pl.BlockSpec((1, S, E), lambda b: (b, 0, 0))] + \
               [_full_spec(a) for a in args[2:]]
    return pl.pallas_call(
        functools.partial(_decoder_layer_kernel, nhead=nhead),
        out_shape=jax.ShapeDtypeStruct((B, T, E), jnp.float32),
        grid=(B,),
        in_specs=in_specs,
        out_specs=pl.BlockSpec((1, T, E), lambda b: (b, 0, 0)),
        compiler_params=_PARALLEL_B,
    )(*args)


def fcst_head(x, params):
    B, T, E = x.shape
    args = (x, params["dec_norm_g"], params["dec_norm_b"],
            params["head_w1"], params["head_b1"],
            params["head_ln_g"], params["head_ln_b"],
            params["head_w2"], params["head_b2"])
    in_specs = [pl.BlockSpec((1, T, E), lambda b: (b, 0, 0))] + \
               [_full_spec(a) for a in args[1:]]
    return pl.pallas_call(
        _head_kernel,
        out_shape=jax.ShapeDtypeStruct((B, T, 1), jnp.float32),
        grid=(B,),
        in_specs=in_specs,
        out_specs=pl.BlockSpec((1, T, 1), lambda b: (b, 0, 0)),
        compiler_params=_PARALLEL_B,
    )(*args)


# ----------------------------------------------------------------------------
# Host-side glue
# ----------------------------------------------------------------------------
def _round8(n):
    return max(8, ((n + 7) // 8) * 8)


def _im2col(x, kernel_size=3):
    """x:(B,S,Cin) -> zero-padded patches (B,S,KCp) for the conv-as-matmul embedding."""
    B, S, Cin = x.shape
    pad = (kernel_size - 1) // 2
    xp = jnp.pad(x, ((0, 0), (pad, pad), (0, 0)))
    patches = jnp.concatenate([xp[:, i:i + S, :] for i in range(kernel_size)], axis=-1)
    kc = kernel_size * Cin
    kcp = _round8(kc)
    if kcp != kc:
        patches = jnp.pad(patches, ((0, 0), (0, 0), (0, kcp - kc)))
    return patches


def transformer_fcst_forward(params, src, tgt, nhead):
    """src:(N,S,dim), tgt:(N,T,dim) -> point forecast (N,T,1)."""
    # TS embedding (conv via im2col) + learned position embedding (+ dropout = identity)
    src_e = ts_embed(_im2col(src), params["src_conv_w"], params["src_conv_b"], params["src_pos"])
    tgt_e = ts_embed(_im2col(tgt), params["tgt_conv_w"], params["tgt_conv_b"], params["tgt_pos"])

    mem = src_e
    n_enc = len(params["enc_layers"])
    for li, lp in enumerate(params["enc_layers"]):
        mem = encoder_layer(mem, lp, params["enc_norm_g"], params["enc_norm_b"],
                            nhead=nhead, final_norm=(li == n_enc - 1))

    x = tgt_e
    for lp in params["dec_layers"]:
        x = decoder_layer(x, mem, lp, nhead=nhead)

    # decoder final norm is fused into the forecast head kernel
    return fcst_head(x, params)


# ----------------------------------------------------------------------------
# Deterministic parameter init (weights pre-shaped / pre-padded once, biases 2D)
# ----------------------------------------------------------------------------
def init_params(key, *, input_dim=1, embedding_dim=32, nhead=4, num_layers=(1, 1),
                seq_len=(8, 8), d_ff=512, dim_feedforward=2048, conv_kernel=3):
    keys = iter(jax.random.split(key, 512))
    E = embedding_dim

    def w(shape, scale=0.02):
        return (scale * jax.random.normal(next(keys), shape)).astype(jnp.float32)

    def zeros(shape):
        return jnp.zeros(shape, jnp.float32)

    def ones(shape):
        return jnp.ones(shape, jnp.float32)

    def conv_w():
        kc = conv_kernel * input_dim
        kcp = _round8(kc)
        wt = w((kc, E))
        return jnp.pad(wt, ((0, kcp - kc), (0, 0)))   # padded rows multiply zero lanes

    def self_attn_params(prefix=""):
        return {prefix + "wqkv": w((E, 3 * E)), prefix + "bqkv": zeros((1, 3 * E)),
                prefix + "wo": w((E, E)), prefix + "bo": zeros((1, E))}

    def cross_attn_params():
        return dict(ca_wq=w((E, E)), ca_bq=zeros((1, E)),
                    ca_wkv=w((E, 2 * E)), ca_bkv=zeros((1, 2 * E)),
                    ca_wo=w((E, E)), ca_bo=zeros((1, E)))

    def enc_layer_params():
        d = self_attn_params()
        d.update(ln1_g=ones((1, E)), ln1_b=zeros((1, E)),
                 ff_w1=w((E, dim_feedforward)), ff_b1=zeros((1, dim_feedforward)),
                 ff_w2=w((dim_feedforward, E)), ff_b2=zeros((1, E)),
                 ln2_g=ones((1, E)), ln2_b=zeros((1, E)))
        return d

    def dec_layer_params():
        d = self_attn_params("sa_")
        d.update(cross_attn_params())
        d.update(ln1_g=ones((1, E)), ln1_b=zeros((1, E)),
                 ln2_g=ones((1, E)), ln2_b=zeros((1, E)),
                 ff_w1=w((E, dim_feedforward)), ff_b1=zeros((1, dim_feedforward)),
                 ff_w2=w((dim_feedforward, E)), ff_b2=zeros((1, E)),
                 ln3_g=ones((1, E)), ln3_b=zeros((1, E)))
        return d

    return dict(
        src_conv_w=conv_w(), src_conv_b=zeros((1, E)),
        tgt_conv_w=conv_w(), tgt_conv_b=zeros((1, E)),
        src_pos=w((seq_len[0], E)), tgt_pos=w((seq_len[1], E)),
        enc_layers=[enc_layer_params() for _ in range(num_layers[0])],
        dec_layers=[dec_layer_params() for _ in range(num_layers[1])],
        enc_norm_g=ones((1, E)), enc_norm_b=zeros((1, E)),
        dec_norm_g=ones((1, E)), dec_norm_b=zeros((1, E)),
        head_w1=w((E, d_ff)), head_b1=zeros((1, d_ff)),
        head_ln_g=ones((1, d_ff)), head_ln_b=zeros((1, d_ff)),
        head_w2=w((d_ff, 1)), head_b2=zeros((1, 1)),
    )


# ----------------------------------------------------------------------------
if __name__ == "__main__":
    key = jax.random.PRNGKey(0)
    k_params, k_src, k_tgt = jax.random.split(key, 3)

    B = 2
    S, T = 8, 8          # seq_len = (src_len, tgt_len)
    E, NHEAD = 32, 4     # embedding_dim, nhead
    NUM_LAYERS = (1, 1)

    params = init_params(k_params, input_dim=1, embedding_dim=E, nhead=NHEAD,
                         num_layers=NUM_LAYERS, seq_len=(S, T),
                         d_ff=512, dim_feedforward=2048)

    src = jax.random.normal(k_src, (B, S, 1), jnp.float32)
    tgt = jax.random.normal(k_tgt, (B, T, 1), jnp.float32)

    fwd = jax.jit(functools.partial(transformer_fcst_forward, nhead=NHEAD))
    out = fwd(params, src, tgt)
    jax.block_until_ready(out)

    assert out.shape == (B, T, 1)
    assert bool(jnp.all(jnp.isfinite(out)))
    print("KERNEL_OK")
</pallas_src>

<mosaic_0001>
module attributes {stable_mosaic.version = 11 : i64} {
  func.func @_embed_kernel(%arg0: i32, %arg1: memref<1x8x8xf32, #tpu.memory_space<vmem>>, %arg2: memref<8x32xf32, #tpu.memory_space<vmem>>, %arg3: memref<1x32xf32, #tpu.memory_space<vmem>>, %arg4: memref<8x32xf32, #tpu.memory_space<vmem>>, %arg5: memref<1x8x32xf32, #tpu.memory_space<vmem>>) attributes {dimension_semantics = [#tpu.dimension_semantics<parallel>], iteration_bounds = array<i64: 2>, scalar_prefetch = 0 : i64, scratch_operands = 0 : i64, tpu.core_type = #tpu.core_type<tc>, window_params = [{transform_indices = @transform_0, window_bounds = array<i64: 1, 8, 8>}, {pipeline_mode = #tpu.pipeline_mode<synchronous>, transform_indices = @transform_1, window_bounds = array<i64: 8, 32>}, {pipeline_mode = #tpu.pipeline_mode<synchronous>, transform_indices = @transform_2, window_bounds = array<i64: 1, 32>}, {pipeline_mode = #tpu.pipeline_mode<synchronous>, transform_indices = @transform_3, window_bounds = array<i64: 8, 32>}, {transform_indices = @transform_4, window_bounds = array<i64: 1, 8, 32>}]} {
    %c0 = arith.constant 0 : index
    %c0_0 = arith.constant 0 : index
    %c0_1 = arith.constant 0 : index
    %0 = vector.load %arg1[%c0, %c0_0, %c0_1] : memref<1x8x8xf32, #tpu.memory_space<vmem>>, vector<1x8x8xf32>
    %1 = vector.shape_cast %0 : vector<1x8x8xf32> to vector<8x8xf32>
    %c0_2 = arith.constant 0 : index
    %c0_3 = arith.constant 0 : index
    %2 = vector.load %arg2[%c0_2, %c0_3] : memref<8x32xf32, #tpu.memory_space<vmem>>, vector<8x32xf32>
    %cst = arith.constant dense<0.000000e+00> : vector<8x32xf32>
    %3 = tpu.matmul %1, %2, %cst {dimension_numbers = #tpu.dot_dimension_numbers<[1], [0], [0], [1], [0, 0, 1, 1], [], []>} : vector<8x8xf32>, vector<8x32xf32>, vector<8x32xf32> -> vector<8x32xf32>
    %c0_4 = arith.constant 0 : index
    %c0_5 = arith.constant 0 : index
    %4 = vector.load %arg3[%c0_4, %c0_5] : memref<1x32xf32, #tpu.memory_space<vmem>>, vector<1x32xf32>
    %5 = vector.broadcast %4 : vector<1x32xf32> to vector<8x32xf32>
    %6 = arith.addf %3, %5 : vector<8x32xf32>
    %c0_6 = arith.constant 0 : index
    %c0_7 = arith.constant 0 : index
    %7 = vector.load %arg4[%c0_6, %c0_7] : memref<8x32xf32, #tpu.memory_space<vmem>>, vector<8x32xf32>
    %8 = arith.addf %6, %7 : vector<8x32xf32>
    %c0_8 = arith.constant 0 : index
    %c0_9 = arith.constant 0 : index
    %c0_10 = arith.constant 0 : index
    %9 = vector.load %arg5[%c0_8, %c0_9, %c0_10] : memref<1x8x32xf32, #tpu.memory_space<vmem>>, vector<1x8x32xf32>
    %10 = vector.shape_cast %9 : vector<1x8x32xf32> to vector<8x32xf32>
    %11 = vector.shape_cast %8 : vector<8x32xf32> to vector<1x8x32xf32>
    tpu.vector_store %arg5[%c0_8, %c0_9, %c0_10], %11 {strides = array<i32>} : memref<1x8x32xf32, #tpu.memory_space<vmem>>, vector<1x8x32xf32>,
    return
  }
  func.func @transform_0(%arg0: i32) -> (i32, i32, i32) {
    %c0_i32 = arith.constant 0 : i32
    %c0_i32_0 = arith.constant 0 : i32
    %c0_i32_1 = arith.constant 0 : i32
    return %arg0, %c0_i32, %c0_i32_0 : i32, i32, i32
  }
  func.func @transform_1(%arg0: i32) -> (i32, i32) {
    %c0_i32 = arith.constant 0 : i32
    %c0_i32_0 = arith.constant 0 : i32
    %c0_i32_1 = arith.constant 0 : i32
    return %c0_i32, %c0_i32_0 : i32, i32
  }
  func.func @transform_2(%arg0: i32) -> (i32, i32) {
    %c0_i32 = arith.constant 0 : i32
    %c0_i32_0 = arith.constant 0 : i32
    %c0_i32_1 = arith.constant 0 : i32
    return %c0_i32, %c0_i32_0 : i32, i32
  }
  func.func @transform_3(%arg0: i32) -> (i32, i32) {
    %c0_i32 = arith.constant 0 : i32
    %c0_i32_0 = arith.constant 0 : i32
    %c0_i32_1 = arith.constant 0 : i32
    return %c0_i32, %c0_i32_0 : i32, i32
  }
  func.func @transform_4(%arg0: i32) -> (i32, i32, i32) {
    %c0_i32 = arith.constant 0 : i32
    %c0_i32_0 = arith.constant 0 : i32
    %c0_i32_1 = arith.constant 0 : i32
    return %arg0, %c0_i32, %c0_i32_0 : i32, i32, i32
  }
}

module attributes {stable_mosaic.version = 11 : i64} {
  func.func @_encoder_layer_kernel(%arg0: i32, %arg1: memref<1x8x32xf32, #tpu.memory_space<vmem>>, %arg2: memref<32x96xf32, #tpu.memory_space<vmem>>, %arg3: memref<1x96xf32, #tpu.memory_space<vmem>>, %arg4: memref<32x32xf32, #tpu.memory_space<vmem>>, %arg5: memref<1x32xf32, #tpu.memory_space<vmem>>, %arg6: memref<1x32xf32, #tpu.memory_space<vmem>>, %arg7: memref<1x32xf32, #tpu.memory_space<vmem>>, %arg8: memref<32x2048xf32, #tpu.memory_space<vmem>>, %arg9: memref<1x2048xf32, #tpu.memory_space<vmem>>, %arg10: memref<2048x32xf32, #tpu.memory_space<vmem>>, %arg11: memref<1x32xf32, #tpu.memory_space<vmem>>, %arg12: memref<1x32xf32, #tpu.memory_space<vmem>>, %arg13: memref<1x32xf32, #tpu.memory_space<vmem>>, %arg14: memref<1x32xf32, #tpu.memory_space<vmem>>, %arg15: memref<1x32xf32, #tpu.memory_space<vmem>>, %arg16: memref<1x8x32xf32, #tpu.memory_space<vmem>>) attributes {dimension_semantics = [#tpu.dimension_semantics<parallel>], iteration_bounds = array<i64: 2>, scalar_prefetch = 0 : i64, scratch_operands = 0 : i64, tpu.core_type = #tpu.core_type<tc>, window_params = [{transform_indices = @transform_0, window_bounds = array<i64: 1, 8, 32>}, {pipeline_mode = #tpu.pipeline_mode<synchronous>, transform_indices = @transform_1, window_bounds = array<i64: 32, 96>}, {pipeline_mode = #tpu.pipeline_mode<synchronous>, transform_indices = @transform_2, window_bounds = array<i64: 1, 96>}, {pipeline_mode = #tpu.pipeline_mode<synchronous>, transform_indices = @transform_3, window_bounds = array<i64: 32, 32>}, {pipeline_mode = #tpu.pipeline_mode<synchronous>, transform_indices = @transform_4, window_bounds = array<i64: 1, 32>}, {pipeline_mode = #tpu.pipeline_mode<synchronous>, transform_indices = @transform_5, window_bounds = array<i64: 1, 32>}, {pipeline_mode = #tpu.pipeline_mode<synchronous>, transform_indices = @transform_6, window_bounds = array<i64: 1, 32>}, {pipeline_mode = #tpu.pipeline_mode<synchronous>, transform_indices = @transform_7, window_bounds = array<i64: 32, 2048>}, {pipeline_mode = #tpu.pipeline_mode<synchronous>, transform_indices = @transform_8, window_bounds = array<i64: 1, 2048>}, {pipeline_mode = #tpu.pipeline_mode<synchronous>, transform_indices = @transform_9, window_bounds = array<i64: 2048, 32>}, {pipeline_mode = #tpu.pipeline_mode<synchronous>, transform_indices = @transform_10, window_bounds = array<i64: 1, 32>}, {pipeline_mode = #tpu.pipeline_mode<synchronous>, transform_indices = @transform_11, window_bounds = array<i64: 1, 32>}, {pipeline_mode = #tpu.pipeline_mode<synchronous>, transform_indices = @transform_12, window_bounds = array<i64: 1, 32>}, {pipeline_mode = #tpu.pipeline_mode<synchronous>, transform_indices = @transform_13, window_bounds = array<i64: 1, 32>}, {pipeline_mode = #tpu.pipeline_mode<synchronous>, transform_indices = @transform_14, window_bounds = array<i64: 1, 32>}, {transform_indices = @transform_15, window_bounds = array<i64: 1, 8, 32>}]} {
    %c0 = arith.constant 0 : index
    %c0_0 = arith.constant 0 : index
    %c0_1 = arith.constant 0 : index
    %0 = vector.load %arg1[%c0, %c0_0, %c0_1] : memref<1x8x32xf32, #tpu.memory_space<vmem>>, vector<1x8x32xf32>
    %1 = vector.shape_cast %0 : vector<1x8x32xf32> to vector<8x32xf32>
    %c0_2 = arith.constant 0 : index
    %c0_3 = arith.constant 0 : index
    %2 = vector.load %arg2[%c0_2, %c0_3] : memref<32x96xf32, #tpu.memory_space<vmem>>, vector<32x96xf32>
    %cst = arith.constant dense<0.000000e+00> : vector<8x96xf32>
    %3 = tpu.matmul %1, %2, %cst {dimension_numbers = #tpu.dot_dimension_numbers<[1], [0], [0], [1], [0, 0, 1, 1], [], []>} : vector<8x32xf32>, vector<32x96xf32>, vector<8x96xf32> -> vector<8x96xf32>
    %c0_4 = arith.constant 0 : index
    %c0_5 = arith.constant 0 : index
    %4 = vector.load %arg3[%c0_4, %c0_5] : memref<1x96xf32, #tpu.memory_space<vmem>>, vector<1x96xf32>
    %5 = vector.broadcast %4 : vector<1x96xf32> to vector<8x96xf32>
    %6 = arith.addf %3, %5 : vector<8x96xf32>
    %7 = vector.extract_strided_slice %6 {offsets = [0, 0], sizes = [8, 32], strides = [1, 1]} : vector<8x96xf32> to vector<8x32xf32>
    %8 = vector.extract_strided_slice %6 {offsets = [0, 32], sizes = [8, 32], strides = [1, 1]} : vector<8x96xf32> to vector<8x32xf32>
    %9 = vector.extract_strided_slice %6 {offsets = [0, 64], sizes = [8, 32], strides = [1, 1]} : vector<8x96xf32> to vector<8x32xf32>
    %10 = vector.extract_strided_slice %7 {offsets = [0, 0], sizes = [8, 8], strides = [1, 1]} : vector<8x32xf32> to vector<8x8xf32>
    %11 = vector.extract_strided_slice %8 {offsets = [0, 0], sizes = [8, 8], strides = [1, 1]} : vector<8x32xf32> to vector<8x8xf32>
    %12 = vector.extract_strided_slice %9 {offsets = [0, 0], sizes = [8, 8], strides = [1, 1]} : vector<8x32xf32> to vector<8x8xf32>
    %cst_6 = arith.constant dense<0.000000e+00> : vector<8x8xf32>
    %13 = tpu.matmul %10, %11, %cst_6 {dimension_numbers = #tpu.dot_dimension_numbers<[1], [1], [0], [0], [0, 0, 1, 0], [], []>} : vector<8x8xf32>, vector<8x8xf32>, vector<8x8xf32> -> vector<8x8xf32>
    %cst_7 = arith.constant 0.353553385 : f32
    %14 = vector.broadcast %cst_7 : f32 to vector<8x8xf32>
    %15 = arith.mulf %13, %14 : vector<8x8xf32>
    %cst_8 = arith.constant dense<0xFF800000> : vector<8xf32>
    %16 = vector.multi_reduction <maximumf>, %15, %cst_8 [1] : vector<8x8xf32> to vector<8xf32>
    %17 = vector.shape_cast %16 : vector<8xf32> to vector<8x1xf32>
    %18 = vector.broadcast %17 : vector<8x1xf32> to vector<8x8xf32>
    %19 = arith.subf %15, %18 : vector<8x8xf32>
    %20 = math.exp %19 : vector<8x8xf32>
    %cst_9 = arith.constant dense<0.000000e+00> : vector<8xf32>
    %21 = vector.multi_reduction <add>, %20, %cst_9 [1] : vector<8x8xf32> to vector<8xf32>
    %22 = vector.shape_cast %21 : vector<8xf32> to vector<8x1xf32>
    %23 = tpu.reciprocal %22 : vector<8x1xf32> -> vector<8x1xf32>
    %24 = vector.broadcast %23 : vector<8x1xf32> to vector<8x8xf32>
    %25 = arith.mulf %20, %24 : vector<8x8xf32>
    %cst_10 = arith.constant dense<0.000000e+00> : vector<8x8xf32>
    %26 = tpu.matmul %25, %12, %cst_10 {dimension_numbers = #tpu.dot_dimension_numbers<[1], [0], [0], [1], [0, 0, 1, 1], [], []>} : vector<8x8xf32>, vector<8x8xf32>, vector<8x8xf32> -> vector<8x8xf32>
    %27 = vector.extract_strided_slice %7 {offsets = [0, 8], sizes = [8, 8], strides = [1, 1]} : vector<8x32xf32> to vector<8x8xf32>
    %28 = vector.extract_strided_slice %8 {offsets = [0, 8], sizes = [8, 8], strides = [1, 1]} : vector<8x32xf32> to vector<8x8xf32>
    %29 = vector.extract_strided_slice %9 {offsets = [0, 8], sizes = [8, 8], strides = [1, 1]} : vector<8x32xf32> to vector<8x8xf32>
    %cst_11 = arith.constant dense<0.000000e+00> : vector<8x8xf32>
    %30 = tpu.matmul %27, %28, %cst_11 {dimension_numbers = #tpu.dot_dimension_numbers<[1], [1], [0], [0], [0, 0, 1, 0], [], []>} : vector<8x8xf32>, vector<8x8xf32>, vector<8x8xf32> -> vector<8x8xf32>
    %cst_12 = arith.constant 0.353553385 : f32
    %31 = vector.broadcast %cst_12 : f32 to vector<8x8xf32>
    %32 = arith.mulf %30, %31 : vector<8x8xf32>
    %cst_13 = arith.constant dense<0xFF800000> : vector<8xf32>
    %33 = vector.multi_reduction <maximumf>, %32, %cst_13 [1] : vector<8x8xf32> to vector<8xf32>
    %34 = vector.shape_cast %33 : vector<8xf32> to vector<8x1xf32>
    %35 = vector.broadcast %34 : vector<8x1xf32> to vector<8x8xf32>
    %36 = arith.subf %32, %35 : vector<8x8xf32>
    %37 = math.exp %36 : vector<8x8xf32>
    %cst_14 = arith.constant dense<0.000000e+00> : vector<8xf32>
    %38 = vector.multi_reduction <add>, %37, %cst_14 [1] : vector<8x8xf32> to vector<8xf32>
    %39 = vector.shape_cast %38 : vector<8xf32> to vector<8x1xf32>
    %40 = tpu.reciprocal %39 : vector<8x1xf32> -> vector<8x1xf32>
    %41 = vector.broadcast %40 : vector<8x1xf32> to vector<8x8xf32>
    %42 = arith.mulf %37, %41 : vector<8x8xf32>
    %cst_15 = arith.constant dense<0.000000e+00> : vector<8x8xf32>
    %43 = tpu.matmul %42, %29, %cst_15 {dimension_numbers = #tpu.dot_dimension_numbers<[1], [0], [0], [1], [0, 0, 1, 1], [], []>} : vector<8x8xf32>, vector<8x8xf32>, vector<8x8xf32> -> vector<8x8xf32>
    %44 = vector.extract_strided_slice %7 {offsets = [0, 16], sizes = [8, 8], strides = [1, 1]} : vector<8x32xf32> to vector<8x8xf32>
    %45 = vector.extract_strided_slice %8 {offsets = [0, 16], sizes = [8, 8], strides = [1, 1]} : vector<8x32xf32> to vector<8x8xf32>
    %46 = vector.extract_strided_slice %9 {offsets = [0, 16], sizes = [8, 8], strides = [1, 1]} : vector<8x32xf32> to vector<8x8xf32>
    %cst_16 = arith.constant dense<0.000000e+00> : vector<8x8xf32>
    %47 = tpu.matmul %44, %45, %cst_16 {dimension_numbers = #tpu.dot_dimension_numbers<[1], [1], [0], [0], [0, 0, 1, 0], [], []>} : vector<8x8xf32>, vector<8x8xf32>, vector<8x8xf32> -> vector<8x8xf32>
    %cst_17 = arith.constant 0.353553385 : f32
    %48 = vector.broadcast %cst_17 : f32 to vector<8x8xf32>
    %49 = arith.mulf %47, %48 : vector<8x8xf32>
    %cst_18 = arith.constant dense<0xFF800000> : vector<8xf32>
    %50 = vector.multi_reduction <maximumf>, %49, %cst_18 [1] : vector<8x8xf32> to vector<8xf32>
    %51 = vector.shape_cast %50 : vector<8xf32> to vector<8x1xf32>
    %52 = vector.broadcast %51 : vector<8x1xf32> to vector<8x8xf32>
    %53 = arith.subf %49, %52 : vector<8x8xf32>
    %54 = math.exp %53 : vector<8x8xf32>
    %cst_19 = arith.constant dense<0.000000e+00> : vector<8xf32>
    %55 = vector.multi_reduction <add>, %54, %cst_19 [1] : vector<8x8xf32> to vector<8xf32>
    %56 = vector.shape_cast %55 : vector<8xf32> to vector<8x1xf32>
    %57 = tpu.reciprocal %56 : vector<8x1xf32> -> vector<8x1xf32>
    %58 = vector.broadcast %57 : vector<8x1xf32> to vector<8x8xf32>
    %59 = arith.mulf %54, %58 : vector<8x8xf32>
    %cst_20 = arith.constant dense<0.000000e+00> : vector<8x8xf32>
    %60 = tpu.matmul %59, %46, %cst_20 {dimension_numbers = #tpu.dot_dimension_numbers<[1], [0], [0], [1], [0, 0, 1, 1], [], []>} : vector<8x8xf32>, vector<8x8xf32>, vector<8x8xf32> -> vector<8x8xf32>
    %61 = vector.extract_strided_slice %7 {offsets = [0, 24], sizes = [8, 8], strides = [1, 1]} : vector<8x32xf32> to vector<8x8xf32>
    %62 = vector.extract_strided_slice %8 {offsets = [0, 24], sizes = [8, 8], strides = [1, 1]} : vector<8x32xf32> to vector<8x8xf32>
    %63 = vector.extract_strided_slice %9 {offsets = [0, 24], sizes = [8, 8], strides = [1, 1]} : vector<8x32xf32> to vector<8x8xf32>
    %cst_21 = arith.constant dense<0.000000e+00> : vector<8x8xf32>
    %64 = tpu.matmul %61, %62, %cst_21 {dimension_numbers = #tpu.dot_dimension_numbers<[1], [1], [0], [0], [0, 0, 1, 0], [], []>} : vector<8x8xf32>, vector<8x8xf32>, vector<8x8xf32> -> vector<8x8xf32>
    %cst_22 = arith.constant 0.353553385 : f32
    %65 = vector.broadcast %cst_22 : f32 to vector<8x8xf32>
    %66 = arith.mulf %64, %65 : vector<8x8xf32>
    %cst_23 = arith.constant dense<0xFF800000> : vector<8xf32>
    %67 = vector.multi_reduction <maximumf>, %66, %cst_23 [1] : vector<8x8xf32> to vector<8xf32>
    %68 = vector.shape_cast %67 : vector<8xf32> to vector<8x1xf32>
    %69 = vector.broadcast %68 : vector<8x1xf32> to vector<8x8xf32>
    %70 = arith.subf %66, %69 : vector<8x8xf32>
    %71 = math.exp %70 : vector<8x8xf32>
    %cst_24 = arith.constant dense<0.000000e+00> : vector<8xf32>
    %72 = vector.multi_reduction <add>, %71, %cst_24 [1] : vector<8x8xf32> to vector<8xf32>
    %73 = vector.shape_cast %72 : vector<8xf32> to vector<8x1xf32>
    %74 = tpu.reciprocal %73 : vector<8x1xf32> -> vector<8x1xf32>
    %75 = vector.broadcast %74 : vector<8x1xf32> to vector<8x8xf32>
    %76 = arith.mulf %71, %75 : vector<8x8xf32>
    %cst_25 = arith.constant dense<0.000000e+00> : vector<8x8xf32>
    %77 = tpu.matmul %76, %63, %cst_25 {dimension_numbers = #tpu.dot_dimension_numbers<[1], [0], [0], [1], [0, 0, 1, 1], [], []>} : vector<8x8xf32>, vector<8x8xf32>, vector<8x8xf32> -> vector<8x8xf32>
    %78 = tpu.concatenate %26, %43, %60, %77 in 1 : vector<8x8xf32>, vector<8x8xf32>, vector<8x8xf32>, vector<8x8xf32> -> vector<8x32xf32>
    %c0_26 = arith.constant 0 : index
    %c0_27 = arith.constant 0 : index
    %79 = vector.load %arg4[%c0_26, %c0_27] : memref<32x32xf32, #tpu.memory_space<vmem>>, vector<32x32xf32>
    %cst_28 = arith.constant dense<0.000000e+00> : vector<8x32xf32>
    %80 = tpu.matmul %78, %79, %cst_28 {dimension_numbers = #tpu.dot_dimension_numbers<[1], [0], [0], [1], [0, 0, 1, 1], [], []>} : vector<8x32xf32>, vector<32x32xf32>, vector<8x32xf32> -> vector<8x32xf32>
    %c0_29 = arith.constant 0 : index
    %c0_30 = arith.constant 0 : index
    %81 = vector.load %arg5[%c0_29, %c0_30] : memref<1x32xf32, #tpu.memory_space<vmem>>, vector<1x32xf32>
    %82 = vector.broadcast %81 : vector<1x32xf32> to vector<8x32xf32>
    %83 = arith.addf %80, %82 : vector<8x32xf32>
    %84 = arith.addf %1, %83 : vector<8x32xf32>
    %c0_31 = arith.constant 0 : index
    %c0_32 = arith.constant 0 : index
    %85 = vector.load %arg6[%c0_31, %c0_32] : memref<1x32xf32, #tpu.memory_space<vmem>>, vector<1x32xf32>
    %c0_33 = arith.constant 0 : index
    %c0_34 = arith.constant 0 : index
    %86 = vector.load %arg7[%c0_33, %c0_34] : memref<1x32xf32, #tpu.memory_space<vmem>>, vector<1x32xf32>
    %cst_35 = arith.constant dense<0.000000e+00> : vector<8xf32>
    %87 = vector.multi_reduction <add>, %84, %cst_35 [1] : vector<8x32xf32> to vector<8xf32>
    %88 = vector.shape_cast %87 : vector<8xf32> to vector<8x1xf32>
    %cst_36 = arith.constant 3.200000e+01 : f32
    %89 = vector.broadcast %cst_36 : f32 to vector<8x1xf32>
    %90 = arith.divf %88, %89 : vector<8x1xf32>
    %91 = vector.broadcast %90 : vector<8x1xf32> to vector<8x32xf32>
    %92 = arith.subf %84, %91 : vector<8x32xf32>
    %93 = arith.mulf %92, %92 : vector<8x32xf32>
    %cst_37 = arith.constant dense<0.000000e+00> : vector<8xf32>
    %94 = vector.multi_reduction <add>, %93, %cst_37 [1] : vector<8x32xf32> to vector<8xf32>
    %95 = vector.shape_cast %94 : vector<8xf32> to vector<8x1xf32>
    %cst_38 = arith.constant 3.200000e+01 : f32
    %96 = vector.broadcast %cst_38 : f32 to vector<8x1xf32>
    %97 = arith.divf %95, %96 : vector<8x1xf32>
    %98 = vector.broadcast %90 : vector<8x1xf32> to vector<8x32xf32>
    %99 = arith.subf %84, %98 : vector<8x32xf32>
    %cst_39 = arith.constant 9.99999974E-6 : f32
    %100 = vector.broadcast %cst_39 : f32 to vector<8x1xf32>
    %101 = arith.addf %97, %100 : vector<8x1xf32>
    %102 = math.rsqrt %101 : vector<8x1xf32>
    %103 = vector.broadcast %102 : vector<8x1xf32> to vector<8x32xf32>
    %104 = arith.mulf %99, %103 : vector<8x32xf32>
    %105 = vector.broadcast %85 : vector<1x32xf32> to vector<8x32xf32>
    %106 = arith.mulf %104, %105 : vector<8x32xf32>
    %107 = vector.broadcast %86 : vector<1x32xf32> to vector<8x32xf32>
    %108 = arith.addf %106, %107 : vector<8x32xf32>
    %c0_40 = arith.constant 0 : index
    %c0_41 = arith.constant 0 : index
    %109 = vector.load %arg8[%c0_40, %c0_41] : memref<32x2048xf32, #tpu.memory_space<vmem>>, vector<32x2048xf32>
    %cst_42 = arith.constant dense<0.000000e+00> : vector<8x2048xf32>
    %110 = tpu.matmul %108, %109, %cst_42 {dimension_numbers = #tpu.dot_dimension_numbers<[1], [0], [0], [1], [0, 0, 1, 1], [], []>} : vector<8x32xf32>, vector<32x2048xf32>, vector<8x2048xf32> -> vector<8x2048xf32>
    %c0_43 = arith.constant 0 : index
    %c0_44 = arith.constant 0 : index
    %111 = vector.load %arg9[%c0_43, %c0_44] : memref<1x2048xf32, #tpu.memory_space<vmem>>, vector<1x2048xf32>
    %112 = vector.broadcast %111 : vector<1x2048xf32> to vector<8x2048xf32>
    %113 = arith.addf %110, %112 : vector<8x2048xf32>
    %cst_45 = arith.constant 0.000000e+00 : f32
    %114 = vector.broadcast %cst_45 : f32 to vector<8x2048xf32>
    %115 = arith.maximumf %113, %114 : vector<8x2048xf32>
    %c0_46 = arith.constant 0 : index
    %c0_47 = arith.constant 0 : index
    %116 = vector.load %arg10[%c0_46, %c0_47] : memref<2048x32xf32, #tpu.memory_space<vmem>>, vector<2048x32xf32>
    %cst_48 = arith.constant dense<0.000000e+00> : vector<8x32xf32>
    %117 = tpu.matmul %115, %116, %cst_48 {dimension_numbers = #tpu.dot_dimension_numbers<[1], [0], [0], [1], [0, 0, 1, 1], [], []>} : vector<8x2048xf32>, vector<2048x32xf32>, vector<8x32xf32> -> vector<8x32xf32>
    %c0_49 = arith.constant 0 : index
    %c0_50 = arith.constant 0 : index
    %118 = vector.load %arg11[%c0_49, %c0_50] : memref<1x32xf32, #tpu.memory_space<vmem>>, vector<1x32xf32>
    %119 = vector.broadcast %118 : vector<1x32xf32> to vector<8x32xf32>
    %120 = arith.addf %117, %119 : vector<8x32xf32>
    %121 = arith.addf %108, %120 : vector<8x32xf32>
    %c0_51 = arith.constant 0 : index
    %c0_52 = arith.constant 0 : index
    %122 = vector.load %arg12[%c0_51, %c0_52] : memref<1x32xf32, #tpu.memory_space<vmem>>, vector<1x32xf32>
    %c0_53 = arith.constant 0 : index
    %c0_54 = arith.constant 0 : index
    %123 = vector.load %arg13[%c0_53, %c0_54] : memref<1x32xf32, #tpu.memory_space<vmem>>, vector<1x32xf32>
    %cst_55 = arith.constant dense<0.000000e+00> : vector<8xf32>
    %124 = vector.multi_reduction <add>, %121, %cst_55 [1] : vector<8x32xf32> to vector<8xf32>
    %125 = vector.shape_cast %124 : vector<8xf32> to vector<8x1xf32>
    %cst_56 = arith.constant 3.200000e+01 : f32
    %126 = vector.broadcast %cst_56 : f32 to vector<8x1xf32>
    %127 = arith.divf %125, %126 : vector<8x1xf32>
    %128 = vector.broadcast %127 : vector<8x1xf32> to vector<8x32xf32>
    %129 = arith.subf %121, %128 : vector<8x32xf32>
    %130 = arith.mulf %129, %129 : vector<8x32xf32>
    %cst_57 = arith.constant dense<0.000000e+00> : vector<8xf32>
    %131 = vector.multi_reduction <add>, %130, %cst_57 [1] : vector<8x32xf32> to vector<8xf32>
    %132 = vector.shape_cast %131 : vector<8xf32> to vector<8x1xf32>
    %cst_58 = arith.constant 3.200000e+01 : f32
    %133 = vector.broadcast %cst_58 : f32 to vector<8x1xf32>
    %134 = arith.divf %132, %133 : vector<8x1xf32>
    %135 = vector.broadcast %127 : vector<8x1xf32> to vector<8x32xf32>
    %136 = arith.subf %121, %135 : vector<8x32xf32>
    %cst_59 = arith.constant 9.99999974E-6 : f32
    %137 = vector.broadcast %cst_59 : f32 to vector<8x1xf32>
    %138 = arith.addf %134, %137 : vector<8x1xf32>
    %139 = math.rsqrt %138 : vector<8x1xf32>
    %140 = vector.broadcast %139 : vector<8x1xf32> to vector<8x32xf32>
    %141 = arith.mulf %136, %140 : vector<8x32xf32>
    %142 = vector.broadcast %122 : vector<1x32xf32> to vector<8x32xf32>
    %143 = arith.mulf %141, %142 : vector<8x32xf32>
    %144 = vector.broadcast %123 : vector<1x32xf32> to vector<8x32xf32>
    %145 = arith.addf %143, %144 : vector<8x32xf32>
    %c0_60 = arith.constant 0 : index
    %c0_61 = arith.constant 0 : index
    %146 = vector.load %arg14[%c0_60, %c0_61] : memref<1x32xf32, #tpu.memory_space<vmem>>, vector<1x32xf32>
    %c0_62 = arith.constant 0 : index
    %c0_63 = arith.constant 0 : index
    %147 = vector.load %arg15[%c0_62, %c0_63] : memref<1x32xf32, #tpu.memory_space<vmem>>, vector<1x32xf32>
    %cst_64 = arith.constant dense<0.000000e+00> : vector<8xf32>
    %148 = vector.multi_reduction <add>, %145, %cst_64 [1] : vector<8x32xf32> to vector<8xf32>
    %149 = vector.shape_cast %148 : vector<8xf32> to vector<8x1xf32>
    %cst_65 = arith.constant 3.200000e+01 : f32
    %150 = vector.broadcast %cst_65 : f32 to vector<8x1xf32>
    %151 = arith.divf %149, %150 : vector<8x1xf32>
    %152 = vector.broadcast %151 : vector<8x1xf32> to vector<8x32xf32>
    %153 = arith.subf %145, %152 : vector<8x32xf32>
    %154 = arith.mulf %153, %153 : vector<8x32xf32>
    %cst_66 = arith.constant dense<0.000000e+00> : vector<8xf32>
    %155 = vector.multi_reduction <add>, %154, %cst_66 [1] : vector<8x32xf32> to vector<8xf32>
    %156 = vector.shape_cast %155 : vector<8xf32> to vector<8x1xf32>
    %cst_67 = arith.constant 3.200000e+01 : f32
    %157 = vector.broadcast %cst_67 : f32 to vector<8x1xf32>
    %158 = arith.divf %156, %157 : vector<8x1xf32>
    %159 = vector.broadcast %151 : vector<8x1xf32> to vector<8x32xf32>
    %160 = arith.subf %145, %159 : vector<8x32xf32>
    %cst_68 = arith.constant 9.99999974E-6 : f32
    %161 = vector.broadcast %cst_68 : f32 to vector<8x1xf32>
    %162 = arith.addf %158, %161 : vector<8x1xf32>
    %163 = math.rsqrt %162 : vector<8x1xf32>
    %164 = vector.broadcast %163 : vector<8x1xf32> to vector<8x32xf32>
    %165 = arith.mulf %160, %164 : vector<8x32xf32>
    %166 = vector.broadcast %146 : vector<1x32xf32> to vector<8x32xf32>
    %167 = arith.mulf %165, %166 : vector<8x32xf32>
    %168 = vector.broadcast %147 : vector<1x32xf32> to vector<8x32xf32>
    %169 = arith.addf %167, %168 : vector<8x32xf32>
    %c0_69 = arith.constant 0 : index
    %c0_70 = arith.constant 0 : index
    %c0_71 = arith.constant 0 : index
    %170 = vector.load %arg16[%c0_69, %c0_70, %c0_71] : memref<1x8x32xf32, #tpu.memory_space<vmem>>, vector<1x8x32xf32>
    %171 = vector.shape_cast %170 : vector<1x8x32xf32> to vector<8x32xf32>
    %172 = vector.shape_cast %169 : vector<8x32xf32> to vector<1x8x32xf32>
    tpu.vector_store %arg16[%c0_69, %c0_70, %c0_71], %172 {strides = array<i32>} : memref<1x8x32xf32, #tpu.memory_space<vmem>>, vector<1x8x32xf32>,
    return
  }
  func.func @transform_0(%arg0: i32) -> (i32, i32, i32) {
    %c0_i32 = arith.constant 0 : i32
    %c0_i32_0 = arith.constant 0 : i32
    %c0_i32_1 = arith.constant 0 : i32
    return %arg0, %c0_i32, %c0_i32_0 : i32, i32, i32
  }
  func.func @transform_1(%arg0: i32) -> (i32, i32) {
    %c0_i32 = arith.constant 0 : i32
    %c0_i32_0 = arith.constant 0 : i32
    %c0_i32_1 = arith.constant 0 : i32
    return %c0_i32, %c0_i32_0 : i32, i32
  }
  func.func @transform_2(%arg0: i32) -> (i32, i32) {
    %c0_i32 = arith.constant 0 : i32
    %c0_i32_0 = arith.constant 0 : i32
    %c0_i32_1 = arith.constant 0 : i32
    return %c0_i32, %c0_i32_0 : i32, i32
  }
  func.func @transform_3(%arg0: i32) -> (i32, i32) {
    %c0_i32 = arith.constant 0 : i32
    %c0_i32_0 = arith.constant 0 : i32
    %c0_i32_1 = arith.constant 0 : i32
    return %c0_i32, %c0_i32_0 : i32, i32
  }
  func.func @transform_4(%arg0: i32) -> (i32, i32) {
    %c0_i32 = arith.constant 0 : i32
    %c0_i32_0 = arith.constant 0 : i32
    %c0_i32_1 = arith.constant 0 : i32
    return %c0_i32, %c0_i32_0 : i32, i32
  }
  func.func @transform_5(%arg0: i32) -> (i32, i32) {
    %c0_i32 = arith.constant 0 : i32
    %c0_i32_0 = arith.constant 0 : i32
    %c0_i32_1 = arith.constant 0 : i32
    return %c0_i32, %c0_i32_0 : i32, i32
  }
  func.func @transform_6(%arg0: i32) -> (i32, i32) {
    %c0_i32 = arith.constant 0 : i32
    %c0_i32_0 = arith.constant 0 : i32
    %c0_i32_1 = arith.constant 0 : i32
    return %c0_i32, %c0_i32_0 : i32, i32
  }
  func.func @transform_7(%arg0: i32) -> (i32, i32) {
    %c0_i32 = arith.constant 0 : i32
    %c0_i32_0 = arith.constant 0 : i32
    %c0_i32_1 = arith.constant 0 : i32
    return %c0_i32, %c0_i32_0 : i32, i32
  }
  func.func @transform_8(%arg0: i32) -> (i32, i32) {
    %c0_i32 = arith.constant 0 : i32
    %c0_i32_0 = arith.constant 0 : i32
    %c0_i32_1 = arith.constant 0 : i32
    return %c0_i32, %c0_i32_0 : i32, i32
  }
  func.func @transform_9(%arg0: i32) -> (i32, i32) {
    %c0_i32 = arith.constant 0 : i32
    %c0_i32_0 = arith.constant 0 : i32
    %c0_i32_1 = arith.constant 0 : i32
    return %c0_i32, %c0_i32_0 : i32, i32
  }
  func.func @transform_10(%arg0: i32) -> (i32, i32) {
    %c0_i32 = arith.constant 0 : i32
    %c0_i32_0 = arith.constant 0 : i32
    %c0_i32_1 = arith.constant 0 : i32
    return %c0_i32, %c0_i32_0 : i32, i32
  }
  func.func @transform_11(%arg0: i32) -> (i32, i32) {
    %c0_i32 = arith.constant 0 : i32
    %c0_i32_0 = arith.constant 0 : i32
    %c0_i32_1 = arith.constant 0 : i32
    return %c0_i32, %c0_i32_0 : i32, i32
  }
  func.func @transform_12(%arg0: i32) -> (i32, i32) {
    %c0_i32 = arith.constant 0 : i32
    %c0_i32_0 = arith.constant 0 : i32
    %c0_i32_1 = arith.constant 0 : i32
    return %c0_i32, %c0_i32_0 : i32, i32
  }
  func.func @transform_13(%arg0: i32) -> (i32, i32) {
    %c0_i32 = arith.constant 0 : i32
    %c0_i32_0 = arith.constant 0 : i32
    %c0_i32_1 = arith.constant 0 : i32
    return %c0_i32, %c0_i32_0 : i32, i32
  }
  func.func @transform_14(%arg0: i32) -> (i32, i32) {
    %c0_i32 = arith.constant 0 : i32
    %c0_i32_0 = arith.constant 0 : i32
    %c0_i32_1 = arith.constant 0 : i32
    return %c0_i32, %c0_i32_0 : i32, i32
  }
  func.func @transform_15(%arg0: i32) -> (i32, i32, i32) {
    %c0_i32 = arith.constant 0 : i32
    %c0_i32_0 = arith.constant 0 : i32
    %c0_i32_1 = arith.constant 0 : i32
    return %arg0, %c0_i32, %c0_i32_0 : i32, i32, i32
  }
}

module attributes {stable_mosaic.version = 11 : i64} {
  func.func @_decoder_layer_kernel(%arg0: i32, %arg1: memref<1x8x32xf32, #tpu.memory_space<vmem>>, %arg2: memref<1x8x32xf32, #tpu.memory_space<vmem>>, %arg3: memref<32x96xf32, #tpu.memory_space<vmem>>, %arg4: memref<1x96xf32, #tpu.memory_space<vmem>>, %arg5: memref<32x32xf32, #tpu.memory_space<vmem>>, %arg6: memref<1x32xf32, #tpu.memory_space<vmem>>, %arg7: memref<1x32xf32, #tpu.memory_space<vmem>>, %arg8: memref<1x32xf32, #tpu.memory_space<vmem>>, %arg9: memref<32x32xf32, #tpu.memory_space<vmem>>, %arg10: memref<1x32xf32, #tpu.memory_space<vmem>>, %arg11: memref<32x64xf32, #tpu.memory_space<vmem>>, %arg12: memref<1x64xf32, #tpu.memory_space<vmem>>, %arg13: memref<32x32xf32, #tpu.memory_space<vmem>>, %arg14: memref<1x32xf32, #tpu.memory_space<vmem>>, %arg15: memref<1x32xf32, #tpu.memory_space<vmem>>, %arg16: memref<1x32xf32, #tpu.memory_space<vmem>>, %arg17: memref<32x2048xf32, #tpu.memory_space<vmem>>, %arg18: memref<1x2048xf32, #tpu.memory_space<vmem>>, %arg19: memref<2048x32xf32, #tpu.memory_space<vmem>>, %arg20: memref<1x32xf32, #tpu.memory_space<vmem>>, %arg21: memref<1x32xf32, #tpu.memory_space<vmem>>, %arg22: memref<1x32xf32, #tpu.memory_space<vmem>>, %arg23: memref<1x8x32xf32, #tpu.memory_space<vmem>>) attributes {dimension_semantics = [#tpu.dimension_semantics<parallel>], iteration_bounds = array<i64: 2>, scalar_prefetch = 0 : i64, scratch_operands = 0 : i64, tpu.core_type = #tpu.core_type<tc>, window_params = [{transform_indices = @transform_0, window_bounds = array<i64: 1, 8, 32>}, {transform_indices = @transform_1, window_bounds = array<i64: 1, 8, 32>}, {pipeline_mode = #tpu.pipeline_mode<synchronous>, transform_indices = @transform_2, window_bounds = array<i64: 32, 96>}, {pipeline_mode = #tpu.pipeline_mode<synchronous>, transform_indices = @transform_3, window_bounds = array<i64: 1, 96>}, {pipeline_mode = #tpu.pipeline_mode<synchronous>, transform_indices = @transform_4, window_bounds = array<i64: 32, 32>}, {pipeline_mode = #tpu.pipeline_mode<synchronous>, transform_indices = @transform_5, window_bounds = array<i64: 1, 32>}, {pipeline_mode = #tpu.pipeline_mode<synchronous>, transform_indices = @transform_6, window_bounds = array<i64: 1, 32>}, {pipeline_mode = #tpu.pipeline_mode<synchronous>, transform_indices = @transform_7, window_bounds = array<i64: 1, 32>}, {pipeline_mode = #tpu.pipeline_mode<synchronous>, transform_indices = @transform_8, window_bounds = array<i64: 32, 32>}, {pipeline_mode = #tpu.pipeline_mode<synchronous>, transform_indices = @transform_9, window_bounds = array<i64: 1, 32>}, {pipeline_mode = #tpu.pipeline_mode<synchronous>, transform_indices = @transform_10, window_bounds = array<i64: 32, 64>}, {pipeline_mode = #tpu.pipeline_mode<synchronous>, transform_indices = @transform_11, window_bounds = array<i64: 1, 64>}, {pipeline_mode = #tpu.pipeline_mode<synchronous>, transform_indices = @transform_12, window_bounds = array<i64: 32, 32>}, {pipeline_mode = #tpu.pipeline_mode<synchronous>, transform_indices = @transform_13, window_bounds = array<i64: 1, 32>}, {pipeline_mode = #tpu.pipeline_mode<synchronous>, transform_indices = @transform_14, window_bounds = array<i64: 1, 32>}, {pipeline_mode = #tpu.pipeline_mode<synchronous>, transform_indices = @transform_15, window_bounds = array<i64: 1, 32>}, {pipeline_mode = #tpu.pipeline_mode<synchronous>, transform_indices = @transform_16, window_bounds = array<i64: 32, 2048>}, {pipeline_mode = #tpu.pipeline_mode<synchronous>, transform_indices = @transform_17, window_bounds = array<i64: 1, 2048>}, {pipeline_mode = #tpu.pipeline_mode<synchronous>, transform_indices = @transform_18, window_bounds = array<i64: 2048, 32>}, {pipeline_mode = #tpu.pipeline_mode<synchronous>, transform_indices = @transform_19, window_bounds = array<i64: 1, 32>}, {pipeline_mode = #tpu.pipeline_mode<synchronous>, transform_indices = @transform_20, window_bounds = array<i64: 1, 32>}, {pipeline_mode = #tpu.pipeline_mode<synchronous>, transform_indices = @transform_21, window_bounds = array<i64: 1, 32>}, {transform_indices = @transform_22, window_bounds = array<i64: 1, 8, 32>}]} {
    %c0 = arith.constant 0 : index
    %c0_0 = arith.constant 0 : index
    %c0_1 = arith.constant 0 : index
    %0 = vector.load %arg1[%c0, %c0_0, %c0_1] : memref<1x8x32xf32, #tpu.memory_space<vmem>>, vector<1x8x32xf32>
    %1 = vector.shape_cast %0 : vector<1x8x32xf32> to vector<8x32xf32>
    %c0_2 = arith.constant 0 : index
    %c0_3 = arith.constant 0 : index
    %c0_4 = arith.constant 0 : index
    %2 = vector.load %arg2[%c0_2, %c0_3, %c0_4] : memref<1x8x32xf32, #tpu.memory_space<vmem>>, vector<1x8x32xf32>
    %3 = vector.shape_cast %2 : vector<1x8x32xf32> to vector<8x32xf32>
    %c0_5 = arith.constant 0 : index
    %c0_6 = arith.constant 0 : index
    %4 = vector.load %arg3[%c0_5, %c0_6] : memref<32x96xf32, #tpu.memory_space<vmem>>, vector<32x96xf32>
    %cst = arith.constant dense<0.000000e+00> : vector<8x96xf32>
    %5 = tpu.matmul %1, %4, %cst {dimension_numbers = #tpu.dot_dimension_numbers<[1], [0], [0], [1], [0, 0, 1, 1], [], []>} : vector<8x32xf32>, vector<32x96xf32>, vector<8x96xf32> -> vector<8x96xf32>
    %c0_7 = arith.constant 0 : index
    %c0_8 = arith.constant 0 : index
    %6 = vector.load %arg4[%c0_7, %c0_8] : memref<1x96xf32, #tpu.memory_space<vmem>>, vector<1x96xf32>
    %7 = vector.broadcast %6 : vector<1x96xf32> to vector<8x96xf32>
    %8 = arith.addf %5, %7 : vector<8x96xf32>
    %9 = vector.extract_strided_slice %8 {offsets = [0, 0], sizes = [8, 32], strides = [1, 1]} : vector<8x96xf32> to vector<8x32xf32>
    %10 = vector.extract_strided_slice %8 {offsets = [0, 32], sizes = [8, 32], strides = [1, 1]} : vector<8x96xf32> to vector<8x32xf32>
    %11 = vector.extract_strided_slice %8 {offsets = [0, 64], sizes = [8, 32], strides = [1, 1]} : vector<8x96xf32> to vector<8x32xf32>
    %12 = tpu.iota {dimensions = array<i32: 0>} : vector<8x8xi32>
    %13 = tpu.iota {dimensions = array<i32: 1>} : vector<8x8xi32>
    %14 = arith.cmpi sgt, %13, %12 : vector<8x8xi32>
    %cst_9 = arith.constant -1.000000e+08 : f32
    %cst_10 = arith.constant 0.000000e+00 : f32
    %15 = vector.broadcast %cst_9 : f32 to vector<8x8xf32>
    %16 = vector.broadcast %cst_10 : f32 to vector<8x8xf32>
    %17 = arith.select %14, %15, %16 : vector<8x8xi1>, vector<8x8xf32>
    %18 = vector.extract_strided_slice %9 {offsets = [0, 0], sizes = [8, 8], strides = [1, 1]} : vector<8x32xf32> to vector<8x8xf32>
    %19 = vector.extract_strided_slice %10 {offsets = [0, 0], sizes = [8, 8], strides = [1, 1]} : vector<8x32xf32> to vector<8x8xf32>
    %20 = vector.extract_strided_slice %11 {offsets = [0, 0], sizes = [8, 8], strides = [1, 1]} : vector<8x32xf32> to vector<8x8xf32>
    %cst_11 = arith.constant dense<0.000000e+00> : vector<8x8xf32>
    %21 = tpu.matmul %18, %19, %cst_11 {dimension_numbers = #tpu.dot_dimension_numbers<[1], [1], [0], [0], [0, 0, 1, 0], [], []>} : vector<8x8xf32>, vector<8x8xf32>, vector<8x8xf32> -> vector<8x8xf32>
    %cst_12 = arith.constant 0.353553385 : f32
    %22 = vector.broadcast %cst_12 : f32 to vector<8x8xf32>
    %23 = arith.mulf %21, %22 : vector<8x8xf32>
    %24 = arith.addf %23, %17 : vector<8x8xf32>
    %cst_13 = arith.constant dense<0xFF800000> : vector<8xf32>
    %25 = vector.multi_reduction <maximumf>, %24, %cst_13 [1] : vector<8x8xf32> to vector<8xf32>
    %26 = vector.shape_cast %25 : vector<8xf32> to vector<8x1xf32>
    %27 = vector.broadcast %26 : vector<8x1xf32> to vector<8x8xf32>
    %28 = arith.subf %24, %27 : vector<8x8xf32>
    %29 = math.exp %28 : vector<8x8xf32>
    %cst_14 = arith.constant dense<0.000000e+00> : vector<8xf32>
    %30 = vector.multi_reduction <add>, %29, %cst_14 [1] : vector<8x8xf32> to vector<8xf32>
    %31 = vector.shape_cast %30 : vector<8xf32> to vector<8x1xf32>
    %32 = tpu.reciprocal %31 : vector<8x1xf32> -> vector<8x1xf32>
    %33 = vector.broadcast %32 : vector<8x1xf32> to vector<8x8xf32>
    %34 = arith.mulf %29, %33 : vector<8x8xf32>
    %cst_15 = arith.constant dense<0.000000e+00> : vector<8x8xf32>
    %35 = tpu.matmul %34, %20, %cst_15 {dimension_numbers = #tpu.dot_dimension_numbers<[1], [0], [0], [1], [0, 0, 1, 1], [], []>} : vector<8x8xf32>, vector<8x8xf32>, vector<8x8xf32> -> vector<8x8xf32>
    %36 = vector.extract_strided_slice %9 {offsets = [0, 8], sizes = [8, 8], strides = [1, 1]} : vector<8x32xf32> to vector<8x8xf32>
    %37 = vector.extract_strided_slice %10 {offsets = [0, 8], sizes = [8, 8], strides = [1, 1]} : vector<8x32xf32> to vector<8x8xf32>
    %38 = vector.extract_strided_slice %11 {offsets = [0, 8], sizes = [8, 8], strides = [1, 1]} : vector<8x32xf32> to vector<8x8xf32>
    %cst_16 = arith.constant dense<0.000000e+00> : vector<8x8xf32>
    %39 = tpu.matmul %36, %37, %cst_16 {dimension_numbers = #tpu.dot_dimension_numbers<[1], [1], [0], [0], [0, 0, 1, 0], [], []>} : vector<8x8xf32>, vector<8x8xf32>, vector<8x8xf32> -> vector<8x8xf32>
    %cst_17 = arith.constant 0.353553385 : f32
    %40 = vector.broadcast %cst_17 : f32 to vector<8x8xf32>
    %41 = arith.mulf %39, %40 : vector<8x8xf32>
    %42 = arith.addf %41, %17 : vector<8x8xf32>
    %cst_18 = arith.constant dense<0xFF800000> : vector<8xf32>
    %43 = vector.multi_reduction <maximumf>, %42, %cst_18 [1] : vector<8x8xf32> to vector<8xf32>
    %44 = vector.shape_cast %43 : vector<8xf32> to vector<8x1xf32>
    %45 = vector.broadcast %44 : vector<8x1xf32> to vector<8x8xf32>
    %46 = arith.subf %42, %45 : vector<8x8xf32>
    %47 = math.exp %46 : vector<8x8xf32>
    %cst_19 = arith.constant dense<0.000000e+00> : vector<8xf32>
    %48 = vector.multi_reduction <add>, %47, %cst_19 [1] : vector<8x8xf32> to vector<8xf32>
    %49 = vector.shape_cast %48 : vector<8xf32> to vector<8x1xf32>
    %50 = tpu.reciprocal %49 : vector<8x1xf32> -> vector<8x1xf32>
    %51 = vector.broadcast %50 : vector<8x1xf32> to vector<8x8xf32>
    %52 = arith.mulf %47, %51 : vector<8x8xf32>
    %cst_20 = arith.constant dense<0.000000e+00> : vector<8x8xf32>
    %53 = tpu.matmul %52, %38, %cst_20 {dimension_numbers = #tpu.dot_dimension_numbers<[1], [0], [0], [1], [0, 0, 1, 1], [], []>} : vector<8x8xf32>, vector<8x8xf32>, vector<8x8xf32> -> vector<8x8xf32>
    %54 = vector.extract_strided_slice %9 {offsets = [0, 16], sizes = [8, 8], strides = [1, 1]} : vector<8x32xf32> to vector<8x8xf32>
    %55 = vector.extract_strided_slice %10 {offsets = [0, 16], sizes = [8, 8], strides = [1, 1]} : vector<8x32xf32> to vector<8x8xf32>
    %56 = vector.extract_strided_slice %11 {offsets = [0, 16], sizes = [8, 8], strides = [1, 1]} : vector<8x32xf32> to vector<8x8xf32>
    %cst_21 = arith.constant dense<0.000000e+00> : vector<8x8xf32>
    %57 = tpu.matmul %54, %55, %cst_21 {dimension_numbers = #tpu.dot_dimension_numbers<[1], [1], [0], [0], [0, 0, 1, 0], [], []>} : vector<8x8xf32>, vector<8x8xf32>, vector<8x8xf32> -> vector<8x8xf32>
    %cst_22 = arith.constant 0.353553385 : f32
    %58 = vector.broadcast %cst_22 : f32 to vector<8x8xf32>
    %59 = arith.mulf %57, %58 : vector<8x8xf32>
    %60 = arith.addf %59, %17 : vector<8x8xf32>
    %cst_23 = arith.constant dense<0xFF800000> : vector<8xf32>
    %61 = vector.multi_reduction <maximumf>, %60, %cst_23 [1] : vector<8x8xf32> to vector<8xf32>
    %62 = vector.shape_cast %61 : vector<8xf32> to vector<8x1xf32>
    %63 = vector.broadcast %62 : vector<8x1xf32> to vector<8x8xf32>
    %64 = arith.subf %60, %63 : vector<8x8xf32>
    %65 = math.exp %64 : vector<8x8xf32>
    %cst_24 = arith.constant dense<0.000000e+00> : vector<8xf32>
    %66 = vector.multi_reduction <add>, %65, %cst_24 [1] : vector<8x8xf32> to vector<8xf32>
    %67 = vector.shape_cast %66 : vector<8xf32> to vector<8x1xf32>
    %68 = tpu.reciprocal %67 : vector<8x1xf32> -> vector<8x1xf32>
    %69 = vector.broadcast %68 : vector<8x1xf32> to vector<8x8xf32>
    %70 = arith.mulf %65, %69 : vector<8x8xf32>
    %cst_25 = arith.constant dense<0.000000e+00> : vector<8x8xf32>
    %71 = tpu.matmul %70, %56, %cst_25 {dimension_numbers = #tpu.dot_dimension_numbers<[1], [0], [0], [1], [0, 0, 1, 1], [], []>} : vector<8x8xf32>, vector<8x8xf32>, vector<8x8xf32> -> vector<8x8xf32>
    %72 = vector.extract_strided_slice %9 {offsets = [0, 24], sizes = [8, 8], strides = [1, 1]} : vector<8x32xf32> to vector<8x8xf32>
    %73 = vector.extract_strided_slice %10 {offsets = [0, 24], sizes = [8, 8], strides = [1, 1]} : vector<8x32xf32> to vector<8x8xf32>
    %74 = vector.extract_strided_slice %11 {offsets = [0, 24], sizes = [8, 8], strides = [1, 1]} : vector<8x32xf32> to vector<8x8xf32>
    %cst_26 = arith.constant dense<0.000000e+00> : vector<8x8xf32>
    %75 = tpu.matmul %72, %73, %cst_26 {dimension_numbers = #tpu.dot_dimension_numbers<[1], [1], [0], [0], [0, 0, 1, 0], [], []>} : vector<8x8xf32>, vector<8x8xf32>, vector<8x8xf32> -> vector<8x8xf32>
    %cst_27 = arith.constant 0.353553385 : f32
    %76 = vector.broadcast %cst_27 : f32 to vector<8x8xf32>
    %77 = arith.mulf %75, %76 : vector<8x8xf32>
    %78 = arith.addf %77, %17 : vector<8x8xf32>
    %cst_28 = arith.constant dense<0xFF800000> : vector<8xf32>
    %79 = vector.multi_reduction <maximumf>, %78, %cst_28 [1] : vector<8x8xf32> to vector<8xf32>
    %80 = vector.shape_cast %79 : vector<8xf32> to vector<8x1xf32>
    %81 = vector.broadcast %80 : vector<8x1xf32> to vector<8x8xf32>
    %82 = arith.subf %78, %81 : vector<8x8xf32>
    %83 = math.exp %82 : vector<8x8xf32>
    %cst_29 = arith.constant dense<0.000000e+00> : vector<8xf32>
    %84 = vector.multi_reduction <add>, %83, %cst_29 [1] : vector<8x8xf32> to vector<8xf32>
    %85 = vector.shape_cast %84 : vector<8xf32> to vector<8x1xf32>
    %86 = tpu.reciprocal %85 : vector<8x1xf32> -> vector<8x1xf32>
    %87 = vector.broadcast %86 : vector<8x1xf32> to vector<8x8xf32>
    %88 = arith.mulf %83, %87 : vector<8x8xf32>
    %cst_30 = arith.constant dense<0.000000e+00> : vector<8x8xf32>
    %89 = tpu.matmul %88, %74, %cst_30 {dimension_numbers = #tpu.dot_dimension_numbers<[1], [0], [0], [1], [0, 0, 1, 1], [], []>} : vector<8x8xf32>, vector<8x8xf32>, vector<8x8xf32> -> vector<8x8xf32>
    %90 = tpu.concatenate %35, %53, %71, %89 in 1 : vector<8x8xf32>, vector<8x8xf32>, vector<8x8xf32>, vector<8x8xf32> -> vector<8x32xf32>
    %c0_31 = arith.constant 0 : index
    %c0_32 = arith.constant 0 : index
    %91 = vector.load %arg5[%c0_31, %c0_32] : memref<32x32xf32, #tpu.memory_space<vmem>>, vector<32x32xf32>
    %cst_33 = arith.constant dense<0.000000e+00> : vector<8x32xf32>
    %92 = tpu.matmul %90, %91, %cst_33 {dimension_numbers = #tpu.dot_dimension_numbers<[1], [0], [0], [1], [0, 0, 1, 1], [], []>} : vector<8x32xf32>, vector<32x32xf32>, vector<8x32xf32> -> vector<8x32xf32>
    %c0_34 = arith.constant 0 : index
    %c0_35 = arith.constant 0 : index
    %93 = vector.load %arg6[%c0_34, %c0_35] : memref<1x32xf32, #tpu.memory_space<vmem>>, vector<1x32xf32>
    %94 = vector.broadcast %93 : vector<1x32xf32> to vector<8x32xf32>
    %95 = arith.addf %92, %94 : vector<8x32xf32>
    %96 = arith.addf %1, %95 : vector<8x32xf32>
    %c0_36 = arith.constant 0 : index
    %c0_37 = arith.constant 0 : index
    %97 = vector.load %arg7[%c0_36, %c0_37] : memref<1x32xf32, #tpu.memory_space<vmem>>, vector<1x32xf32>
    %c0_38 = arith.constant 0 : index
    %c0_39 = arith.constant 0 : index
    %98 = vector.load %arg8[%c0_38, %c0_39] : memref<1x32xf32, #tpu.memory_space<vmem>>, vector<1x32xf32>
    %cst_40 = arith.constant dense<0.000000e+00> : vector<8xf32>
    %99 = vector.multi_reduction <add>, %96, %cst_40 [1] : vector<8x32xf32> to vector<8xf32>
    %100 = vector.shape_cast %99 : vector<8xf32> to vector<8x1xf32>
    %cst_41 = arith.constant 3.200000e+01 : f32
    %101 = vector.broadcast %cst_41 : f32 to vector<8x1xf32>
    %102 = arith.divf %100, %101 : vector<8x1xf32>
    %103 = vector.broadcast %102 : vector<8x1xf32> to vector<8x32xf32>
    %104 = arith.subf %96, %103 : vector<8x32xf32>
    %105 = arith.mulf %104, %104 : vector<8x32xf32>
    %cst_42 = arith.constant dense<0.000000e+00> : vector<8xf32>
    %106 = vector.multi_reduction <add>, %105, %cst_42 [1] : vector<8x32xf32> to vector<8xf32>
    %107 = vector.shape_cast %106 : vector<8xf32> to vector<8x1xf32>
    %cst_43 = arith.constant 3.200000e+01 : f32
    %108 = vector.broadcast %cst_43 : f32 to vector<8x1xf32>
    %109 = arith.divf %107, %108 : vector<8x1xf32>
    %110 = vector.broadcast %102 : vector<8x1xf32> to vector<8x32xf32>
    %111 = arith.subf %96, %110 : vector<8x32xf32>
    %cst_44 = arith.constant 9.99999974E-6 : f32
    %112 = vector.broadcast %cst_44 : f32 to vector<8x1xf32>
    %113 = arith.addf %109, %112 : vector<8x1xf32>
    %114 = math.rsqrt %113 : vector<8x1xf32>
    %115 = vector.broadcast %114 : vector<8x1xf32> to vector<8x32xf32>
    %116 = arith.mulf %111, %115 : vector<8x32xf32>
    %117 = vector.broadcast %97 : vector<1x32xf32> to vector<8x32xf32>
    %118 = arith.mulf %116, %117 : vector<8x32xf32>
    %119 = vector.broadcast %98 : vector<1x32xf32> to vector<8x32xf32>
    %120 = arith.addf %118, %119 : vector<8x32xf32>
    %c0_45 = arith.constant 0 : index
    %c0_46 = arith.constant 0 : index
    %121 = vector.load %arg9[%c0_45, %c0_46] : memref<32x32xf32, #tpu.memory_space<vmem>>, vector<32x32xf32>
    %cst_47 = arith.constant dense<0.000000e+00> : vector<8x32xf32>
    %122 = tpu.matmul %120, %121, %cst_47 {dimension_numbers = #tpu.dot_dimension_numbers<[1], [0], [0], [1], [0, 0, 1, 1], [], []>} : vector<8x32xf32>, vector<32x32xf32>, vector<8x32xf32> -> vector<8x32xf32>
    %c0_48 = arith.constant 0 : index
    %c0_49 = arith.constant 0 : index
    %123 = vector.load %arg10[%c0_48, %c0_49] : memref<1x32xf32, #tpu.memory_space<vmem>>, vector<1x32xf32>
    %124 = vector.broadcast %123 : vector<1x32xf32> to vector<8x32xf32>
    %125 = arith.addf %122, %124 : vector<8x32xf32>
    %c0_50 = arith.constant 0 : index
    %c0_51 = arith.constant 0 : index
    %126 = vector.load %arg11[%c0_50, %c0_51] : memref<32x64xf32, #tpu.memory_space<vmem>>, vector<32x64xf32>
    %cst_52 = arith.constant dense<0.000000e+00> : vector<8x64xf32>
    %127 = tpu.matmul %3, %126, %cst_52 {dimension_numbers = #tpu.dot_dimension_numbers<[1], [0], [0], [1], [0, 0, 1, 1], [], []>} : vector<8x32xf32>, vector<32x64xf32>, vector<8x64xf32> -> vector<8x64xf32>
    %c0_53 = arith.constant 0 : index
    %c0_54 = arith.constant 0 : index
    %128 = vector.load %arg12[%c0_53, %c0_54] : memref<1x64xf32, #tpu.memory_space<vmem>>, vector<1x64xf32>
    %129 = vector.broadcast %128 : vector<1x64xf32> to vector<8x64xf32>
    %130 = arith.addf %127, %129 : vector<8x64xf32>
    %131 = vector.extract_strided_slice %130 {offsets = [0, 0], sizes = [8, 32], strides = [1, 1]} : vector<8x64xf32> to vector<8x32xf32>
    %132 = vector.extract_strided_slice %130 {offsets = [0, 32], sizes = [8, 32], strides = [1, 1]} : vector<8x64xf32> to vector<8x32xf32>
    %133 = vector.extract_strided_slice %125 {offsets = [0, 0], sizes = [8, 8], strides = [1, 1]} : vector<8x32xf32> to vector<8x8xf32>
    %134 = vector.extract_strided_slice %131 {offsets = [0, 0], sizes = [8, 8], strides = [1, 1]} : vector<8x32xf32> to vector<8x8xf32>
    %135 = vector.extract_strided_slice %132 {offsets = [0, 0], sizes = [8, 8], strides = [1, 1]} : vector<8x32xf32> to vector<8x8xf32>
    %cst_55 = arith.constant dense<0.000000e+00> : vector<8x8xf32>
    %136 = tpu.matmul %133, %134, %cst_55 {dimension_numbers = #tpu.dot_dimension_numbers<[1], [1], [0], [0], [0, 0, 1, 0], [], []>} : vector<8x8xf32>, vector<8x8xf32>, vector<8x8xf32> -> vector<8x8xf32>
    %cst_56 = arith.constant 0.353553385 : f32
    %137 = vector.broadcast %cst_56 : f32 to vector<8x8xf32>
    %138 = arith.mulf %136, %137 : vector<8x8xf32>
    %cst_57 = arith.constant dense<0xFF800000> : vector<8xf32>
    %139 = vector.multi_reduction <maximumf>, %138, %cst_57 [1] : vector<8x8xf32> to vector<8xf32>
    %140 = vector.shape_cast %139 : vector<8xf32> to vector<8x1xf32>
    %141 = vector.broadcast %140 : vector<8x1xf32> to vector<8x8xf32>
    %142 = arith.subf %138, %141 : vector<8x8xf32>
    %143 = math.exp %142 : vector<8x8xf32>
    %cst_58 = arith.constant dense<0.000000e+00> : vector<8xf32>
    %144 = vector.multi_reduction <add>, %143, %cst_58 [1] : vector<8x8xf32> to vector<8xf32>
    %145 = vector.shape_cast %144 : vector<8xf32> to vector<8x1xf32>
    %146 = tpu.reciprocal %145 : vector<8x1xf32> -> vector<8x1xf32>
    %147 = vector.broadcast %146 : vector<8x1xf32> to vector<8x8xf32>
    %148 = arith.mulf %143, %147 : vector<8x8xf32>
    %cst_59 = arith.constant dense<0.000000e+00> : vector<8x8xf32>
    %149 = tpu.matmul %148, %135, %cst_59 {dimension_numbers = #tpu.dot_dimension_numbers<[1], [0], [0], [1], [0, 0, 1, 1], [], []>} : vector<8x8xf32>, vector<8x8xf32>, vector<8x8xf32> -> vector<8x8xf32>
    %150 = vector.extract_strided_slice %125 {offsets = [0, 8], sizes = [8, 8], strides = [1, 1]} : vector<8x32xf32> to vector<8x8xf32>
    %151 = vector.extract_strided_slice %131 {offsets = [0, 8], sizes = [8, 8], strides = [1, 1]} : vector<8x32xf32> to vector<8x8xf32>
    %152 = vector.extract_strided_slice %132 {offsets = [0, 8], sizes = [8, 8], strides = [1, 1]} : vector<8x32xf32> to vector<8x8xf32>
    %cst_60 = arith.constant dense<0.000000e+00> : vector<8x8xf32>
    %153 = tpu.matmul %150, %151, %cst_60 {dimension_numbers = #tpu.dot_dimension_numbers<[1], [1], [0], [0], [0, 0, 1, 0], [], []>} : vector<8x8xf32>, vector<8x8xf32>, vector<8x8xf32> -> vector<8x8xf32>
    %cst_61 = arith.constant 0.353553385 : f32
    %154 = vector.broadcast %cst_61 : f32 to vector<8x8xf32>
    %155 = arith.mulf %153, %154 : vector<8x8xf32>
    %cst_62 = arith.constant dense<0xFF800000> : vector<8xf32>
    %156 = vector.multi_reduction <maximumf>, %155, %cst_62 [1] : vector<8x8xf32> to vector<8xf32>
    %157 = vector.shape_cast %156 : vector<8xf32> to vector<8x1xf32>
    %158 = vector.broadcast %157 : vector<8x1xf32> to vector<8x8xf32>
    %159 = arith.subf %155, %158 : vector<8x8xf32>
    %160 = math.exp %159 : vector<8x8xf32>
    %cst_63 = arith.constant dense<0.000000e+00> : vector<8xf32>
    %161 = vector.multi_reduction <add>, %160, %cst_63 [1] : vector<8x8xf32> to vector<8xf32>
    %162 = vector.shape_cast %161 : vector<8xf32> to vector<8x1xf32>
    %163 = tpu.reciprocal %162 : vector<8x1xf32> -> vector<8x1xf32>
    %164 = vector.broadcast %163 : vector<8x1xf32> to vector<8x8xf32>
    %165 = arith.mulf %160, %164 : vector<8x8xf32>
    %cst_64 = arith.constant dense<0.000000e+00> : vector<8x8xf32>
    %166 = tpu.matmul %165, %152, %cst_64 {dimension_numbers = #tpu.dot_dimension_numbers<[1], [0], [0], [1], [0, 0, 1, 1], [], []>} : vector<8x8xf32>, vector<8x8xf32>, vector<8x8xf32> -> vector<8x8xf32>
    %167 = vector.extract_strided_slice %125 {offsets = [0, 16], sizes = [8, 8], strides = [1, 1]} : vector<8x32xf32> to vector<8x8xf32>
    %168 = vector.extract_strided_slice %131 {offsets = [0, 16], sizes = [8, 8], strides = [1, 1]} : vector<8x32xf32> to vector<8x8xf32>
    %169 = vector.extract_strided_slice %132 {offsets = [0, 16], sizes = [8, 8], strides = [1, 1]} : vector<8x32xf32> to vector<8x8xf32>
    %cst_65 = arith.constant dense<0.000000e+00> : vector<8x8xf32>
    %170 = tpu.matmul %167, %168, %cst_65 {dimension_numbers = #tpu.dot_dimension_numbers<[1], [1], [0], [0], [0, 0, 1, 0], [], []>} : vector<8x8xf32>, vector<8x8xf32>, vector<8x8xf32> -> vector<8x8xf32>
    %cst_66 = arith.constant 0.353553385 : f32
    %171 = vector.broadcast %cst_66 : f32 to vector<8x8xf32>
    %172 = arith.mulf %170, %171 : vector<8x8xf32>
    %cst_67 = arith.constant dense<0xFF800000> : vector<8xf32>
    %173 = vector.multi_reduction <maximumf>, %172, %cst_67 [1] : vector<8x8xf32> to vector<8xf32>
    %174 = vector.shape_cast %173 : vector<8xf32> to vector<8x1xf32>
    %175 = vector.broadcast %174 : vector<8x1xf32> to vector<8x8xf32>
    %176 = arith.subf %172, %175 : vector<8x8xf32>
    %177 = math.exp %176 : vector<8x8xf32>
    %cst_68 = arith.constant dense<0.000000e+00> : vector<8xf32>
    %178 = vector.multi_reduction <add>, %177, %cst_68 [1] : vector<8x8xf32> to vector<8xf32>
    %179 = vector.shape_cast %178 : vector<8xf32> to vector<8x1xf32>
    %180 = tpu.reciprocal %179 : vector<8x1xf32> -> vector<8x1xf32>
    %181 = vector.broadcast %180 : vector<8x1xf32> to vector<8x8xf32>
    %182 = arith.mulf %177, %181 : vector<8x8xf32>
    %cst_69 = arith.constant dense<0.000000e+00> : vector<8x8xf32>
    %183 = tpu.matmul %182, %169, %cst_69 {dimension_numbers = #tpu.dot_dimension_numbers<[1], [0], [0], [1], [0, 0, 1, 1], [], []>} : vector<8x8xf32>, vector<8x8xf32>, vector<8x8xf32> -> vector<8x8xf32>
    %184 = vector.extract_strided_slice %125 {offsets = [0, 24], sizes = [8, 8], strides = [1, 1]} : vector<8x32xf32> to vector<8x8xf32>
    %185 = vector.extract_strided_slice %131 {offsets = [0, 24], sizes = [8, 8], strides = [1, 1]} : vector<8x32xf32> to vector<8x8xf32>
    %186 = vector.extract_strided_slice %132 {offsets = [0, 24], sizes = [8, 8], strides = [1, 1]} : vector<8x32xf32> to vector<8x8xf32>
    %cst_70 = arith.constant dense<0.000000e+00> : vector<8x8xf32>
    %187 = tpu.matmul %184, %185, %cst_70 {dimension_numbers = #tpu.dot_dimension_numbers<[1], [1], [0], [0], [0, 0, 1, 0], [], []>} : vector<8x8xf32>, vector<8x8xf32>, vector<8x8xf32> -> vector<8x8xf32>
    %cst_71 = arith.constant 0.353553385 : f32
    %188 = vector.broadcast %cst_71 : f32 to vector<8x8xf32>
    %189 = arith.mulf %187, %188 : vector<8x8xf32>
    %cst_72 = arith.constant dense<0xFF800000> : vector<8xf32>
    %190 = vector.multi_reduction <maximumf>, %189, %cst_72 [1] : vector<8x8xf32> to vector<8xf32>
    %191 = vector.shape_cast %190 : vector<8xf32> to vector<8x1xf32>
    %192 = vector.broadcast %191 : vector<8x1xf32> to vector<8x8xf32>
    %193 = arith.subf %189, %192 : vector<8x8xf32>
    %194 = math.exp %193 : vector<8x8xf32>
    %cst_73 = arith.constant dense<0.000000e+00> : vector<8xf32>
    %195 = vector.multi_reduction <add>, %194, %cst_73 [1] : vector<8x8xf32> to vector<8xf32>
    %196 = vector.shape_cast %195 : vector<8xf32> to vector<8x1xf32>
    %197 = tpu.reciprocal %196 : vector<8x1xf32> -> vector<8x1xf32>
    %198 = vector.broadcast %197 : vector<8x1xf32> to vector<8x8xf32>
    %199 = arith.mulf %194, %198 : vector<8x8xf32>
    %cst_74 = arith.constant dense<0.000000e+00> : vector<8x8xf32>
    %200 = tpu.matmul %199, %186, %cst_74 {dimension_numbers = #tpu.dot_dimension_numbers<[1], [0], [0], [1], [0, 0, 1, 1], [], []>} : vector<8x8xf32>, vector<8x8xf32>, vector<8x8xf32> -> vector<8x8xf32>
    %201 = tpu.concatenate %149, %166, %183, %200 in 1 : vector<8x8xf32>, vector<8x8xf32>, vector<8x8xf32>, vector<8x8xf32> -> vector<8x32xf32>
    %c0_75 = arith.constant 0 : index
    %c0_76 = arith.constant 0 : index
    %202 = vector.load %arg13[%c0_75, %c0_76] : memref<32x32xf32, #tpu.memory_space<vmem>>, vector<32x32xf32>
    %cst_77 = arith.constant dense<0.000000e+00> : vector<8x32xf32>
    %203 = tpu.matmul %201, %202, %cst_77 {dimension_numbers = #tpu.dot_dimension_numbers<[1], [0], [0], [1], [0, 0, 1, 1], [], []>} : vector<8x32xf32>, vector<32x32xf32>, vector<8x32xf32> -> vector<8x32xf32>
    %c0_78 = arith.constant 0 : index
    %c0_79 = arith.constant 0 : index
    %204 = vector.load %arg14[%c0_78, %c0_79] : memref<1x32xf32, #tpu.memory_space<vmem>>, vector<1x32xf32>
    %205 = vector.broadcast %204 : vector<1x32xf32> to vector<8x32xf32>
    %206 = arith.addf %203, %205 : vector<8x32xf32>
    %207 = arith.addf %120, %206 : vector<8x32xf32>
    %c0_80 = arith.constant 0 : index
    %c0_81 = arith.constant 0 : index
    %208 = vector.load %arg15[%c0_80, %c0_81] : memref<1x32xf32, #tpu.memory_space<vmem>>, vector<1x32xf32>
    %c0_82 = arith.constant 0 : index
    %c0_83 = arith.constant 0 : index
    %209 = vector.load %arg16[%c0_82, %c0_83] : memref<1x32xf32, #tpu.memory_space<vmem>>, vector<1x32xf32>
    %cst_84 = arith.constant dense<0.000000e+00> : vector<8xf32>
    %210 = vector.multi_reduction <add>, %207, %cst_84 [1] : vector<8x32xf32> to vector<8xf32>
    %211 = vector.shape_cast %210 : vector<8xf32> to vector<8x1xf32>
    %cst_85 = arith.constant 3.200000e+01 : f32
    %212 = vector.broadcast %cst_85 : f32 to vector<8x1xf32>
    %213 = arith.divf %211, %212 : vector<8x1xf32>
    %214 = vector.broadcast %213 : vector<8x1xf32> to vector<8x32xf32>
    %215 = arith.subf %207, %214 : vector<8x32xf32>
    %216 = arith.mulf %215, %215 : vector<8x32xf32>
    %cst_86 = arith.constant dense<0.000000e+00> : vector<8xf32>
    %217 = vector.multi_reduction <add>, %216, %cst_86 [1] : vector<8x32xf32> to vector<8xf32>
    %218 = vector.shape_cast %217 : vector<8xf32> to vector<8x1xf32>
    %cst_87 = arith.constant 3.200000e+01 : f32
    %219 = vector.broadcast %cst_87 : f32 to vector<8x1xf32>
    %220 = arith.divf %218, %219 : vector<8x1xf32>
    %221 = vector.broadcast %213 : vector<8x1xf32> to vector<8x32xf32>
    %222 = arith.subf %207, %221 : vector<8x32xf32>
    %cst_88 = arith.constant 9.99999974E-6 : f32
    %223 = vector.broadcast %cst_88 : f32 to vector<8x1xf32>
    %224 = arith.addf %220, %223 : vector<8x1xf32>
    %225 = math.rsqrt %224 : vector<8x1xf32>
    %226 = vector.broadcast %225 : vector<8x1xf32> to vector<8x32xf32>
    %227 = arith.mulf %222, %226 : vector<8x32xf32>
    %228 = vector.broadcast %208 : vector<1x32xf32> to vector<8x32xf32>
    %229 = arith.mulf %227, %228 : vector<8x32xf32>
    %230 = vector.broadcast %209 : vector<1x32xf32> to vector<8x32xf32>
    %231 = arith.addf %229, %230 : vector<8x32xf32>
    %c0_89 = arith.constant 0 : index
    %c0_90 = arith.constant 0 : index
    %232 = vector.load %arg17[%c0_89, %c0_90] : memref<32x2048xf32, #tpu.memory_space<vmem>>, vector<32x2048xf32>
    %cst_91 = arith.constant dense<0.000000e+00> : vector<8x2048xf32>
    %233 = tpu.matmul %231, %232, %cst_91 {dimension_numbers = #tpu.dot_dimension_numbers<[1], [0], [0], [1], [0, 0, 1, 1], [], []>} : vector<8x32xf32>, vector<32x2048xf32>, vector<8x2048xf32> -> vector<8x2048xf32>
    %c0_92 = arith.constant 0 : index
    %c0_93 = arith.constant 0 : index
    %234 = vector.load %arg18[%c0_92, %c0_93] : memref<1x2048xf32, #tpu.memory_space<vmem>>, vector<1x2048xf32>
    %235 = vector.broadcast %234 : vector<1x2048xf32> to vector<8x2048xf32>
    %236 = arith.addf %233, %235 : vector<8x2048xf32>
    %cst_94 = arith.constant 0.000000e+00 : f32
    %237 = vector.broadcast %cst_94 : f32 to vector<8x2048xf32>
    %238 = arith.maximumf %236, %237 : vector<8x2048xf32>
    %c0_95 = arith.constant 0 : index
    %c0_96 = arith.constant 0 : index
    %239 = vector.load %arg19[%c0_95, %c0_96] : memref<2048x32xf32, #tpu.memory_space<vmem>>, vector<2048x32xf32>
    %cst_97 = arith.constant dense<0.000000e+00> : vector<8x32xf32>
    %240 = tpu.matmul %238, %239, %cst_97 {dimension_numbers = #tpu.dot_dimension_numbers<[1], [0], [0], [1], [0, 0, 1, 1], [], []>} : vector<8x2048xf32>, vector<2048x32xf32>, vector<8x32xf32> -> vector<8x32xf32>
    %c0_98 = arith.constant 0 : index
    %c0_99 = arith.constant 0 : index
    %241 = vector.load %arg20[%c0_98, %c0_99] : memref<1x32xf32, #tpu.memory_space<vmem>>, vector<1x32xf32>
    %242 = vector.broadcast %241 : vector<1x32xf32> to vector<8x32xf32>
    %243 = arith.addf %240, %242 : vector<8x32xf32>
    %244 = arith.addf %231, %243 : vector<8x32xf32>
    %c0_100 = arith.constant 0 : index
    %c0_101 = arith.constant 0 : index
    %245 = vector.load %arg21[%c0_100, %c0_101] : memref<1x32xf32, #tpu.memory_space<vmem>>, vector<1x32xf32>
    %c0_102 = arith.constant 0 : index
    %c0_103 = arith.constant 0 : index
    %246 = vector.load %arg22[%c0_102, %c0_103] : memref<1x32xf32, #tpu.memory_space<vmem>>, vector<1x32xf32>
    %cst_104 = arith.constant dense<0.000000e+00> : vector<8xf32>
    %247 = vector.multi_reduction <add>, %244, %cst_104 [1] : vector<8x32xf32> to vector<8xf32>
    %248 = vector.shape_cast %247 : vector<8xf32> to vector<8x1xf32>
    %cst_105 = arith.constant 3.200000e+01 : f32
    %249 = vector.broadcast %cst_105 : f32 to vector<8x1xf32>
    %250 = arith.divf %248, %249 : vector<8x1xf32>
    %251 = vector.broadcast %250 : vector<8x1xf32> to vector<8x32xf32>
    %252 = arith.subf %244, %251 : vector<8x32xf32>
    %253 = arith.mulf %252, %252 : vector<8x32xf32>
    %cst_106 = arith.constant dense<0.000000e+00> : vector<8xf32>
    %254 = vector.multi_reduction <add>, %253, %cst_106 [1] : vector<8x32xf32> to vector<8xf32>
    %255 = vector.shape_cast %254 : vector<8xf32> to vector<8x1xf32>
    %cst_107 = arith.constant 3.200000e+01 : f32
    %256 = vector.broadcast %cst_107 : f32 to vector<8x1xf32>
    %257 = arith.divf %255, %256 : vector<8x1xf32>
    %258 = vector.broadcast %250 : vector<8x1xf32> to vector<8x32xf32>
    %259 = arith.subf %244, %258 : vector<8x32xf32>
    %cst_108 = arith.constant 9.99999974E-6 : f32
    %260 = vector.broadcast %cst_108 : f32 to vector<8x1xf32>
    %261 = arith.addf %257, %260 : vector<8x1xf32>
    %262 = math.rsqrt %261 : vector<8x1xf32>
    %263 = vector.broadcast %262 : vector<8x1xf32> to vector<8x32xf32>
    %264 = arith.mulf %259, %263 : vector<8x32xf32>
    %265 = vector.broadcast %245 : vector<1x32xf32> to vector<8x32xf32>
    %266 = arith.mulf %264, %265 : vector<8x32xf32>
    %267 = vector.broadcast %246 : vector<1x32xf32> to vector<8x32xf32>
    %268 = arith.addf %266, %267 : vector<8x32xf32>
    %c0_109 = arith.constant 0 : index
    %c0_110 = arith.constant 0 : index
    %c0_111 = arith.constant 0 : index
    %269 = vector.load %arg23[%c0_109, %c0_110, %c0_111] : memref<1x8x32xf32, #tpu.memory_space<vmem>>, vector<1x8x32xf32>
    %270 = vector.shape_cast %269 : vector<1x8x32xf32> to vector<8x32xf32>
    %271 = vector.shape_cast %268 : vector<8x32xf32> to vector<1x8x32xf32>
    tpu.vector_store %arg23[%c0_109, %c0_110, %c0_111], %271 {strides = array<i32>} : memref<1x8x32xf32, #tpu.memory_space<vmem>>, vector<1x8x32xf32>,
    return
  }
  func.func @transform_0(%arg0: i32) -> (i32, i32, i32) {
    %c0_i32 = arith.constant 0 : i32
    %c0_i32_0 = arith.constant 0 : i32
    %c0_i32_1 = arith.constant 0 : i32
    return %arg0, %c0_i32, %c0_i32_0 : i32, i32, i32
  }
  func.func @transform_1(%arg0: i32) -> (i32, i32, i32) {
    %c0_i32 = arith.constant 0 : i32
    %c0_i32_0 = arith.constant 0 : i32
    %c0_i32_1 = arith.constant 0 : i32
    return %arg0, %c0_i32, %c0_i32_0 : i32, i32, i32
  }
  func.func @transform_2(%arg0: i32) -> (i32, i32) {
    %c0_i32 = arith.constant 0 : i32
    %c0_i32_0 = arith.constant 0 : i32
    %c0_i32_1 = arith.constant 0 : i32
    return %c0_i32, %c0_i32_0 : i32, i32
  }
  func.func @transform_3(%arg0: i32) -> (i32, i32) {
    %c0_i32 = arith.constant 0 : i32
    %c0_i32_0 = arith.constant 0 : i32
    %c0_i32_1 = arith.constant 0 : i32
    return %c0_i32, %c0_i32_0 : i32, i32
  }
  func.func @transform_4(%arg0: i32) -> (i32, i32) {
    %c0_i32 = arith.constant 0 : i32
    %c0_i32_0 = arith.constant 0 : i32
    %c0_i32_1 = arith.constant 0 : i32
    return %c0_i32, %c0_i32_0 : i32, i32
  }
  func.func @transform_5(%arg0: i32) -> (i32, i32) {
    %c0_i32 = arith.constant 0 : i32
    %c0_i32_0 = arith.constant 0 : i32
    %c0_i32_1 = arith.constant 0 : i32
    return %c0_i32, %c0_i32_0 : i32, i32
  }
  func.func @transform_6(%arg0: i32) -> (i32, i32) {
    %c0_i32 = arith.constant 0 : i32
    %c0_i32_0 = arith.constant 0 : i32
    %c0_i32_1 = arith.constant 0 : i32
    return %c0_i32, %c0_i32_0 : i32, i32
  }
  func.func @transform_7(%arg0: i32) -> (i32, i32) {
    %c0_i32 = arith.constant 0 : i32
    %c0_i32_0 = arith.constant 0 : i32
    %c0_i32_1 = arith.constant 0 : i32
    return %c0_i32, %c0_i32_0 : i32, i32
  }
  func.func @transform_8(%arg0: i32) -> (i32, i32) {
    %c0_i32 = arith.constant 0 : i32
    %c0_i32_0 = arith.constant 0 : i32
    %c0_i32_1 = arith.constant 0 : i32
    return %c0_i32, %c0_i32_0 : i32, i32
  }
  func.func @transform_9(%arg0: i32) -> (i32, i32) {
    %c0_i32 = arith.constant 0 : i32
    %c0_i32_0 = arith.constant 0 : i32
    %c0_i32_1 = arith.constant 0 : i32
    return %c0_i32, %c0_i32_0 : i32, i32
  }
  func.func @transform_10(%arg0: i32) -> (i32, i32) {
    %c0_i32 = arith.constant 0 : i32
    %c0_i32_0 = arith.constant 0 : i32
    %c0_i32_1 = arith.constant 0 : i32
    return %c0_i32, %c0_i32_0 : i32, i32
  }
  func.func @transform_11(%arg0: i32) -> (i32, i32) {
    %c0_i32 = arith.constant 0 : i32
    %c0_i32_0 = arith.constant 0 : i32
    %c0_i32_1 = arith.constant 0 : i32
    return %c0_i32, %c0_i32_0 : i32, i32
  }
  func.func @transform_12(%arg0: i32) -> (i32, i32) {
    %c0_i32 = arith.constant 0 : i32
    %c0_i32_0 = arith.constant 0 : i32
    %c0_i32_1 = arith.constant 0 : i32
    return %c0_i32, %c0_i32_0 : i32, i32
  }
  func.func @transform_13(%arg0: i32) -> (i32, i32) {
    %c0_i32 = arith.constant 0 : i32
    %c0_i32_0 = arith.constant 0 : i32
    %c0_i32_1 = arith.constant 0 : i32
    return %c0_i32, %c0_i32_0 : i32, i32
  }
  func.func @transform_14(%arg0: i32) -> (i32, i32) {
    %c0_i32 = arith.constant 0 : i32
    %c0_i32_0 = arith.constant 0 : i32
    %c0_i32_1 = arith.constant 0 : i32
    return %c0_i32, %c0_i32_0 : i32, i32
  }
  func.func @transform_15(%arg0: i32) -> (i32, i32) {
    %c0_i32 = arith.constant 0 : i32
    %c0_i32_0 = arith.constant 0 : i32
    %c0_i32_1 = arith.constant 0 : i32
    return %c0_i32, %c0_i32_0 : i32, i32
  }
  func.func @transform_16(%arg0: i32) -> (i32, i32) {
    %c0_i32 = arith.constant 0 : i32
    %c0_i32_0 = arith.constant 0 : i32
    %c0_i32_1 = arith.constant 0 : i32
    return %c0_i32, %c0_i32_0 : i32, i32
  }
  func.func @transform_17(%arg0: i32) -> (i32, i32) {
    %c0_i32 = arith.constant 0 : i32
    %c0_i32_0 = arith.constant 0 : i32
    %c0_i32_1 = arith.constant 0 : i32
    return %c0_i32, %c0_i32_0 : i32, i32
  }
  func.func @transform_18(%arg0: i32) -> (i32, i32) {
    %c0_i32 = arith.constant 0 : i32
    %c0_i32_0 = arith.constant 0 : i32
    %c0_i32_1 = arith.constant 0 : i32
    return %c0_i32, %c0_i32_0 : i32, i32
  }
  func.func @transform_19(%arg0: i32) -> (i32, i32) {
    %c0_i32 = arith.constant 0 : i32
    %c0_i32_0 = arith.constant 0 : i32
    %c0_i32_1 = arith.constant 0 : i32
    return %c0_i32, %c0_i32_0 : i32, i32
  }
  func.func @transform_20(%arg0: i32) -> (i32, i32) {
    %c0_i32 = arith.constant 0 : i32
    %c0_i32_0 = arith.constant 0 : i32
    %c0_i32_1 = arith.constant 0 : i32
    return %c0_i32, %c0_i32_0 : i32, i32
  }
  func.func @transform_21(%arg0: i32) -> (i32, i32) {
    %c0_i32 = arith.constant 0 : i32
    %c0_i32_0 = arith.constant 0 : i32
    %c0_i32_1 = arith.constant 0 : i32
    return %c0_i32, %c0_i32_0 : i32, i32
  }
  func.func @transform_22(%arg0: i32) -> (i32, i32, i32) {
    %c0_i32 = arith.constant 0 : i32
    %c0_i32_0 = arith.constant 0 : i32
    %c0_i32_1 = arith.constant 0 : i32
    return %arg0, %c0_i32, %c0_i32_0 : i32, i32, i32
  }
}

module attributes {stable_mosaic.version = 11 : i64} {
  func.func @_head_kernel(%arg0: i32, %arg1: memref<1x8x32xf32, #tpu.memory_space<vmem>>, %arg2: memref<1x32xf32, #tpu.memory_space<vmem>>, %arg3: memref<1x32xf32, #tpu.memory_space<vmem>>, %arg4: memref<32x512xf32, #tpu.memory_space<vmem>>, %arg5: memref<1x512xf32, #tpu.memory_space<vmem>>, %arg6: memref<1x512xf32, #tpu.memory_space<vmem>>, %arg7: memref<1x512xf32, #tpu.memory_space<vmem>>, %arg8: memref<512x1xf32, #tpu.memory_space<vmem>>, %arg9: memref<1x1xf32, #tpu.memory_space<vmem>>, %arg10: memref<1x8x1xf32, #tpu.memory_space<vmem>>) attributes {dimension_semantics = [#tpu.dimension_semantics<parallel>], iteration_bounds = array<i64: 2>, scalar_prefetch = 0 : i64, scratch_operands = 0 : i64, tpu.core_type = #tpu.core_type<tc>, window_params = [{transform_indices = @transform_0, window_bounds = array<i64: 1, 8, 32>}, {pipeline_mode = #tpu.pipeline_mode<synchronous>, transform_indices = @transform_1, window_bounds = array<i64: 1, 32>}, {pipeline_mode = #tpu.pipeline_mode<synchronous>, transform_indices = @transform_2, window_bounds = array<i64: 1, 32>}, {pipeline_mode = #tpu.pipeline_mode<synchronous>, transform_indices = @transform_3, window_bounds = array<i64: 32, 512>}, {pipeline_mode = #tpu.pipeline_mode<synchronous>, transform_indices = @transform_4, window_bounds = array<i64: 1, 512>}, {pipeline_mode = #tpu.pipeline_mode<synchronous>, transform_indices = @transform_5, window_bounds = array<i64: 1, 512>}, {pipeline_mode = #tpu.pipeline_mode<synchronous>, transform_indices = @transform_6, window_bounds = array<i64: 1, 512>}, {pipeline_mode = #tpu.pipeline_mode<synchronous>, transform_indices = @transform_7, window_bounds = array<i64: 512, 1>}, {pipeline_mode = #tpu.pipeline_mode<synchronous>, transform_indices = @transform_8, window_bounds = array<i64: 1, 1>}, {transform_indices = @transform_9, window_bounds = array<i64: 1, 8, 1>}]} {
    %c0 = arith.constant 0 : index
    %c0_0 = arith.constant 0 : index
    %c0_1 = arith.constant 0 : index
    %0 = vector.load %arg1[%c0, %c0_0, %c0_1] : memref<1x8x32xf32, #tpu.memory_space<vmem>>, vector<1x8x32xf32>
    %1 = vector.shape_cast %0 : vector<1x8x32xf32> to vector<8x32xf32>
    %c0_2 = arith.constant 0 : index
    %c0_3 = arith.constant 0 : index
    %2 = vector.load %arg2[%c0_2, %c0_3] : memref<1x32xf32, #tpu.memory_space<vmem>>, vector<1x32xf32>
    %c0_4 = arith.constant 0 : index
    %c0_5 = arith.constant 0 : index
    %3 = vector.load %arg3[%c0_4, %c0_5] : memref<1x32xf32, #tpu.memory_space<vmem>>, vector<1x32xf32>
    %cst = arith.constant dense<0.000000e+00> : vector<8xf32>
    %4 = vector.multi_reduction <add>, %1, %cst [1] : vector<8x32xf32> to vector<8xf32>
    %5 = vector.shape_cast %4 : vector<8xf32> to vector<8x1xf32>
    %cst_6 = arith.constant 3.200000e+01 : f32
    %6 = vector.broadcast %cst_6 : f32 to vector<8x1xf32>
    %7 = arith.divf %5, %6 : vector<8x1xf32>
    %8 = vector.broadcast %7 : vector<8x1xf32> to vector<8x32xf32>
    %9 = arith.subf %1, %8 : vector<8x32xf32>
    %10 = arith.mulf %9, %9 : vector<8x32xf32>
    %cst_7 = arith.constant dense<0.000000e+00> : vector<8xf32>
    %11 = vector.multi_reduction <add>, %10, %cst_7 [1] : vector<8x32xf32> to vector<8xf32>
    %12 = vector.shape_cast %11 : vector<8xf32> to vector<8x1xf32>
    %cst_8 = arith.constant 3.200000e+01 : f32
    %13 = vector.broadcast %cst_8 : f32 to vector<8x1xf32>
    %14 = arith.divf %12, %13 : vector<8x1xf32>
    %15 = vector.broadcast %7 : vector<8x1xf32> to vector<8x32xf32>
    %16 = arith.subf %1, %15 : vector<8x32xf32>
    %cst_9 = arith.constant 9.99999974E-6 : f32
    %17 = vector.broadcast %cst_9 : f32 to vector<8x1xf32>
    %18 = arith.addf %14, %17 : vector<8x1xf32>
    %19 = math.rsqrt %18 : vector<8x1xf32>
    %20 = vector.broadcast %19 : vector<8x1xf32> to vector<8x32xf32>
    %21 = arith.mulf %16, %20 : vector<8x32xf32>
    %22 = vector.broadcast %2 : vector<1x32xf32> to vector<8x32xf32>
    %23 = arith.mulf %21, %22 : vector<8x32xf32>
    %24 = vector.broadcast %3 : vector<1x32xf32> to vector<8x32xf32>
    %25 = arith.addf %23, %24 : vector<8x32xf32>
    %c0_10 = arith.constant 0 : index
    %c0_11 = arith.constant 0 : index
    %26 = vector.load %arg4[%c0_10, %c0_11] : memref<32x512xf32, #tpu.memory_space<vmem>>, vector<32x512xf32>
    %cst_12 = arith.constant dense<0.000000e+00> : vector<8x512xf32>
    %27 = tpu.matmul %25, %26, %cst_12 {dimension_numbers = #tpu.dot_dimension_numbers<[1], [0], [0], [1], [0, 0, 1, 1], [], []>} : vector<8x32xf32>, vector<32x512xf32>, vector<8x512xf32> -> vector<8x512xf32>
    %c0_13 = arith.constant 0 : index
    %c0_14 = arith.constant 0 : index
    %28 = vector.load %arg5[%c0_13, %c0_14] : memref<1x512xf32, #tpu.memory_space<vmem>>, vector<1x512xf32>
    %29 = vector.broadcast %28 : vector<1x512xf32> to vector<8x512xf32>
    %30 = arith.addf %27, %29 : vector<8x512xf32>
    %c0_15 = arith.constant 0 : index
    %c0_16 = arith.constant 0 : index
    %31 = vector.load %arg6[%c0_15, %c0_16] : memref<1x512xf32, #tpu.memory_space<vmem>>, vector<1x512xf32>
    %c0_17 = arith.constant 0 : index
    %c0_18 = arith.constant 0 : index
    %32 = vector.load %arg7[%c0_17, %c0_18] : memref<1x512xf32, #tpu.memory_space<vmem>>, vector<1x512xf32>
    %cst_19 = arith.constant dense<0.000000e+00> : vector<8xf32>
    %33 = vector.multi_reduction <add>, %30, %cst_19 [1] : vector<8x512xf32> to vector<8xf32>
    %34 = vector.shape_cast %33 : vector<8xf32> to vector<8x1xf32>
    %cst_20 = arith.constant 5.120000e+02 : f32
    %35 = vector.broadcast %cst_20 : f32 to vector<8x1xf32>
    %36 = arith.divf %34, %35 : vector<8x1xf32>
    %37 = vector.broadcast %36 : vector<8x1xf32> to vector<8x512xf32>
    %38 = arith.subf %30, %37 : vector<8x512xf32>
    %39 = arith.mulf %38, %38 : vector<8x512xf32>
    %cst_21 = arith.constant dense<0.000000e+00> : vector<8xf32>
    %40 = vector.multi_reduction <add>, %39, %cst_21 [1] : vector<8x512xf32> to vector<8xf32>
    %41 = vector.shape_cast %40 : vector<8xf32> to vector<8x1xf32>
    %cst_22 = arith.constant 5.120000e+02 : f32
    %42 = vector.broadcast %cst_22 : f32 to vector<8x1xf32>
    %43 = arith.divf %41, %42 : vector<8x1xf32>
    %44 = vector.broadcast %36 : vector<8x1xf32> to vector<8x512xf32>
    %45 = arith.subf %30, %44 : vector<8x512xf32>
    %cst_23 = arith.constant 9.99999974E-6 : f32
    %46 = vector.broadcast %cst_23 : f32 to vector<8x1xf32>
    %47 = arith.addf %43, %46 : vector<8x1xf32>
    %48 = math.rsqrt %47 : vector<8x1xf32>
    %49 = vector.broadcast %48 : vector<8x1xf32> to vector<8x512xf32>
    %50 = arith.mulf %45, %49 : vector<8x512xf32>
    %51 = vector.broadcast %31 : vector<1x512xf32> to vector<8x512xf32>
    %52 = arith.mulf %50, %51 : vector<8x512xf32>
    %53 = vector.broadcast %32 : vector<1x512xf32> to vector<8x512xf32>
    %54 = arith.addf %52, %53 : vector<8x512xf32>
    %cst_24 = arith.constant 0.000000e+00 : f32
    %55 = vector.broadcast %cst_24 : f32 to vector<8x512xf32>
    %56 = arith.maximumf %54, %55 : vector<8x512xf32>
    %c0_25 = arith.constant 0 : index
    %c0_26 = arith.constant 0 : index
    %57 = vector.load %arg8[%c0_25, %c0_26] : memref<512x1xf32, #tpu.memory_space<vmem>>, vector<512x1xf32>
    %cst_27 = arith.constant dense<0.000000e+00> : vector<8x1xf32>
    %58 = tpu.matmul %56, %57, %cst_27 {dimension_numbers = #tpu.dot_dimension_numbers<[1], [0], [0], [1], [0, 0, 1, 1], [], []>} : vector<8x512xf32>, vector<512x1xf32>, vector<8x1xf32> -> vector<8x1xf32>
    %c0_28 = arith.constant 0 : index
    %c0_29 = arith.constant 0 : index
    %59 = vector.load %arg9[%c0_28, %c0_29] : memref<1x1xf32, #tpu.memory_space<vmem>>, vector<1x1xf32>
    %60 = vector.broadcast %59 : vector<1x1xf32> to vector<8x1xf32>
    %61 = arith.addf %58, %60 : vector<8x1xf32>
    %c0_30 = arith.constant 0 : index
    %c0_31 = arith.constant 0 : index
    %c0_32 = arith.constant 0 : index
    %62 = vector.load %arg10[%c0_30, %c0_31, %c0_32] : memref<1x8x1xf32, #tpu.memory_space<vmem>>, vector<1x8x1xf32>
    %63 = vector.shape_cast %62 : vector<1x8x1xf32> to vector<8x1xf32>
    %64 = vector.shape_cast %61 : vector<8x1xf32> to vector<1x8x1xf32>
    tpu.vector_store %arg10[%c0_30, %c0_31, %c0_32], %64 {strides = array<i32>} : memref<1x8x1xf32, #tpu.memory_space<vmem>>, vector<1x8x1xf32>,
    return
  }
  func.func @transform_0(%arg0: i32) -> (i32, i32, i32) {
    %c0_i32 = arith.constant 0 : i32
    %c0_i32_0 = arith.constant 0 : i32
    %c0_i32_1 = arith.constant 0 : i32
    return %arg0, %c0_i32, %c0_i32_0 : i32, i32, i32
  }
  func.func @transform_1(%arg0: i32) -> (i32, i32) {
    %c0_i32 = arith.constant 0 : i32
    %c0_i32_0 = arith.constant 0 : i32
    %c0_i32_1 = arith.constant 0 : i32
    return %c0_i32, %c0_i32_0 : i32, i32
  }
  func.func @transform_2(%arg0: i32) -> (i32, i32) {
    %c0_i32 = arith.constant 0 : i32
    %c0_i32_0 = arith.constant 0 : i32
    %c0_i32_1 = arith.constant 0 : i32
    return %c0_i32, %c0_i32_0 : i32, i32
  }
  func.func @transform_3(%arg0: i32) -> (i32, i32) {
    %c0_i32 = arith.constant 0 : i32
    %c0_i32_0 = arith.constant 0 : i32
    %c0_i32_1 = arith.constant 0 : i32
    return %c0_i32, %c0_i32_0 : i32, i32
  }
  func.func @transform_4(%arg0: i32) -> (i32, i32) {
    %c0_i32 = arith.constant 0 : i32
    %c0_i32_0 = arith.constant 0 : i32
    %c0_i32_1 = arith.constant 0 : i32
    return %c0_i32, %c0_i32_0 : i32, i32
  }
  func.func @transform_5(%arg0: i32) -> (i32, i32) {
    %c0_i32 = arith.constant 0 : i32
    %c0_i32_0 = arith.constant 0 : i32
    %c0_i32_1 = arith.constant 0 : i32
    return %c0_i32, %c0_i32_0 : i32, i32
  }
  func.func @transform_6(%arg0: i32) -> (i32, i32) {
    %c0_i32 = arith.constant 0 : i32
    %c0_i32_0 = arith.constant 0 : i32
    %c0_i32_1 = arith.constant 0 : i32
    return %c0_i32, %c0_i32_0 : i32, i32
  }
  func.func @transform_7(%arg0: i32) -> (i32, i32) {
    %c0_i32 = arith.constant 0 : i32
    %c0_i32_0 = arith.constant 0 : i32
    %c0_i32_1 = arith.constant 0 : i32
    return %c0_i32, %c0_i32_0 : i32, i32
  }
  func.func @transform_8(%arg0: i32) -> (i32, i32) {
    %c0_i32 = arith.constant 0 : i32
    %c0_i32_0 = arith.constant 0 : i32
    %c0_i32_1 = arith.constant 0 : i32
    return %c0_i32, %c0_i32_0 : i32, i32
  }
  func.func @transform_9(%arg0: i32) -> (i32, i32, i32) {
    %c0_i32 = arith.constant 0 : i32
    %c0_i32_0 = arith.constant 0 : i32
    %c0_i32_1 = arith.constant 0 : i32
    return %arg0, %c0_i32, %c0_i32_0 : i32, i32, i32
  }
}

</mosaic_0001>

<bundles_post_ra>
// kernel: transformer_fcst_forward.5
= control target key start
LH: loop header
LB: loop body
LE: loop exit
PB: predicated region body
PF: predicated region fallthrough
CT: control target
= control target key end

     0   :  { %s396_s15 = smov 0   ;;  %s422_s0 = inlined_call_operand.vmem [shape: f32[2,8,8], index: 0, kind: input, shape index: {}]   ;;  %s423_s1 = inlined_call_operand.vmem [shape: f32[8,32], index: 1, kind: input, shape index: {}]   ;;  %s424_s2 = inlined_call_operand.vmem [shape: f32[1,32], index: 2, kind: input, shape index: {}]   ;;  %s425_s3 = inlined_call_operand.vmem [shape: f32[8,32], index: 3, kind: input, shape index: {}]   ;;  %s426_s4 = inlined_call_operand.vmem [shape: f32[2,8,32], index: 4, kind: output, shape index: {}]  }
   0x1 LB: > { %s333_s16 = sadd.s32 4294967295, %s367_s15   ;;  %p337_p0 = scmp.ge.s32.totalorder %s367_s15, 1  ;;  %s367_s15 = sphi %s396_s15, %s14_s15  }
   0x2   : > { %p161_p1 = scmp.lt.s32.totalorder %s367_s15, 3 }
   0x4   : > { %p162_p2 = pnand %p337_p0, %p161_p1 }
   0x5   : > { %p185_p3 = scmp.lt.s32.totalorder (!%p162_p2), %s333_s16, 1 }
   0x6   : > { %165 = sbr.rel (%p162_p2) target bundleno = 213 (0xd5), region = 36 }
   0xb   : > { %v194_v0 = vld [vmem:[%s423_s1] sm:$0xff]  ;;  %v369_v1 = vmov 0.0   ;;  %vm370_vm0 = vmmov 0   ;;  %s428_s16 = smov (!%p185_p3, %s333_s16), 1  ;;  %vm202_vm1 = vcmask 64512   ;;  %vm278_vm2 = vcmask 261120  }
   0xc   : > { %346 = vmatprep.subr.mxu0 %v369_v1  ;;  %348 = vmatprep.mubr.msk.f32.mxu0 %vm370_vm0, %v369_v1  ;;  %s338_s19 = sshll.u32 %s428_s16, 3  ;;  %v340_v3 = vld [vmem:[%s424_s2] ss:$0 sm:$0xff] }
   0xd   : > { %347 = vmatpush3.msra.mxu0 %v194_v0  ;;  %s188_s22 = scalar_lea.vmem %s422_s0, %s338_s19  ;;  %v276_v5 = vld [vmem:[%s425_s3] sm:$0xff]  ;;  %s192_s29 = scalar_lea.vmem %s426_s4, %s338_s19 }
   0xe   : > { %v193_v2 = vld [vmem:[%s188_s22] sm:$0xff] }
   0xf   : > { %349 = vmatmul.mubr.msk.f32.vlgmr.msra.gmra.mxu0 %vm202_vm1, %v193_v2 }
  0xcf   : > { %v272_v4 = vpop.f32.mrf.mxu0 }
  0xd0   : > { %v273_v6 = vadd.f32 %v340_v3, %v272_v4 }
  0xd1   : > { %v350_v7 = vpop.f32.mrf.mxu0 }
  0xd2   : > { %v277_v8 = vadd.f32 %v276_v5, %v273_v6 }
  0xd4   : > { %279 = vst.msk [vmem:[%s192_s29] sm:$0xff] %vm278_vm2, %v277_v8 }
  0xd5 PF: > { %s14_s15 = sadd.s32 1, %s367_s15  }
  0xd6   : > { %p11_p4 = scmp.ge.s32.totalorder %s14_s15, 4  }
  0xd8   :  { %13 = sbr.rel (!%p11_p4) target bundleno = 1 (0x1), region = 66 }

// kernel: transformer_fcst_forward.9
= control target key start
LH: loop header
LB: loop body
LE: loop exit
PB: predicated region body
PF: predicated region fallthrough
CT: control target
= control target key end

     0   :  { %s1053_s11 = smov 0   ;;  %s1376_s0 = inlined_call_operand.vmem [shape: f32[2,8,32], index: 0, kind: input, shape index: {}]   ;;  %s1377_s1 = inlined_call_operand.vmem [shape: f32[1,32], index: 1, kind: input, shape index: {}]   ;;  %s1378_s2 = inlined_call_operand.vmem [shape: f32[1,32], index: 2, kind: input, shape index: {}]   ;;  %s1379_s3 = inlined_call_operand.vmem [shape: f32[32,512], index: 3, kind: input, shape index: {}]   ;;  %s1380_s4 = inlined_call_operand.vmem [shape: f32[1,512], index: 4, kind: input, shape index: {}]   ;;  %s1381_s5 = inlined_call_operand.vmem [shape: f32[1,512], index: 5, kind: input, shape index: {}]   ;;  %s1382_s6 = inlined_call_operand.vmem [shape: f32[1,512], index: 6, kind: input, shape index: {}]   ;;  %s1383_s7 = inlined_call_operand.vmem [shape: f32[512,1], index: 7, kind: input, shape index: {}]   ;;  %s1384_s8 = inlined_call_operand.<no memory space> [shape: f32[1,1], index: 8, kind: input, shape index: {}]   ;;  %s1385_s9 = inlined_call_operand.vmem [shape: f32[2,8,1], index: 9, kind: output, shape index: {}]  }
   0x1   :  { %v14_v0 = vstv %s1384_s8 }
   0x2   :  { %15 = vst [vmem:[#allocation2] sm:$0x1] %v14_v0 }
   0x3 LB: > { %s894_s12 = sadd.s32 4294967295, %s997_s11   ;;  %p898_p0 = scmp.ge.s32.totalorder %s997_s11, 1  ;;  %s997_s11 = sphi %s1053_s11, %s21_s11  }
   0x4   : > { %p288_p1 = scmp.lt.s32.totalorder %s997_s11, 3 }
   0x6   : > { %p289_p2 = pnand %p898_p0, %p288_p1 }
   0x7   : > { %p322_p3 = scmp.lt.s32.totalorder (!%p289_p2), %s894_s12, 1 }
   0x8   : > { %292 = sbr.rel (%p289_p2) target bundleno = 1045 (0x415), region = 56 }
   0xd   : > { %s1387_s12 = smov (!%p322_p3, %s894_s12), 1  ;;  %vm333_vm0 = vcmask 261120   ;;  %v375_v8 = vld [vmem:[%s1379_s3 + $0x68] sm:$0xff]  ;;  %v377_v9 = vld [vmem:[%s1379_s3 + $0x78] sm:$0xff]  ;;  %v374_v10 = vld [vmem:[%s1379_s3 + $0x60] sm:$0xff]  ;;  %v999_v24 = vmov 0.0   ;;  %v380_v34 = vlaneseq }
   0xe   : > { %s899_s8 = sshll.u32 %s1387_s12, 3  ;;  %427 = vmatprep.subr.mxu0 %v375_v8  ;;  %498 = vmatprep.subr.mxu1 %v377_v9  ;;  %v376_v11 = vld [vmem:[%s1379_s3 + $0x70] sm:$0xff]  ;;  %v371_v12 = vld [vmem:[%s1379_s3 + $0x48] sm:$0xff]  ;;  %v373_v13 = vld [vmem:[%s1379_s3 + $0x58] sm:$0xff]  ;;  %vm839_vm1 = vcmask 7168  }
   0xf   : > { %s325_s15 = scalar_lea.vmem %s1376_s0, %s899_s8  ;;  %428 = vmatpush1.msra.mxu0 %v374_v10  ;;  %499 = vmatpush1.msra.mxu1 %v376_v11  ;;  %v370_v14 = vld [vmem:[%s1379_s3 + $0x40] sm:$0xff]  ;;  %v372_v15 = vld [vmem:[%s1379_s3 + $0x50] sm:$0xff]  ;;  %v367_v16 = vld [vmem:[%s1379_s3 + $0x28] sm:$0xff]  ;;  %v381_v35 = vshrl.u32 %v380_v34, 7  ;;  %s329_s17 = scalar_lea.vmem %s1385_s9, %s899_s8 }
  0x10   : > { %v330_v1 = vld [vmem:[%s325_s15] sm:$0xff]  ;;  %429 = vmatprep.subr.mxu0 %v371_v12  ;;  %500 = vmatprep.subr.mxu1 %v373_v13  ;;  %v369_v17 = vld [vmem:[%s1379_s3 + $0x38] sm:$0xff]  ;;  %v368_v19 = vld [vmem:[%s1379_s3 + $0x30] sm:$0xff] }
  0x11   : > { %v334_v2 = vsel %vm333_vm0, %v330_v1, 0.0  ;;  %v366_v18 = vld [vmem:[%s1379_s3 + $0x20] sm:$0xff]  ;;  %430 = vmatpush1.msra.mxu0 %v370_v14  ;;  %501 = vmatpush1.msra.mxu1 %v372_v15  ;;  %v363_v20 = vld [vmem:[%s1379_s3 + $0x8] sm:$0xff]  ;;  %v365_v21 = vld [vmem:[%s1379_s3 + $0x18] sm:$0xff]  ;;  %v1127_v36 = vsub.s32 0, %v381_v35  ;;  %v1129_v37 = vsub.s32 1, %v381_v35 }
  0x12   : > { %335 = vadd.xlane.f32.xlu0 %v334_v2  ;;  %431 = vmatprep.subr.mxu0 %v367_v16  ;;  %v362_v22 = vld [vmem:[%s1379_s3] sm:$0xff]  ;;  %v364_v23 = vld [vmem:[%s1379_s3 + $0x10] sm:$0xff]  ;;  %v1134_v39 = vsub.s32 2, %v381_v35  ;;  %v1138_v42 = vsub.s32 3, %v381_v35  ;;  %v659_v56 = vld [vmem:[%s1383_s7 + $0xf8] sm:$0xff] }
  0x13   : > { %502 = vmatprep.subr.mxu1 %v369_v17  ;;  %432 = vmatpush1.msra.mxu0 %v366_v18  ;;  %v901_v29 = vld [vmem:[%s1377_s1] ss:$0 sm:$0xff]  ;;  %v691_v57 = vld [vmem:[%s1383_s7 + $0x1f8] sm:$0xff]  ;;  %v658_v60 = vld [vmem:[%s1383_s7 + $0xf0] sm:$0xff] }
  0x14   : > { %503 = vmatpush1.msra.mxu1 %v368_v19  ;;  %433 = vmatprep.subr.mxu0 %v363_v20  ;;  %v902_v31 = vld [vmem:[%s1378_s2] ss:$0 sm:$0xff]  ;;  %v643_v58 = vld [vmem:[%s1383_s7 + $0x78] sm:$0xff]  ;;  %v690_v61 = vld [vmem:[%s1383_s7 + $0x1f0] sm:$0xff] }
  0x15   : > { %504 = vmatprep.subr.mxu1 %v365_v21  ;;  %434 = vmatpush1.msra.mxu0 %v362_v22  ;;  %v378_v38 = vld [vmem:[%s1380_s4] sm:$0xf]  ;;  %v675_v59 = vld [vmem:[%s1383_s7 + $0x178] sm:$0xff]  ;;  %v642_v62 = vld [vmem:[%s1383_s7 + $0x70] sm:$0xff] }
  0x16   : > { %467 = vmatprep.mubr.f32.mxu0 %v999_v24  ;;  %505 = vmatpush1.msra.mxu1 %v364_v23  ;;  %v383_v40 = vrot.slane %v378_v38, %v1127_v36  ;;  %v387_v41 = vrot.slane %v378_v38, %v1129_v37  ;;  %v391_v45 = vrot.slane %v378_v38, %v1134_v39  ;;  %v674_v63 = vld [vmem:[%s1383_s7 + $0x170] sm:$0xff]  ;;  %v657_v0 = vld [vmem:[%s1383_s7 + $0xe8] sm:$0xff]  ;;  %v656_v17 = vld [vmem:[%s1383_s7 + $0xe0] sm:$0xff] }
  0x17   : > { %538 = vmatprep.mubr.f32.mxu1 %v999_v24  ;;  %v395_v49 = vrot.slane %v378_v38, %v1138_v42  ;;  %908 = vmatprep.subr.mxu0 %v659_v56  ;;  %v641_v15 = vld [vmem:[%s1383_s7 + $0x68] sm:$0xff]  ;;  %v688_v18 = vld [vmem:[%s1383_s7 + $0x1e0] sm:$0xff]  ;;  %v655_v21 = vld [vmem:[%s1383_s7 + $0xd8] sm:$0xff] }
  0x18   : > { %943 = vmatprep.subr.mxu1 %v691_v57  ;;  %v673_v16 = vld [vmem:[%s1383_s7 + $0x168] sm:$0xff]  ;;  %v640_v19 = vld [vmem:[%s1383_s7 + $0x60] sm:$0xff]  ;;  %v687_v22 = vld [vmem:[%s1383_s7 + $0x1d8] sm:$0xff] }
  0x19   : > { %v672_v20 = vld [vmem:[%s1383_s7 + $0x160] sm:$0xff]  ;;  %v639_v23 = vld [vmem:[%s1383_s7 + $0x58] sm:$0xff] }
  0x1a   : > { %v671_v24 = vld [vmem:[%s1383_s7 + $0x158] sm:$0xff]  ;;  %v684_v34 = vld [vmem:[%s1383_s7 + $0x1c0] sm:$0xff] }
  0x1b   : > { %v636_v35 = vld [vmem:[%s1383_s7 + $0x40] sm:$0xff]  ;;  %v647_v57 = vld [vmem:[%s1383_s7 + $0x98] sm:$0xff] }
  0x1c   : > { %v668_v38 = vld [vmem:[%s1383_s7 + $0x140] sm:$0xff] }
  0x1d   : > { %v664_v56 = vld [vmem:[%s1383_s7 + $0x120] sm:$0xff] }
  0x9b   : > { %v336_v3 = vpop.xlane.xlu0 %335 }
  0x9c   : > { %v338_v4 = vmul.f32 0.03125, %v336_v3 }
  0x9e   : > { %v339_v5 = vsub.f32 %v330_v1, %v338_v4  ;;  %v689_v1 = vld [vmem:[%s1383_s7 + $0x1e8] sm:$0xff] }
  0xa0   : > { %v340_v6 = vmul.f32 %v339_v5, %v339_v5 }
  0xa2   : > { %v341_v7 = vsel %vm333_vm0, %v340_v6, 0.0 }
  0xa3   : > { %342 = vadd.xlane.f32.xlu0 %v341_v7 }
 0x12c   : > { %v343_v25 = vpop.xlane.xlu0 %342 }
 0x12d   : > { %v344_v26 = vmul.f32 0.03125, %v343_v25  ;;  %v654_v25 = vld [vmem:[%s1383_s7 + $0xd0] sm:$0xff] }
 0x12f   : > { %v345_v27 = vadd.f32 1e-05, %v344_v26  ;;  %v686_v26 = vld [vmem:[%s1383_s7 + $0x1d0] sm:$0xff] }
 0x131   : > { %987 = vrsqrt.f32 %v345_v27  ;;  %v638_v27 = vld [vmem:[%s1383_s7 + $0x50] sm:$0xff] }
 0x13e   : > { %v988_v28 = vpop.eup %987 }
 0x13f   : > { %v347_v30 = vmul.f32 %v988_v28, %v339_v5  ;;  %v670_v28 = vld [vmem:[%s1383_s7 + $0x150] sm:$0xff] }
 0x141   : > { %v354_v32 = vmul.f32 %v901_v29, %v347_v30  ;;  %v653_v29 = vld [vmem:[%s1383_s7 + $0xc8] sm:$0xff] }
 0x142   : > { %v685_v30 = vld [vmem:[%s1383_s7 + $0x1c8] sm:$0xff] }
 0x143   : > { %v361_v33 = vadd.f32 %v902_v31, %v354_v32  ;;  %v637_v31 = vld [vmem:[%s1383_s7 + $0x48] sm:$0xff] }
 0x144   : > { %v669_v32 = vld [vmem:[%s1383_s7 + $0x148] sm:$0xff] }
 0x145   : > { %903 = vmatmul.mubr.msk.f32.vlgmr.msra.gmra.mxu0 %vm333_vm0, %v361_v33  ;;  %904 = vmatmul.mubr.msk.f32.vlgmr.msra.gmra.mxu1 %vm333_vm0, %v361_v33  ;;  %v652_v33 = vld [vmem:[%s1383_s7 + $0xc0] sm:$0xff] }
 0x146   : > { %909 = vmatpush3.msra.mxu0 %v643_v58  ;;  %944 = vmatpush3.msra.mxu1 %v675_v59  ;;  %v679_v58 = vld [vmem:[%s1383_s7 + $0x198] sm:$0xff] }
 0x147   : > { %910 = vmatprep.subr.mxu0 %v658_v60  ;;  %945 = vmatprep.subr.mxu1 %v690_v61  ;;  %v631_v59 = vld [vmem:[%s1383_s7 + $0x18] sm:$0xff]  ;;  %v646_v61 = vld [vmem:[%s1383_s7 + $0x90] sm:$0xff] }
 0x148   : > { %911 = vmatpush3.msra.mxu0 %v642_v62  ;;  %946 = vmatpush3.msra.mxu1 %v674_v63  ;;  %v663_v60 = vld [vmem:[%s1383_s7 + $0x118] sm:$0xff]  ;;  %v678_v62 = vld [vmem:[%s1383_s7 + $0x190] sm:$0xff] }
 0x149   : > { %912 = vmatprep.subr.mxu0 %v657_v0  ;;  %947 = vmatprep.subr.mxu1 %v689_v1  ;;  %v630_v63 = vld [vmem:[%s1383_s7 + $0x10] sm:$0xff]  ;;  %v645_v1 = vld [vmem:[%s1383_s7 + $0x88] sm:$0xff] }
 0x14a   : > { %913 = vmatpush3.msra.mxu0 %v641_v15  ;;  %948 = vmatpush3.msra.mxu1 %v673_v16  ;;  %v662_v0 = vld [vmem:[%s1383_s7 + $0x110] sm:$0xff]  ;;  %v545_v16 = vld [vmem:[%s1381_s5] sm:$0xf] }
 0x14b   : > { %914 = vmatprep.subr.mxu0 %v656_v17  ;;  %949 = vmatprep.subr.mxu1 %v688_v18  ;;  %v546_v17 = vld [vmem:[%s1382_s6] sm:$0xf]  ;;  %v578_v18 = vrot.slane %v545_v16, %v1127_v36 }
 0x14c   : > { %915 = vmatpush3.msra.mxu0 %v640_v19  ;;  %950 = vmatpush3.msra.mxu1 %v672_v20  ;;  %v586_v19 = vrot.slane %v545_v16, %v1134_v39  ;;  %v582_v20 = vrot.slane %v545_v16, %v1129_v37 }
 0x14d   : > { %916 = vmatprep.subr.mxu0 %v655_v21  ;;  %951 = vmatprep.subr.mxu1 %v687_v22  ;;  %v590_v21 = vrot.slane %v545_v16, %v1138_v42 }
 0x14e   : > { %917 = vmatpush3.msra.mxu0 %v639_v23  ;;  %952 = vmatpush3.msra.mxu1 %v671_v24  ;;  %v607_v23 = vrot.slane %v546_v17, %v1129_v37  ;;  %v615_v24 = vrot.slane %v546_v17, %v1138_v42 }
 0x14f   : > { %918 = vmatprep.subr.mxu0 %v654_v25  ;;  %953 = vmatprep.subr.mxu1 %v686_v26  ;;  %v603_v25 = vrot.slane %v546_v17, %v1127_v36  ;;  %v611_v26 = vrot.slane %v546_v17, %v1134_v39 }
 0x150   : > { %919 = vmatpush3.msra.mxu0 %v638_v27  ;;  %954 = vmatpush3.msra.mxu1 %v670_v28 }
 0x151   : > { %920 = vmatprep.subr.mxu0 %v653_v29  ;;  %955 = vmatprep.subr.mxu1 %v685_v30 }
 0x152   : > { %921 = vmatpush3.msra.mxu0 %v637_v31  ;;  %956 = vmatpush3.msra.mxu1 %v669_v32 }
 0x153   : > { %922 = vmatprep.subr.mxu0 %v652_v33  ;;  %957 = vmatprep.subr.mxu1 %v684_v34 }
 0x154   : > { %923 = vmatpush3.msra.mxu0 %v636_v35  ;;  %958 = vmatpush3.msra.mxu1 %v668_v38 }
 0x205   : > { %v469_v43 = vpop.f32.mrf.mxu0  ;;  %v540_v44 = vpop.f32.mrf.mxu1 }
 0x206   : > { %v470_v47 = vadd.f32 %v469_v43, %v383_v40  ;;  %v541_v51 = vadd.f32 %v540_v44, %v391_v45  ;;  %v651_v40 = vld [vmem:[%s1383_s7 + $0xb8] sm:$0xff]  ;;  %v650_v45 = vld [vmem:[%s1383_s7 + $0xb0] sm:$0xff] }
 0x207   : > { %v471_v46 = vpop.f32.mrf.mxu0  ;;  %v542_v50 = vpop.f32.mrf.mxu1  ;;  %v635_v43 = vld [vmem:[%s1383_s7 + $0x38] sm:$0xff]  ;;  %924 = vmatprep.subr.mxu0 %v651_v40 }
 0x208   : > { %v472_v48 = vadd.f32 %v471_v46, %v387_v41  ;;  %v543_v53 = vadd.f32 %v542_v50, %v395_v49  ;;  %v683_v41 = vld [vmem:[%s1383_s7 + $0x1b8] sm:$0xff]  ;;  %v682_v46 = vld [vmem:[%s1383_s7 + $0x1b0] sm:$0xff]  ;;  %925 = vmatpush3.msra.mxu0 %v635_v43  ;;  %v649_v49 = vld [vmem:[%s1383_s7 + $0xa8] sm:$0xff] }
 0x209   : > { %v667_v44 = vld [vmem:[%s1383_s7 + $0x138] sm:$0xff]  ;;  %959 = vmatprep.subr.mxu1 %v683_v41  ;;  %v681_v50 = vld [vmem:[%s1383_s7 + $0x1a8] sm:$0xff]  ;;  %926 = vmatprep.subr.mxu0 %v650_v45 }
 0x20a   : > { %v547_v52 = vadd.f32 %v472_v48, %v470_v47  ;;  %960 = vmatpush3.msra.mxu1 %v667_v44 }
 0x20b   : > { %961 = vmatprep.subr.mxu1 %v682_v46 }
 0x20c   : > { %v548_v54 = vadd.f32 %v547_v52, %v541_v51  ;;  %v665_v52 = vld [vmem:[%s1383_s7 + $0x128] sm:$0xff] }
 0x20e   : > { %v549_v55 = vadd.f32 %v548_v54, %v543_v53  ;;  %v680_v54 = vld [vmem:[%s1383_s7 + $0x1a0] sm:$0xff] }
 0x210   : > { %550 = vadd.xlane.f32.xlu1 %v549_v55  ;;  %v632_v55 = vld [vmem:[%s1383_s7 + $0x20] sm:$0xff] }
 0x299   : > { %v551_v2 = vpop.xlane.xlu1 %550 }
 0x29a   : > { %v553_v3 = vmul.f32 0.001953125, %v551_v2  ;;  %v677_v2 = vld [vmem:[%s1383_s7 + $0x188] sm:$0xff] }
 0x29c   : > { %v1172_v4 = vsub.f32 %v470_v47, %v553_v3  ;;  %v1174_v5 = vsub.f32 %v472_v48, %v553_v3  ;;  %v1176_v6 = vsub.f32 %v541_v51, %v553_v3  ;;  %v1178_v7 = vsub.f32 %v543_v53, %v553_v3  ;;  %v634_v47 = vld [vmem:[%s1383_s7 + $0x30] sm:$0xff]  ;;  %v633_v51 = vld [vmem:[%s1383_s7 + $0x28] sm:$0xff]  ;;  %v648_v53 = vld [vmem:[%s1383_s7 + $0xa0] sm:$0xff] }
 0x29d   : > { %v666_v48 = vld [vmem:[%s1383_s7 + $0x130] sm:$0xff]  ;;  %927 = vmatpush3.msra.mxu0 %v634_v47  ;;  %v629_v3 = vld [vmem:[%s1383_s7 + $0x8] sm:$0xff] }
 0x29e   : > { %v558_v8 = vmul.f32 %v1172_v4, %v1172_v4  ;;  %v559_v9 = vmul.f32 %v1174_v5, %v1174_v5  ;;  %v560_v10 = vmul.f32 %v1176_v6, %v1176_v6  ;;  %v561_v12 = vmul.f32 %v1178_v7, %v1178_v7  ;;  %962 = vmatpush3.msra.mxu1 %v666_v48 }
 0x29f   : > { %928 = vmatprep.subr.mxu0 %v649_v49  ;;  %963 = vmatprep.subr.mxu1 %v681_v50 }
 0x2a0   : > { %v562_v11 = vadd.f32 %v559_v9, %v558_v8  ;;  %929 = vmatpush3.msra.mxu0 %v633_v51  ;;  %964 = vmatpush3.msra.mxu1 %v665_v52  ;;  %v661_v8 = vld [vmem:[%s1383_s7 + $0x108] sm:$0xff]  ;;  %v644_v9 = vld [vmem:[%s1383_s7 + $0x80] sm:$0xff] }
 0x2a1   : > { %930 = vmatprep.subr.mxu0 %v648_v53  ;;  %965 = vmatprep.subr.mxu1 %v680_v54 }
 0x2a2   : > { %v563_v13 = vadd.f32 %v562_v11, %v560_v10  ;;  %931 = vmatpush3.msra.mxu0 %v632_v55  ;;  %966 = vmatpush3.msra.mxu1 %v664_v56  ;;  %v676_v10 = vld [vmem:[%s1383_s7 + $0x180] sm:$0xff] }
 0x2a3   : > { %932 = vmatprep.subr.mxu0 %v647_v57  ;;  %967 = vmatprep.subr.mxu1 %v679_v58  ;;  %v628_v11 = vld [vmem:[%s1383_s7] sm:$0xff] }
 0x2a4   : > { %v564_v14 = vadd.f32 %v563_v13, %v561_v12  ;;  %933 = vmatpush3.msra.mxu0 %v631_v59  ;;  %968 = vmatpush3.msra.mxu1 %v663_v60  ;;  %v660_v12 = vld [vmem:[%s1383_s7 + $0x100] sm:$0xff] }
 0x2a5   : > { %934 = vmatprep.subr.mxu0 %v646_v61  ;;  %969 = vmatprep.subr.mxu1 %v678_v62 }
 0x2a6   : > { %565 = vadd.xlane.f32.xlu1 %v564_v14  ;;  %935 = vmatpush3.msra.mxu0 %v630_v63 }
 0x2a7   : > { %970 = vmatpush3.msra.mxu1 %v662_v0  ;;  %936 = vmatprep.subr.mxu0 %v645_v1 }
 0x2a8   : > { %971 = vmatprep.subr.mxu1 %v677_v2  ;;  %937 = vmatpush3.msra.mxu0 %v629_v3 }
 0x2a9   : > { %972 = vmatpush3.msra.mxu1 %v661_v8  ;;  %938 = vmatprep.subr.mxu0 %v644_v9 }
 0x2aa   : > { %973 = vmatprep.subr.mxu1 %v676_v10  ;;  %939 = vmatpush3.msra.mxu0 %v628_v11 }
 0x2ab   : > { %974 = vmatpush3.msra.mxu1 %v660_v12 }
 0x32f   : > { %v566_v13 = vpop.xlane.xlu1 %565 }
 0x330   : > { %v567_v14 = vmul.f32 0.001953125, %v566_v13 }
 0x332   : > { %v568_v15 = vadd.f32 1e-05, %v567_v14 }
 0x334   : > { %989 = vrsqrt.f32 %v568_v15 }
 0x341   : > { %v990_v22 = vpop.eup %989 }
 0x342   : > { %v571_v27 = vmul.f32 %v990_v22, %v1174_v5  ;;  %v573_v28 = vmul.f32 %v990_v22, %v1178_v7  ;;  %v570_v29 = vmul.f32 %v990_v22, %v1172_v4  ;;  %v572_v30 = vmul.f32 %v990_v22, %v1176_v6  ;;  %v905_v6 = vld [vmem:[#allocation2] ss:$0 sm:$0xff] }
 0x344   : > { %v596_v31 = vmul.f32 %v582_v20, %v571_v27  ;;  %v598_v32 = vmul.f32 %v590_v21, %v573_v28  ;;  %v595_v33 = vmul.f32 %v578_v18, %v570_v29  ;;  %v597_v34 = vmul.f32 %v586_v19, %v572_v30 }
 0x346   : > { %v621_v35 = vadd.f32 %v607_v23, %v596_v31  ;;  %v623_v37 = vadd.f32 %v615_v24, %v598_v32  ;;  %v620_v38 = vadd.f32 %v603_v25, %v595_v33  ;;  %v622_v42 = vadd.f32 %v611_v26, %v597_v34 }
 0x348   : > { %v625_v40 = vmax.f32 %v621_v35, 0.0  ;;  %v627_v36 = vmax.f32 %v623_v37, 0.0  ;;  %v624_v39 = vmax.f32 %v620_v38, 0.0  ;;  %v626_v41 = vmax.f32 %v622_v42, 0.0 }
 0x34a   : > { %763 = vmatprep.mubr.f32.mxu0 %v625_v40  ;;  %833 = vmatprep.mubr.f32.mxu1 %v627_v36 }
 0x34b   : > { %764 = vmatmul.mubr.f32.vlgmr.msra.gmra.mxu0 %v624_v39  ;;  %834 = vmatmul.mubr.f32.vlgmr.msra.gmra.mxu1 %v626_v41 }
 0x40b   : > { %v940_v4 = vpop.f32.mrf.mxu0  ;;  %v975_v5 = vpop.f32.mrf.mxu1 }
 0x40d   : > { %v941_v7 = vpop.f32.mrf.mxu0  ;;  %v976_v43 = vpop.f32.mrf.mxu1 }
 0x40e   : > { %v942_v44 = vadd.f32 %v941_v7, %v940_v4  ;;  %v977_v46 = vadd.f32 %v976_v43, %v975_v5 }
 0x410   : > { %v766_v45 = vadd.f32 %v942_v44, %v905_v6 }
 0x412   : > { %v836_v47 = vadd.f32 %v977_v46, %v766_v45 }
 0x414   : > { %840 = vst.msk [vmem:[%s329_s17] sm:$0xff] %vm839_vm1, %v836_v47 }
 0x415 PF: > { %s21_s11 = sadd.s32 1, %s997_s11  }
 0x416   : > { %p18_p4 = scmp.ge.s32.totalorder %s21_s11, 4  }
 0x418   :  { %20 = sbr.rel (!%p18_p4) target bundleno = 3 (0x3), region = 86 }

// kernel: transformer_fcst_forward.7
= control target key start
LH: loop header
LB: loop body
LE: loop exit
PB: predicated region body
PF: predicated region fallthrough
CT: control target
= control target key end

     0   :  { %s3601_s18 = smov 0   ;;  %s4842_s0 = inlined_call_operand.vmem [shape: f32[2,8,32], index: 0, kind: input, shape index: {}]   ;;  %s4843_s1 = inlined_call_operand.vmem [shape: f32[32,96], index: 1, kind: input, shape index: {}]   ;;  %s4844_s2 = inlined_call_operand.vmem [shape: f32[1,96], index: 2, kind: input, shape index: {}]   ;;  %s4845_s3 = inlined_call_operand.vmem [shape: f32[32,32], index: 3, kind: input, shape index: {}]   ;;  %s4846_s4 = inlined_call_operand.vmem [shape: f32[1,32], index: 4, kind: input, shape index: {}]   ;;  %s4847_s5 = inlined_call_operand.vmem [shape: f32[1,32], index: 5, kind: input, shape index: {}]   ;;  %s4848_s6 = inlined_call_operand.vmem [shape: f32[1,32], index: 6, kind: input, shape index: {}]   ;;  %s4849_s7 = inlined_call_operand.vmem [shape: f32[32,2048], index: 7, kind: input, shape index: {}]   ;;  %s4850_s8 = inlined_call_operand.vmem [shape: f32[1,2048], index: 8, kind: input, shape index: {}]   ;;  %s4851_s9 = inlined_call_operand.vmem [shape: f32[2048,32], index: 9, kind: input, shape index: {}]   ;;  %s4852_s10 = inlined_call_operand.vmem [shape: f32[1,32], index: 10, kind: input, shape index: {}]   ;;  %s4853_s11 = inlined_call_operand.vmem [shape: f32[1,32], index: 11, kind: input, shape index: {}]   ;;  %s4854_s12 = inlined_call_operand.vmem [shape: f32[1,32], index: 12, kind: input, shape index: {}]   ;;  %s4855_s13 = inlined_call_operand.vmem [shape: f32[1,32], index: 13, kind: input, shape index: {}]   ;;  %s4856_s14 = inlined_call_operand.vmem [shape: f32[1,32], index: 14, kind: input, shape index: {}]   ;;  %s4857_s15 = inlined_call_operand.vmem [shape: f32[2,8,32], index: 15, kind: output, shape index: {}]  }
   0x1 LB: > { %s3043_s19 = sadd.s32 4294967295, %s3503_s18   ;;  %p3047_p0 = scmp.ge.s32.totalorder %s3503_s18, 1  ;;  %s3503_s18 = sphi %s3601_s18, %s25_s18  }
   0x2   : > { %p436_p1 = scmp.lt.s32.totalorder %s3503_s18, 3 }
   0x4   : > { %p437_p2 = pnand %p3047_p0, %p436_p1 }
   0x5   : > { %p482_p3 = scmp.lt.s32.totalorder (!%p437_p2), %s3043_s19, 1  ;;  %s3507_s21 = smov (!%p437_p2), 64  }
   0x6   : > { %440 = sbr.rel (%p437_p2) target bundleno = 3331 (0xd03), region = 80  ;;  %s3508_s22 = smov (!%p437_p2), 96  }
   0x7   : > { %s3509_s23 = smov (!%p437_p2), 88   ;;  %s3510_s24 = smov (!%p437_p2), 120  }
   0x8   : > { %s3511_s25 = smov (!%p437_p2), 80   ;;  %s3512_s27 = smov (!%p437_p2), 72  }
   0x9   : > { %s3513_s28 = smov (!%p437_p2), 112   ;;  %s3514_s29 = smov (!%p437_p2), 104  }
   0xa   : > { %s3515_s30 = smov (!%p437_p2), 56   ;;  %s3517_s17 = smov (!%p437_p2), 40  }
   0xb   : > { %v494_v0 = vld [vmem:[%s4843_s1 + $0x18] sm:$0xff]  ;;  %v3505_v1 = vmov 0.0   ;;  %v493_v2 = vld [vmem:[%s4843_s1 + $0x10] sm:$0xff]  ;;  %vm3506_vm0 = vmmov 0   ;;  %s4859_s19 = smov (!%p482_p3, %s3043_s19), 1  ;;  %v492_v3 = vld [vmem:[%s4843_s1 + $0x8] sm:$0xff] }
   0xc   : > { %3389 = vmatprep.subr.mxu0 %v3505_v1  ;;  %3397 = vmatprep.mubr.msk.f32.mxu0 %vm3506_vm0, %v3505_v1  ;;  %s3048_s26 = sshll.u32 %s4859_s19, 3  ;;  %v491_v4 = vld [vmem:[%s4843_s1] sm:$0xff]  ;;  %vm502_vm1 = vcmask 261120   ;;  %vm579_vm2 = vcmask 64512   ;;  %vm1253_vm3 = vcmask 130048   ;;  %vm1255_vm4 = vcmask 195584  }
   0xd   : > { %3390 = vmatpush3.msra.mxu0 %v494_v0  ;;  %3400 = vmatprep.subr.mxu1 %v3505_v1  ;;  %s485_s16 = scalar_lea.vmem %s4842_s0, %s3048_s26  ;;  %v3050_v6 = vld [vmem:[%s4844_s2] ss:$0 sm:$0xff] }
   0xe   : > { %3391 = vmatprep.subr.mxu0 %v3505_v1  ;;  %3402 = vmatprep.mubr.msk.f32.mxu1 %vm3506_vm0, %v3505_v1  ;;  %v3637_v5 = vld [vmem:[%s485_s16] sm:$0xff]  ;;  %s3516_s16 = smov 48  }
   0xf   : > { %3392 = vmatpush3.msra.mxu0 %v493_v2 }
  0x10   : > { %3393 = vmatprep.subr.mxu0 %v3505_v1 }
  0x11   : > { %3394 = vmatpush3.msra.mxu0 %v492_v3 }
  0x12   : > { %3395 = vmatprep.subr.mxu0 %v3505_v1 }
  0x13   : > { %3396 = vmatpush3.msra.mxu0 %v491_v4 }
  0x14   : > { %3398 = vmatmul.mubr.msk.f32.vlgmr.msra.gmra.mxu0 %vm502_vm1, %v3637_v5  ;;  %3420 = vmatprep.subr.mxu0 %v3505_v1 }
  0x15   : > { %3422 = vmatprep.mubr.msk.f32.mxu0 %vm3506_vm0, %v3505_v1 }
  0xd4   : > { %v572_v7 = vpop.f32.mrf.mxu0 }
  0xd5   : > { %v3648_v8 = vadd.f32 %v3050_v6, %v572_v7 }
  0xd6   : > { %v3399_v9 = vpop.f32.mrf.mxu0 }
  0xd7   : > { %666 = vrot.lane.b32.xlu1 %v3648_v8, %s3507_s21  ;;  %577 = vrot.lane.b32.xlu0 %v3648_v8, %s3508_s22  ;;  %v1260_v9 = vld [vmem:[%s4845_s3 + $0x18] sm:$0xff]  ;;  %s489_s21 = scalar_lea.vmem %s4857_s15, %s3048_s26 }
  0xdb   : > { %744 = vrot.lane.b32.xlu1 %v3648_v8, %s3509_s23 }
  0xdf   : > { %742 = vrot.lane.b32.xlu1 %v3648_v8, %s3510_s24 }
  0xe3   : > { %910 = vrot.lane.b32.xlu1 %v3648_v8, %s3511_s25 }
 0x149   : > { %v667_v10 = vpop.permute.xlu1 %666  ;;  %v578_v11 = vpop.permute.xlu0 %577 }
 0x14a   : > { %3401 = vmatpush3.xpose.msk.msra.mxu1 %vm579_vm2, %v578_v11  ;;  %v1258_v11 = vld [vmem:[%s4845_s3 + $0x8] sm:$0xff] }
 0x14b   : > { %3405 = vmatprep.subr.mxu1 %v3505_v1 }
 0x14d   : > { %v745_v12 = vpop.permute.xlu1 %744  ;;  %3403 = vmatmul.mubr.msk.f32.vlgmr.msra.gmra.mxu1 %vm579_vm2, %v3648_v8 }
 0x14e   : > { %3406 = vmatpush3.msra.mxu1 %v667_v10  ;;  %3407 = vmatprep.mubr.msk.f32.mxu1 %vm3506_vm0, %v3505_v1  ;;  %v1259_v10 = vld [vmem:[%s4845_s3 + $0x10] sm:$0xff] }
 0x14f   : > { %3410 = vmatprep.subr.mxu1 %v3505_v1 }
 0x151   : > { %v743_v13 = vpop.permute.xlu1 %742 }
 0x155   : > { %v911_v14 = vpop.permute.xlu1 %910 }
 0x156   : > { %3421 = vmatpush3.xpose.msk.msra.mxu0 %vm579_vm2, %v911_v14 }
 0x157   : > { %3430 = vmatprep.subr.mxu0 %v3505_v1 }
 0x20d   : > { %v650_v15 = vpop.f32.mrf.mxu1 }
 0x20e   : > { %v654_v16 = vmul.f32 0.35355338, %v650_v15 }
 0x20f   : > { %v3404_v17 = vpop.f32.mrf.mxu1 }
 0x210   : > { %v655_v18 = vsel %vm579_vm2, %v654_v16, -inf }
 0x211   : > { %656 = vmax.xlane.f32.xlu0 %v655_v18 }
 0x227   : > { %1076 = vrot.lane.b32.xlu0 %v3648_v8, %s3512_s27 }
 0x29a   : > { %v657_v19 = vpop.xlane.xlu0 %656 }
 0x29b   : > { %v658_v20 = vsub.f32 %v654_v16, %v657_v19 }
 0x29d   : > { %v659_v21 = vmul.f32 1.442695, %v658_v20 }
 0x29e   : > { %v1077_v26 = vpop.permute.xlu0 %1076 }
 0x29f   : > { %3475 = vpow2.f32 %v659_v21 }
 0x2ac   : > { %v3476_v22 = vpop.eup %3475 }
 0x2ad   : > { %v661_v23 = vsel %vm579_vm2, %v3476_v22, 0.0 }
 0x2ae   : > { %662 = vadd.xlane.f32.xlu1 %v661_v23 }
 0x2bf   : > { %908 = vrot.lane.b32.xlu1 %v3648_v8, %s3513_s28 }
 0x2c3   : > { %1074 = vrot.lane.b32.xlu1 %v3648_v8, %s3514_s29  ;;  %s3518_s29 = smov 8  }
 0x337   : > { %v663_v24 = vpop.xlane.xlu1 %662 }
 0x338   : > { %3477 = vrcp.f32 %v663_v24 }
 0x33b   : > { %v909_v25 = vpop.permute.xlu1 %908 }
 0x33c   : > { %3423 = vmatmul.mubr.msk.f32.vlgmr.msra.gmra.mxu0 %vm579_vm2, %v909_v25  ;;  %v3064_v25 = vld [vmem:[%s4846_s4] ss:$0 sm:$0xff] }
 0x33d   : > { %3431 = vmatpush3.xpose.msk.msra.mxu0 %vm579_vm2, %v1077_v26  ;;  %3432 = vmatprep.mubr.msk.f32.mxu0 %vm3506_vm0, %v3505_v1 }
 0x33e   : > { %3440 = vmatprep.subr.mxu0 %v3505_v1 }
 0x33f   : > { %v1075_v27 = vpop.permute.xlu1 %1074 }
 0x340   : > { %3433 = vmatmul.mubr.msk.f32.vlgmr.msra.gmra.mxu0 %vm579_vm2, %v1075_v27 }
 0x341   : > { %3448 = vmatprep.mubr.msk.f32.mxu0 %vm3506_vm0, %v3505_v1  ;;  %3441 = vmatpush3.msra.mxu0 %v1260_v9  ;;  %v1394_v9 = vld [vmem:[%s4849_s7 + $0xb0] sm:$0xff] }
 0x342   : > { %3442 = vmatprep.subr.mxu0 %v3505_v1 }
 0x343   : > { %3443 = vmatpush3.msra.mxu0 %v1259_v10  ;;  %v1377_v10 = vld [vmem:[%s4849_s7 + $0x28] sm:$0xff] }
 0x344   : > { %3444 = vmatprep.subr.mxu0 %v3505_v1 }
 0x345   : > { %v3478_v28 = vpop.eup %3477  ;;  %3445 = vmatpush3.msra.mxu0 %v1258_v11  ;;  %v1379_v11 = vld [vmem:[%s4849_s7 + $0x38] sm:$0xff] }
 0x346   : > { %v665_v29 = vmul.f32 %v3478_v28, %v3476_v22  ;;  %3446 = vmatprep.subr.mxu0 %v3505_v1 }
 0x348   : > { %3408 = vmatmul.mubr.msk.f32.vlgmr.msra.gmra.mxu1 %vm579_vm2, %v665_v29 }
 0x349   : > { %3411 = vmatpush3.xpose.msk.msra.mxu1 %vm579_vm2, %v745_v12  ;;  %3412 = vmatprep.mubr.msk.f32.mxu1 %vm3506_vm0, %v3505_v1  ;;  %v1257_v12 = vld [vmem:[%s4845_s3] sm:$0xff] }
 0x34a   : > { %3415 = vmatprep.subr.mxu1 %v3505_v1  ;;  %3447 = vmatpush3.msra.mxu0 %v1257_v12  ;;  %v1376_v12 = vld [vmem:[%s4849_s7 + $0x20] sm:$0xff] }
 0x34c   : > { %3413 = vmatmul.mubr.msk.f32.vlgmr.msra.gmra.mxu1 %vm579_vm2, %v743_v13 }
 0x34d   : > { %3417 = vmatprep.mubr.msk.f32.mxu1 %vm3506_vm0, %v3505_v1 }
 0x3fc   : > { %v982_v30 = vpop.f32.mrf.mxu0 }
 0x3fd   : > { %v986_v31 = vmul.f32 0.35355338, %v982_v30 }
 0x3fe   : > { %v3424_v32 = vpop.f32.mrf.mxu0 }
 0x3ff   : > { %v987_v33 = vsel %vm579_vm2, %v986_v31, -inf }
 0x400   : > { %988 = vmax.xlane.f32.xlu0 %v987_v33  ;;  %v1148_v34 = vpop.f32.mrf.mxu0 }
 0x401   : > { %v1152_v41 = vmul.f32 0.35355338, %v1148_v34 }
 0x402   : > { %v3434_v35 = vpop.f32.mrf.mxu0 }
 0x403   : > { %v1153_v43 = vsel %vm579_vm2, %v1152_v41, -inf }
 0x408   : > { %v3686_v36 = vpop.f32.mrf.mxu1 }
 0x40a   : > { %v3409_v37 = vpop.f32.mrf.mxu1 }
 0x40b   : > { %v1423_v37 = vld [vmem:[%s4849_s7 + $0x198] sm:$0xff] }
 0x40c   : > { %v816_v38 = vpop.f32.mrf.mxu1  ;;  %1618 = vmatprep.subr.mxu0 %v1423_v37  ;;  %v1418_v37 = vld [vmem:[%s4849_s7 + $0x170] sm:$0xff] }
 0x40d   : > { %v820_v39 = vmul.f32 0.35355338, %v816_v38  ;;  %v1422_v38 = vld [vmem:[%s4849_s7 + $0x190] sm:$0xff] }
 0x40e   : > { %v3414_v40 = vpop.f32.mrf.mxu1 }
 0x40f   : > { %v821_v42 = vsel %vm579_vm2, %v820_v39, -inf  ;;  %v1407_v40 = vld [vmem:[%s4849_s7 + $0x118] sm:$0xff] }
 0x410   : > { %822 = vmax.xlane.f32.xlu1 %v821_v42  ;;  %v1406_v42 = vld [vmem:[%s4849_s7 + $0x110] sm:$0xff] }
 0x414   : > { %1154 = vmax.xlane.f32.xlu1 %v1153_v43  ;;  %v1389_v43 = vld [vmem:[%s4849_s7 + $0x88] sm:$0xff] }
 0x489   : > { %v989_v44 = vpop.xlane.xlu0 %988 }
 0x48a   : > { %v990_v45 = vsub.f32 %v986_v31, %v989_v44  ;;  %v1391_v44 = vld [vmem:[%s4849_s7 + $0x98] sm:$0xff] }
 0x48c   : > { %v991_v46 = vmul.f32 1.442695, %v990_v45  ;;  %v1388_v45 = vld [vmem:[%s4849_s7 + $0x80] sm:$0xff] }
 0x48e   : > { %3479 = vpow2.f32 %v991_v46  ;;  %v1390_v46 = vld [vmem:[%s4849_s7 + $0x90] sm:$0xff] }
 0x499   : > { %v823_v47 = vpop.xlane.xlu1 %822 }
 0x49a   : > { %v824_v55 = vsub.f32 %v820_v39, %v823_v47  ;;  %v1405_v39 = vld [vmem:[%s4849_s7 + $0x108] sm:$0xff] }
 0x49b   : > { %v3480_v48 = vpop.eup %3479  ;;  %v1373_v47 = vld [vmem:[%s4849_s7 + $0x8] sm:$0xff] }
 0x49c   : > { %v993_v49 = vsel %vm579_vm2, %v3480_v48, 0.0  ;;  %v825_v56 = vmul.f32 1.442695, %v824_v55 }
 0x49d   : > { %994 = vadd.xlane.f32.xlu1 %v993_v49  ;;  %v1155_v50 = vpop.xlane.xlu1 %1154  ;;  %v1372_v49 = vld [vmem:[%s4849_s7] sm:$0xff] }
 0x49e   : > { %v1156_v51 = vsub.f32 %v1152_v41, %v1155_v50  ;;  %v1404_v41 = vld [vmem:[%s4849_s7 + $0x100] sm:$0xff]  ;;  %v1374_v50 = vld [vmem:[%s4849_s7 + $0x10] sm:$0xff] }
 0x4a0   : > { %v1157_v52 = vmul.f32 1.442695, %v1156_v51  ;;  %v1425_v51 = vld [vmem:[%s4849_s7 + $0x1a8] sm:$0xff] }
 0x4a2   : > { %3481 = vpow2.f32 %v1157_v52  ;;  %v1427_v52 = vld [vmem:[%s4849_s7 + $0x1b8] sm:$0xff] }
 0x4a3   : > { %3483 = vpow2.f32 %v825_v56 }
 0x4ae   : > { %832 = vrot.lane.b32.xlu1 %v3648_v8, %s3515_s30  ;;  %s3519_s30 = smov 16  }
 0x4af   : > { %v3482_v53 = vpop.eup %3481 }
 0x4b0   : > { %v1159_v54 = vsel %vm579_vm2, %v3482_v53, 0.0  ;;  %v3484_v57 = vpop.eup %3483 }
 0x4b1   : > { %1160 = vadd.xlane.f32.xlu0 %v1159_v54  ;;  %v827_v58 = vsel %vm579_vm2, %v3484_v57, 0.0 }
 0x4c7   : > { %998 = vrot.lane.b32.xlu0 %v3648_v8, %s3516_s16  ;;  %s3520_s16 = smov 24  }
 0x4d2   : > { %828 = vadd.xlane.f32.xlu1 %v827_v58 }
 0x4e3   : > { %1164 = vrot.lane.b32.xlu1 %v3648_v8, %s3517_s17 }
 0x526   : > { %v995_v59 = vpop.xlane.xlu1 %994 }
 0x52a   : > { %v833_v60 = vpop.permute.xlu1 %832 }
 0x52b   : > { %3416 = vmatpush3.msra.mxu1 %v833_v60 }
 0x52c   : > { %3425 = vmatprep.subr.mxu1 %v3505_v1 }
 0x53a   : > { %v1161_v62 = vpop.xlane.xlu0 %1160 }
 0x53e   : > { %v999_v3 = vpop.permute.xlu0 %998 }
 0x55b   : > { %v829_v61 = vpop.xlane.xlu1 %828 }
 0x55c   : > { %3485 = vrcp.f32 %v829_v61 }
 0x55d   : > { %3487 = vrcp.f32 %v995_v59  ;;  %v3067_v59 = vld [vmem:[%s4848_s6] ss:$0 sm:$0xff] }
 0x55e   : > { %3489 = vrcp.f32 %v1161_v62  ;;  %v1424_v62 = vld [vmem:[%s4849_s7 + $0x1a0] sm:$0xff] }
 0x55f   : > { %v1165_v7 = vpop.permute.xlu1 %1164 }
 0x569   : > { %v3486_v63 = vpop.eup %3485 }
 0x56a   : > { %v831_v0 = vmul.f32 %v3486_v63, %v3484_v57  ;;  %v3488_v2 = vpop.eup %3487  ;;  %v3066_v57 = vld [vmem:[%s4847_s5] ss:$0 sm:$0xff]  ;;  %v1426_v63 = vld [vmem:[%s4849_s7 + $0x1b0] sm:$0xff] }
 0x56b   : > { %v997_v4 = vmul.f32 %v3488_v2, %v3480_v48  ;;  %v3490_v6 = vpop.eup %3489  ;;  %v1375_v48 = vld [vmem:[%s4849_s7 + $0x18] sm:$0xff] }
 0x56c   : > { %3418 = vmatmul.mubr.msk.f32.vlgmr.msra.gmra.mxu1 %vm579_vm2, %v831_v0  ;;  %v1163_v8 = vmul.f32 %v3490_v6, %v3482_v53  ;;  %v1409_v0 = vld [vmem:[%s4849_s7 + $0x128] sm:$0xff]  ;;  %v1411_v2 = vld [vmem:[%s4849_s7 + $0x138] sm:$0xff] }
 0x56d   : > { %3426 = vmatpush3.msra.mxu1 %v999_v3  ;;  %3427 = vmatprep.mubr.msk.f32.mxu1 %vm3506_vm0, %v3505_v1  ;;  %v1408_v3 = vld [vmem:[%s4849_s7 + $0x120] sm:$0xff]  ;;  %v1393_v6 = vld [vmem:[%s4849_s7 + $0xa8] sm:$0xff] }
 0x56e   : > { %3435 = vmatprep.subr.mxu1 %v3505_v1 }
 0x570   : > { %3428 = vmatmul.mubr.msk.f32.vlgmr.msra.gmra.mxu1 %vm579_vm2, %v997_v4  ;;  %v1410_v4 = vld [vmem:[%s4849_s7 + $0x130] sm:$0xff] }
 0x571   : > { %3436 = vmatpush3.msra.mxu1 %v1165_v7  ;;  %3437 = vmatprep.mubr.msk.f32.mxu1 %vm3506_vm0, %v3505_v1  ;;  %v1395_v7 = vld [vmem:[%s4849_s7 + $0xb8] sm:$0xff] }
 0x574   : > { %3438 = vmatmul.mubr.msk.f32.vlgmr.msra.gmra.mxu1 %vm579_vm2, %v1163_v8  ;;  %v1392_v8 = vld [vmem:[%s4849_s7 + $0xa0] sm:$0xff] }
 0x575   : > { %1587 = vmatprep.mubr.f32.mxu1 %v3505_v1 }
 0x62c   : > { %v904_v13 = vpop.f32.mrf.mxu1 }
 0x62d   : > { %1241 = vrot.lane.b32.xlu1 %v904_v13, %s3518_s29  ;;  %v1378_v13 = vld [vmem:[%s4849_s7 + $0x30] sm:$0xff] }
 0x62e   : > { %v3419_v14 = vpop.f32.mrf.mxu1 }
 0x62f   : > { %v1429_v14 = vld [vmem:[%s4849_s7 + $0x1c8] sm:$0xff] }
 0x630   : > { %v1070_v15 = vpop.f32.mrf.mxu1 }
 0x631   : > { %1245 = vrot.lane.b32.xlu0 %v1070_v15, %s3519_s30  ;;  %v1431_v15 = vld [vmem:[%s4849_s7 + $0x1d8] sm:$0xff] }
 0x632   : > { %v3429_v16 = vpop.f32.mrf.mxu1 }
 0x633   : > { %v1428_v16 = vld [vmem:[%s4849_s7 + $0x1c0] sm:$0xff] }
 0x634   : > { %v1236_v17 = vpop.f32.mrf.mxu1 }
 0x635   : > { %1249 = vrot.lane.b32.xlu1 %v1236_v17, %s3520_s16  ;;  %v1430_v17 = vld [vmem:[%s4849_s7 + $0x1d0] sm:$0xff] }
 0x636   : > { %v3439_v18 = vpop.f32.mrf.mxu1 }
 0x637   : > { %v1413_v18 = vld [vmem:[%s4849_s7 + $0x148] sm:$0xff] }
 0x69f   : > { %v1242_v19 = vpop.permute.xlu1 %1241 }
 0x6a0   : > { %v1252_v21 = vsel %vm579_vm2, %v3686_v36, %v1242_v19  ;;  %v1421_v36 = vld [vmem:[%s4849_s7 + $0x188] sm:$0xff]  ;;  %v1415_v19 = vld [vmem:[%s4849_s7 + $0x158] sm:$0xff] }
 0x6a1   : > { %1547 = vmatprep.subr.mxu1 %v1421_v36  ;;  %v1416_v36 = vld [vmem:[%s4849_s7 + $0x160] sm:$0xff] }
 0x6a3   : > { %v1246_v20 = vpop.permute.xlu0 %1245 }
 0x6a4   : > { %v1254_v22 = vsel %vm1253_vm3, %v1252_v21, %v1246_v20  ;;  %v1412_v20 = vld [vmem:[%s4849_s7 + $0x140] sm:$0xff]  ;;  %v1414_v21 = vld [vmem:[%s4849_s7 + $0x150] sm:$0xff] }
 0x6a7   : > { %v1250_v23 = vpop.permute.xlu1 %1249 }
 0x6a8   : > { %v1256_v24 = vsel %vm1255_vm4, %v1254_v22, %v1250_v23  ;;  %v1397_v22 = vld [vmem:[%s4849_s7 + $0xc8] sm:$0xff]  ;;  %v1399_v23 = vld [vmem:[%s4849_s7 + $0xd8] sm:$0xff] }
 0x6a9   : > { %3449 = vmatmul.mubr.msk.f32.vlgmr.msra.gmra.mxu0 %vm502_vm1, %v1256_v24  ;;  %v1396_v24 = vld [vmem:[%s4849_s7 + $0xc0] sm:$0xff] }
 0x6aa   : > { %1658 = vmatprep.mubr.f32.mxu0 %v3505_v1  ;;  %1619 = vmatpush1.msra.mxu0 %v1422_v38  ;;  %v1403_v38 = vld [vmem:[%s4849_s7 + $0xf8] sm:$0xff] }
 0x6ab   : > { %1620 = vmatprep.subr.mxu0 %v1407_v40  ;;  %v1402_v40 = vld [vmem:[%s4849_s7 + $0xf0] sm:$0xff] }
 0x6ac   : > { %1621 = vmatpush1.msra.mxu0 %v1406_v42  ;;  %v1387_v42 = vld [vmem:[%s4849_s7 + $0x78] sm:$0xff] }
 0x6ad   : > { %1622 = vmatprep.subr.mxu0 %v1391_v44  ;;  %v1386_v44 = vld [vmem:[%s4849_s7 + $0x70] sm:$0xff] }
 0x6ae   : > { %1623 = vmatpush1.msra.mxu0 %v1390_v46  ;;  %v2170_v46 = vld [vmem:[%s4851_s9 + $0x1f8] sm:$0xff] }
 0x6af   : > { %1624 = vmatprep.subr.mxu0 %v1375_v48  ;;  %v2154_v48 = vld [vmem:[%s4851_s9 + $0x178] sm:$0xff] }
 0x6b0   : > { %1625 = vmatpush1.msra.mxu0 %v1374_v50  ;;  %v2121_v50 = vld [vmem:[%s4851_s9 + $0x70] sm:$0xff] }
 0x6b1   : > { %1760 = vmatprep.subr.mxu0 %v1427_v52  ;;  %v2136_v52 = vld [vmem:[%s4851_s9 + $0xe8] sm:$0xff] }
 0x769   : > { %v1337_v26 = vpop.f32.mrf.mxu0 }
 0x76a   : > { %v1338_v27 = vadd.f32 %v3064_v25, %v1337_v26  ;;  %v1398_v25 = vld [vmem:[%s4849_s7 + $0xd0] sm:$0xff]  ;;  %v1381_v26 = vld [vmem:[%s4849_s7 + $0x48] sm:$0xff] }
 0x76b   : > { %v3450_v28 = vpop.f32.mrf.mxu0 }
 0x76c   : > { %v1341_v29 = vadd.f32 %v1338_v27, %v3637_v5  ;;  %v1420_v5 = vld [vmem:[%s4849_s7 + $0x180] sm:$0xff]  ;;  %v1383_v27 = vld [vmem:[%s4849_s7 + $0x58] sm:$0xff] }
 0x76d   : > { %1548 = vmatpush1.msra.mxu1 %v1420_v5  ;;  %v1380_v28 = vld [vmem:[%s4849_s7 + $0x40] sm:$0xff]  ;;  %v1401_v5 = vld [vmem:[%s4849_s7 + $0xe8] sm:$0xff] }
 0x76e   : > { %v1344_v30 = vsel %vm502_vm1, %v1341_v29, 0.0  ;;  %1549 = vmatprep.subr.mxu1 %v1405_v39  ;;  %v1400_v39 = vld [vmem:[%s4849_s7 + $0xe0] sm:$0xff] }
 0x76f   : > { %1345 = vadd.xlane.f32.xlu0 %v1344_v30  ;;  %1550 = vmatpush1.msra.mxu1 %v1404_v41  ;;  %v1433_v30 = vld [vmem:[%s4849_s7 + $0x1e8] sm:$0xff] }
 0x770   : > { %1551 = vmatprep.subr.mxu1 %v1389_v43  ;;  %v1385_v41 = vld [vmem:[%s4849_s7 + $0x68] sm:$0xff]  ;;  %v1384_v43 = vld [vmem:[%s4849_s7 + $0x60] sm:$0xff] }
 0x771   : > { %1552 = vmatpush1.msra.mxu1 %v1388_v45  ;;  %v2138_v45 = vld [vmem:[%s4851_s9 + $0xf8] sm:$0xff] }
 0x772   : > { %1553 = vmatprep.subr.mxu1 %v1373_v47  ;;  %v2122_v47 = vld [vmem:[%s4851_s9 + $0x78] sm:$0xff] }
 0x773   : > { %1554 = vmatpush1.msra.mxu1 %v1372_v49  ;;  %v2137_v49 = vld [vmem:[%s4851_s9 + $0xf0] sm:$0xff] }
 0x774   : > { %1689 = vmatprep.subr.mxu1 %v1425_v51  ;;  %v2153_v51 = vld [vmem:[%s4851_s9 + $0x170] sm:$0xff] }
 0x7f8   : > { %v1346_v31 = vpop.xlane.xlu0 %1345 }
 0x7f9   : > { %v1348_v32 = vmul.f32 0.03125, %v1346_v31  ;;  %v1435_v31 = vld [vmem:[%s4849_s7 + $0x1f8] sm:$0xff] }
 0x7fb   : > { %v1349_v33 = vsub.f32 %v1341_v29, %v1348_v32  ;;  %v1382_v29 = vld [vmem:[%s4849_s7 + $0x50] sm:$0xff]  ;;  %v1432_v32 = vld [vmem:[%s4849_s7 + $0x1e0] sm:$0xff] }
 0x7fd   : > { %v1350_v34 = vmul.f32 %v1349_v33, %v1349_v33 }
 0x7ff   : > { %v1351_v35 = vsel %vm502_vm1, %v1350_v34, 0.0  ;;  %v1417_v34 = vld [vmem:[%s4849_s7 + $0x168] sm:$0xff] }
 0x800   : > { %1352 = vadd.xlane.f32.xlu1 %v1351_v35  ;;  %v1419_v35 = vld [vmem:[%s4849_s7 + $0x178] sm:$0xff] }
 0x889   : > { %v1353_v53 = vpop.xlane.xlu1 %1352 }
 0x88a   : > { %v1354_v54 = vmul.f32 0.03125, %v1353_v53  ;;  %v2168_v53 = vld [vmem:[%s4851_s9 + $0x1e8] sm:$0xff] }
 0x88c   : > { %v1355_v55 = vadd.f32 1e-05, %v1354_v54  ;;  %v2120_v54 = vld [vmem:[%s4851_s9 + $0x68] sm:$0xff] }
 0x88e   : > { %3491 = vrsqrt.f32 %v1355_v55  ;;  %v2152_v55 = vld [vmem:[%s4851_s9 + $0x168] sm:$0xff] }
 0x89b   : > { %v3492_v56 = vpop.eup %3491 }
 0x89c   : > { %v1357_v58 = vmul.f32 %v3492_v56, %v1349_v33  ;;  %v1434_v33 = vld [vmem:[%s4849_s7 + $0x1f0] sm:$0xff]  ;;  %v2135_v56 = vld [vmem:[%s4851_s9 + $0xe0] sm:$0xff] }
 0x89e   : > { %v1364_v60 = vmul.f32 %v3066_v57, %v1357_v58  ;;  %v2167_v57 = vld [vmem:[%s4851_s9 + $0x1e0] sm:$0xff] }
 0x89f   : > { %v2119_v58 = vld [vmem:[%s4851_s9 + $0x60] sm:$0xff] }
 0x8a0   : > { %v3791_v61 = vadd.f32 %v3067_v59, %v1364_v60  ;;  %v2151_v59 = vld [vmem:[%s4851_s9 + $0x160] sm:$0xff]  ;;  %v2134_v60 = vld [vmem:[%s4851_s9 + $0xd8] sm:$0xff] }
 0x8a2   : > { %3068 = vmatmul.mubr.msk.f32.vlgmr.msra.gmra.mxu1 %vm502_vm1, %v3791_v61  ;;  %3069 = vmatmul.mubr.msk.f32.vlgmr.msra.gmra.mxu0 %vm502_vm1, %v3791_v61 }
 0x8a3   : > { %1690 = vmatpush1.msra.mxu1 %v1424_v62  ;;  %1761 = vmatpush1.msra.mxu0 %v1426_v63  ;;  %v2166_v62 = vld [vmem:[%s4851_s9 + $0x1d8] sm:$0xff] }
 0x8a4   : > { %1691 = vmatprep.subr.mxu1 %v1409_v0  ;;  %1762 = vmatprep.subr.mxu0 %v1411_v2  ;;  %v2118_v63 = vld [vmem:[%s4851_s9 + $0x58] sm:$0xff]  ;;  %v2133_v2 = vld [vmem:[%s4851_s9 + $0xd0] sm:$0xff] }
 0x8a5   : > { %1692 = vmatpush1.msra.mxu1 %v1408_v3  ;;  %1763 = vmatpush1.msra.mxu0 %v1410_v4  ;;  %v2150_v0 = vld [vmem:[%s4851_s9 + $0x158] sm:$0xff]  ;;  %v2165_v3 = vld [vmem:[%s4851_s9 + $0x1d0] sm:$0xff] }
 0x8a6   : > { %1693 = vmatprep.subr.mxu1 %v1393_v6  ;;  %1764 = vmatprep.subr.mxu0 %v1395_v7  ;;  %v2117_v4 = vld [vmem:[%s4851_s9 + $0x50] sm:$0xff]  ;;  %v2132_v7 = vld [vmem:[%s4851_s9 + $0xc8] sm:$0xff] }
 0x8a7   : > { %1694 = vmatpush1.msra.mxu1 %v1392_v8  ;;  %1765 = vmatpush1.msra.mxu0 %v1394_v9  ;;  %v2149_v6 = vld [vmem:[%s4851_s9 + $0x150] sm:$0xff]  ;;  %v2164_v8 = vld [vmem:[%s4851_s9 + $0x1c8] sm:$0xff] }
 0x8a8   : > { %1695 = vmatprep.subr.mxu1 %v1377_v10  ;;  %1766 = vmatprep.subr.mxu0 %v1379_v11  ;;  %v2116_v9 = vld [vmem:[%s4851_s9 + $0x48] sm:$0xff]  ;;  %v2131_v11 = vld [vmem:[%s4851_s9 + $0xc0] sm:$0xff] }
 0x8a9   : > { %1696 = vmatpush1.msra.mxu1 %v1376_v12  ;;  %1729 = vmatprep.mubr.f32.mxu1 %v3505_v1  ;;  %v2148_v10 = vld [vmem:[%s4851_s9 + $0x148] sm:$0xff]  ;;  %v2163_v12 = vld [vmem:[%s4851_s9 + $0x1c0] sm:$0xff] }
 0x8aa   : > { %1767 = vmatpush1.msra.mxu0 %v1378_v13  ;;  %1800 = vmatprep.mubr.f32.mxu0 %v3505_v1  ;;  %v2115_v13 = vld [vmem:[%s4851_s9 + $0x40] sm:$0xff] }
 0x8ab   : > { %3070 = vmatmul.mubr.msk.f32.vlgmr.msra.gmra.mxu1 %vm502_vm1, %v3791_v61  ;;  %3071 = vmatmul.mubr.msk.f32.vlgmr.msra.gmra.mxu0 %vm502_vm1, %v3791_v61 }
 0x8ac   : > { %1831 = vmatprep.subr.mxu1 %v1429_v14  ;;  %1902 = vmatprep.subr.mxu0 %v1431_v15  ;;  %v2147_v14 = vld [vmem:[%s4851_s9 + $0x140] sm:$0xff]  ;;  %v2130_v15 = vld [vmem:[%s4851_s9 + $0xb8] sm:$0xff] }
 0x8ad   : > { %1832 = vmatpush1.msra.mxu1 %v1428_v16  ;;  %1903 = vmatpush1.msra.mxu0 %v1430_v17  ;;  %v2162_v16 = vld [vmem:[%s4851_s9 + $0x1b8] sm:$0xff] }
 0x8ae   : > { %1833 = vmatprep.subr.mxu1 %v1413_v18  ;;  %1904 = vmatprep.subr.mxu0 %v1415_v19  ;;  %v2114_v17 = vld [vmem:[%s4851_s9 + $0x38] sm:$0xff]  ;;  %v2129_v19 = vld [vmem:[%s4851_s9 + $0xb0] sm:$0xff] }
 0x8af   : > { %1834 = vmatpush1.msra.mxu1 %v1412_v20  ;;  %1905 = vmatpush1.msra.mxu0 %v1414_v21  ;;  %v2146_v18 = vld [vmem:[%s4851_s9 + $0x138] sm:$0xff]  ;;  %v2161_v20 = vld [vmem:[%s4851_s9 + $0x1b0] sm:$0xff] }
 0x8b0   : > { %1835 = vmatprep.subr.mxu1 %v1397_v22  ;;  %1906 = vmatprep.subr.mxu0 %v1399_v23  ;;  %v2113_v21 = vld [vmem:[%s4851_s9 + $0x30] sm:$0xff]  ;;  %v2128_v23 = vld [vmem:[%s4851_s9 + $0xa8] sm:$0xff] }
 0x8b1   : > { %1836 = vmatpush1.msra.mxu1 %v1396_v24  ;;  %1907 = vmatpush1.msra.mxu0 %v1398_v25  ;;  %v2145_v22 = vld [vmem:[%s4851_s9 + $0x130] sm:$0xff]  ;;  %v2160_v24 = vld [vmem:[%s4851_s9 + $0x1a8] sm:$0xff] }
 0x8b2   : > { %1837 = vmatprep.subr.mxu1 %v1381_v26  ;;  %1908 = vmatprep.subr.mxu0 %v1383_v27  ;;  %v2112_v25 = vld [vmem:[%s4851_s9 + $0x28] sm:$0xff]  ;;  %v2127_v27 = vld [vmem:[%s4851_s9 + $0xa0] sm:$0xff] }
 0x8b3   : > { %1838 = vmatpush1.msra.mxu1 %v1380_v28  ;;  %1871 = vmatprep.mubr.f32.mxu1 %v3505_v1  ;;  %v2144_v26 = vld [vmem:[%s4851_s9 + $0x128] sm:$0xff]  ;;  %v2159_v28 = vld [vmem:[%s4851_s9 + $0x1a0] sm:$0xff] }
 0x8b4   : > { %1909 = vmatpush1.msra.mxu0 %v1382_v29  ;;  %1942 = vmatprep.mubr.f32.mxu0 %v3505_v1  ;;  %v2111_v29 = vld [vmem:[%s4851_s9 + $0x20] sm:$0xff] }
 0x8b5   : > { %3072 = vmatmul.mubr.msk.f32.vlgmr.msra.gmra.mxu1 %vm502_vm1, %v3791_v61  ;;  %3073 = vmatmul.mubr.msk.f32.vlgmr.msra.gmra.mxu0 %vm502_vm1, %v3791_v61 }
 0x8b6   : > { %1973 = vmatprep.subr.mxu1 %v1433_v30  ;;  %2044 = vmatprep.subr.mxu0 %v1435_v31  ;;  %v2143_v30 = vld [vmem:[%s4851_s9 + $0x120] sm:$0xff]  ;;  %v2126_v31 = vld [vmem:[%s4851_s9 + $0x98] sm:$0xff] }
 0x8b7   : > { %1974 = vmatpush1.msra.mxu1 %v1432_v32  ;;  %2045 = vmatpush1.msra.mxu0 %v1434_v33  ;;  %v2158_v32 = vld [vmem:[%s4851_s9 + $0x198] sm:$0xff] }
 0x8b8   : > { %1975 = vmatprep.subr.mxu1 %v1417_v34  ;;  %2046 = vmatprep.subr.mxu0 %v1419_v35  ;;  %v2110_v33 = vld [vmem:[%s4851_s9 + $0x18] sm:$0xff]  ;;  %v2125_v35 = vld [vmem:[%s4851_s9 + $0x90] sm:$0xff] }
 0x8b9   : > { %1976 = vmatpush1.msra.mxu1 %v1416_v36  ;;  %2047 = vmatpush1.msra.mxu0 %v1418_v37  ;;  %v2142_v34 = vld [vmem:[%s4851_s9 + $0x118] sm:$0xff]  ;;  %v2157_v36 = vld [vmem:[%s4851_s9 + $0x190] sm:$0xff] }
 0x8ba   : > { %1977 = vmatprep.subr.mxu1 %v1401_v5  ;;  %2048 = vmatprep.subr.mxu0 %v1403_v38  ;;  %v2109_v37 = vld [vmem:[%s4851_s9 + $0x10] sm:$0xff]  ;;  %v2124_v38 = vld [vmem:[%s4851_s9 + $0x88] sm:$0xff] }
 0x8bb   : > { %1978 = vmatpush1.msra.mxu1 %v1400_v39  ;;  %2049 = vmatpush1.msra.mxu0 %v1402_v40  ;;  %v2141_v5 = vld [vmem:[%s4851_s9 + $0x110] sm:$0xff]  ;;  %v2156_v39 = vld [vmem:[%s4851_s9 + $0x188] sm:$0xff] }
 0x8bc   : > { %1979 = vmatprep.subr.mxu1 %v1385_v41  ;;  %2050 = vmatprep.subr.mxu0 %v1387_v42  ;;  %v2108_v40 = vld [vmem:[%s4851_s9 + $0x8] sm:$0xff]  ;;  %v2123_v42 = vld [vmem:[%s4851_s9 + $0x80] sm:$0xff] }
 0x8bd   : > { %1980 = vmatpush1.msra.mxu1 %v1384_v43  ;;  %2013 = vmatprep.mubr.f32.mxu1 %v3505_v1  ;;  %v2140_v41 = vld [vmem:[%s4851_s9 + $0x108] sm:$0xff]  ;;  %v2155_v43 = vld [vmem:[%s4851_s9 + $0x180] sm:$0xff] }
 0x8be   : > { %2051 = vmatpush1.msra.mxu0 %v1386_v44  ;;  %2084 = vmatprep.mubr.f32.mxu0 %v3505_v1  ;;  %v2169_v1 = vld [vmem:[%s4851_s9 + $0x1f0] sm:$0xff]  ;;  %v2107_v44 = vld [vmem:[%s4851_s9] sm:$0xff] }
 0x8bf   : > { %3074 = vmatmul.mubr.msk.f32.vlgmr.msra.gmra.mxu1 %vm502_vm1, %v3791_v61  ;;  %3075 = vmatmul.mubr.msk.f32.vlgmr.msra.gmra.mxu0 %vm502_vm1, %v3791_v61 }
 0x8c0   : > { %3109 = vmatprep.subr.mxu1 %v2138_v45  ;;  %3144 = vmatprep.subr.mxu0 %v2170_v46  ;;  %v2139_v45 = vld [vmem:[%s4851_s9 + $0x100] sm:$0xff]  ;;  %v2202_v46 = vld [vmem:[%s4851_s9 + $0x2f8] sm:$0xff] }
 0x8c1   : > { %3110 = vmatpush3.msra.mxu1 %v2122_v47  ;;  %3145 = vmatpush3.msra.mxu0 %v2154_v48  ;;  %v2234_v47 = vld [vmem:[%s4851_s9 + $0x3f8] sm:$0xff]  ;;  %v1440_v48 = vlaneseq }
 0x8c2   : > { %3111 = vmatprep.subr.mxu1 %v2137_v49  ;;  %3146 = vmatprep.subr.mxu0 %v2169_v1 }
 0x8c3   : > { %3112 = vmatpush3.msra.mxu1 %v2121_v50  ;;  %3147 = vmatpush3.msra.mxu0 %v2153_v51  ;;  %v4151_v49 = vshrl.u32 %v1440_v48, 7  ;;  %v4157_v50 = vld [vmem:[%s4850_s8 + $0x8] sm:$0xff] }
 0x8c4   : > { %3113 = vmatprep.subr.mxu1 %v2136_v52  ;;  %3148 = vmatprep.subr.mxu0 %v2168_v53  ;;  %v2228_v48 = vld [vmem:[%s4851_s9 + $0x3c8] sm:$0xff] }
 0x8c5   : > { %3114 = vmatpush3.msra.mxu1 %v2120_v54  ;;  %3149 = vmatpush3.msra.mxu0 %v2152_v55  ;;  %v1458_v1 = vsub.s32 4, %v4151_v49  ;;  %v1466_v52 = vsub.s32 6, %v4151_v49  ;;  %v1442_v54 = vsub.s32 0, %v4151_v49  ;;  %v1450_v55 = vsub.s32 2, %v4151_v49 }
 0x8c6   : > { %3115 = vmatprep.subr.mxu1 %v2135_v56  ;;  %3150 = vmatprep.subr.mxu0 %v2167_v57  ;;  %v4175_v56 = vld [vmem:[%s4850_s8] sm:$0xff]  ;;  %v1446_v57 = vsub.s32 1, %v4151_v49 }
 0x8c7   : > { %3116 = vmatpush3.msra.mxu1 %v2119_v58  ;;  %3151 = vmatpush3.msra.mxu0 %v2151_v59  ;;  %v4162_v51 = vrot.slane %v4157_v50, %v1458_v1  ;;  %v4168_v53 = vrot.slane %v4157_v50, %v1466_v52  ;;  %v1454_v58 = vsub.s32 3, %v4151_v49  ;;  %v1443_v59 = vrot.slane %v4175_v56, %v1442_v54 }
 0x8c8   : > { %3117 = vmatprep.subr.mxu1 %v2134_v60  ;;  %3152 = vmatprep.subr.mxu0 %v2166_v62  ;;  %v1451_v60 = vrot.slane %v4175_v56, %v1450_v55  ;;  %v1447_v62 = vrot.slane %v4175_v56, %v1446_v57 }
 0x8c9   : > { %3118 = vmatpush3.msra.mxu1 %v2118_v63  ;;  %3153 = vmatpush3.msra.mxu0 %v2150_v0  ;;  %v1455_v63 = vrot.slane %v4175_v56, %v1454_v58 }
 0x8ca   : > { %3119 = vmatprep.subr.mxu1 %v2133_v2  ;;  %3154 = vmatprep.subr.mxu0 %v2165_v3 }
 0x8cb   : > { %3120 = vmatpush3.msra.mxu1 %v2117_v4  ;;  %3155 = vmatpush3.msra.mxu0 %v2149_v6 }
 0x8cc   : > { %3121 = vmatprep.subr.mxu1 %v2132_v7  ;;  %3156 = vmatprep.subr.mxu0 %v2164_v8 }
 0x8cd   : > { %3122 = vmatpush3.msra.mxu1 %v2116_v9  ;;  %3157 = vmatpush3.msra.mxu0 %v2148_v10  ;;  %v1462_v10 = vsub.s32 5, %v4151_v49 }
 0x8ce   : > { %3123 = vmatprep.subr.mxu1 %v2131_v11  ;;  %3158 = vmatprep.subr.mxu0 %v2163_v12  ;;  %v1470_v11 = vsub.s32 7, %v4151_v49  ;;  %v2236_v49 = vld [vmem:[%s4851_s9 + $0x408] sm:$0xff] }
 0x8cf   : > { %3124 = vmatpush3.msra.mxu1 %v2115_v13  ;;  %3159 = vmatpush3.msra.mxu0 %v2147_v14 }
 0x8d0   : > { %3125 = vmatprep.subr.mxu1 %v2130_v15  ;;  %3160 = vmatprep.subr.mxu0 %v2162_v16  ;;  %v2186_v16 = vld [vmem:[%s4851_s9 + $0x278] sm:$0xff] }
 0x8d1   : > { %3126 = vmatpush3.msra.mxu1 %v2114_v17  ;;  %3161 = vmatpush3.msra.mxu0 %v2146_v18  ;;  %v2218_v17 = vld [vmem:[%s4851_s9 + $0x378] sm:$0xff]  ;;  %v2201_v18 = vld [vmem:[%s4851_s9 + $0x2f0] sm:$0xff] }
 0x8d2   : > { %3127 = vmatprep.subr.mxu1 %v2129_v19  ;;  %3162 = vmatprep.subr.mxu0 %v2161_v20  ;;  %v2233_v19 = vld [vmem:[%s4851_s9 + $0x3f0] sm:$0xff]  ;;  %v1463_v20 = vrot.slane %v4175_v56, %v1462_v10 }
 0x8d3   : > { %3128 = vmatpush3.msra.mxu1 %v2113_v21  ;;  %3163 = vmatpush3.msra.mxu0 %v2145_v22  ;;  %v1471_v21 = vrot.slane %v4175_v56, %v1470_v11  ;;  %v2185_v22 = vld [vmem:[%s4851_s9 + $0x270] sm:$0xff] }
 0x8d4   : > { %3129 = vmatprep.subr.mxu1 %v2128_v23  ;;  %3164 = vmatprep.subr.mxu0 %v2160_v24  ;;  %v2217_v23 = vld [vmem:[%s4851_s9 + $0x370] sm:$0xff] }
 0x8d5   : > { %3130 = vmatpush3.msra.mxu1 %v2112_v25  ;;  %3165 = vmatpush3.msra.mxu0 %v2144_v26  ;;  %v2200_v26 = vld [vmem:[%s4851_s9 + $0x2e8] sm:$0xff] }
 0x8d6   : > { %3131 = vmatprep.subr.mxu1 %v2127_v27  ;;  %3166 = vmatprep.subr.mxu0 %v2159_v28  ;;  %v2232_v27 = vld [vmem:[%s4851_s9 + $0x3e8] sm:$0xff] }
 0x8d7   : > { %3132 = vmatpush3.msra.mxu1 %v2111_v29  ;;  %3167 = vmatpush3.msra.mxu0 %v2143_v30  ;;  %v2184_v28 = vld [vmem:[%s4851_s9 + $0x268] sm:$0xff] }
 0x8d8   : > { %3133 = vmatprep.subr.mxu1 %v2126_v31  ;;  %3168 = vmatprep.subr.mxu0 %v2158_v32  ;;  %v2216_v29 = vld [vmem:[%s4851_s9 + $0x368] sm:$0xff]  ;;  %v2199_v32 = vld [vmem:[%s4851_s9 + $0x2e0] sm:$0xff] }
 0x8d9   : > { %3134 = vmatpush3.msra.mxu1 %v2110_v33  ;;  %3169 = vmatpush3.msra.mxu0 %v2142_v34  ;;  %v2231_v33 = vld [vmem:[%s4851_s9 + $0x3e0] sm:$0xff] }
 0x8da   : > { %3135 = vmatprep.subr.mxu1 %v2125_v35  ;;  %3170 = vmatprep.subr.mxu0 %v2157_v36  ;;  %v2183_v36 = vld [vmem:[%s4851_s9 + $0x260] sm:$0xff] }
 0x8db   : > { %3136 = vmatpush3.msra.mxu1 %v2109_v37  ;;  %3171 = vmatpush3.msra.mxu0 %v2141_v5  ;;  %v2215_v37 = vld [vmem:[%s4851_s9 + $0x360] sm:$0xff] }
 0x8dc   : > { %3137 = vmatprep.subr.mxu1 %v2124_v38  ;;  %3172 = vmatprep.subr.mxu0 %v2156_v39  ;;  %v2198_v39 = vld [vmem:[%s4851_s9 + $0x2d8] sm:$0xff] }
 0x8dd   : > { %3138 = vmatpush3.msra.mxu1 %v2108_v40  ;;  %3173 = vmatpush3.msra.mxu0 %v2140_v41  ;;  %v2230_v40 = vld [vmem:[%s4851_s9 + $0x3d8] sm:$0xff] }
 0x8de   : > { %3139 = vmatprep.subr.mxu1 %v2123_v42  ;;  %3174 = vmatprep.subr.mxu0 %v2155_v43  ;;  %v2182_v41 = vld [vmem:[%s4851_s9 + $0x258] sm:$0xff]  ;;  %v2197_v43 = vld [vmem:[%s4851_s9 + $0x2d0] sm:$0xff] }
 0x8df   : > { %3140 = vmatpush3.msra.mxu1 %v2107_v44  ;;  %3175 = vmatpush3.msra.mxu0 %v2139_v45  ;;  %v2214_v42 = vld [vmem:[%s4851_s9 + $0x358] sm:$0xff]  ;;  %v2229_v44 = vld [vmem:[%s4851_s9 + $0x3d0] sm:$0xff] }
 0x8e0   : > { %3179 = vmatprep.subr.mxu1 %v2202_v46  ;;  %3214 = vmatprep.subr.mxu0 %v2234_v47  ;;  %v2181_v45 = vld [vmem:[%s4851_s9 + $0x250] sm:$0xff]  ;;  %v2196_v47 = vld [vmem:[%s4851_s9 + $0x2c8] sm:$0xff] }
 0x8e1   : > { %v2213_v46 = vld [vmem:[%s4851_s9 + $0x350] sm:$0xff] }
 0x962   : > { %v1589_v0 = vpop.f32.mrf.mxu1  ;;  %v1660_v2 = vpop.f32.mrf.mxu0 }
 0x963   : > { %v1590_v3 = vadd.f32 %v1589_v0, %v1443_v59  ;;  %v1661_v4 = vadd.f32 %v1660_v2, %v1451_v60  ;;  %v2180_v59 = vld [vmem:[%s4851_s9 + $0x248] sm:$0xff]  ;;  %v2179_v0 = vld [vmem:[%s4851_s9 + $0x240] sm:$0xff] }
 0x964   : > { %v1591_v6 = vpop.f32.mrf.mxu1  ;;  %v1662_v7 = vpop.f32.mrf.mxu0  ;;  %v2212_v60 = vld [vmem:[%s4851_s9 + $0x348] sm:$0xff]  ;;  %v2211_v2 = vld [vmem:[%s4851_s9 + $0x340] sm:$0xff] }
 0x965   : > { %v1592_v8 = vadd.f32 %v1591_v6, %v1447_v62  ;;  %v1663_v9 = vadd.f32 %v1662_v7, %v1455_v63  ;;  %v2091_v14 = vmax.f32 %v1590_v3, 0.0  ;;  %v2093_v15 = vmax.f32 %v1661_v4, 0.0  ;;  %v2195_v62 = vld [vmem:[%s4851_s9 + $0x2c0] sm:$0xff]  ;;  %v2194_v3 = vld [vmem:[%s4851_s9 + $0x2b8] sm:$0xff] }
 0x966   : > { %v2227_v63 = vld [vmem:[%s4851_s9 + $0x3c0] sm:$0xff]  ;;  %v2226_v4 = vld [vmem:[%s4851_s9 + $0x3b8] sm:$0xff] }
 0x967   : > { %v2092_v12 = vmax.f32 %v1592_v8, 0.0  ;;  %v2094_v13 = vmax.f32 %v1663_v9, 0.0  ;;  %v2178_v6 = vld [vmem:[%s4851_s9 + $0x238] sm:$0xff]  ;;  %v2193_v8 = vld [vmem:[%s4851_s9 + $0x2b0] sm:$0xff] }
 0x968   : > { %v2210_v7 = vld [vmem:[%s4851_s9 + $0x338] sm:$0xff]  ;;  %v2225_v9 = vld [vmem:[%s4851_s9 + $0x3b0] sm:$0xff] }
 0x969   : > { %2434 = vmatprep.mubr.f32.mxu1 %v2092_v12  ;;  %2504 = vmatprep.mubr.f32.mxu0 %v2094_v13  ;;  %v2177_v12 = vld [vmem:[%s4851_s9 + $0x230] sm:$0xff] }
 0x96a   : > { %2435 = vmatmul.mubr.f32.vlgmr.msra.gmra.mxu1 %v2091_v14  ;;  %2505 = vmatmul.mubr.f32.vlgmr.msra.gmra.mxu0 %v2093_v15  ;;  %v2209_v13 = vld [vmem:[%s4851_s9 + $0x330] sm:$0xff]  ;;  %v2192_v14 = vld [vmem:[%s4851_s9 + $0x2a8] sm:$0xff] }
 0x96b   : > { %v4217_v24 = vpop.f32.mrf.mxu1  ;;  %v4219_v25 = vpop.f32.mrf.mxu0  ;;  %3180 = vmatpush3.msra.mxu1 %v2186_v16  ;;  %3215 = vmatpush3.msra.mxu0 %v2218_v17  ;;  %v2224_v15 = vld [vmem:[%s4851_s9 + $0x3a8] sm:$0xff] }
 0x96c   : > { %3181 = vmatprep.subr.mxu1 %v2201_v18  ;;  %3216 = vmatprep.subr.mxu0 %v2233_v19  ;;  %v2176_v16 = vld [vmem:[%s4851_s9 + $0x228] sm:$0xff]  ;;  %v2191_v18 = vld [vmem:[%s4851_s9 + $0x2a0] sm:$0xff] }
 0x96d   : > { %v1733_v30 = vpop.f32.mrf.mxu1  ;;  %v1804_v31 = vpop.f32.mrf.mxu0  ;;  %3182 = vmatpush3.msra.mxu1 %v2185_v22  ;;  %3217 = vmatpush3.msra.mxu0 %v2217_v23  ;;  %v2208_v17 = vld [vmem:[%s4851_s9 + $0x328] sm:$0xff]  ;;  %v2223_v19 = vld [vmem:[%s4851_s9 + $0x3a0] sm:$0xff]  ;;  %v2190_v23 = vld [vmem:[%s4851_s9 + $0x298] sm:$0xff] }
 0x96e   : > { %v1734_v34 = vadd.f32 %v1733_v30, %v1463_v20  ;;  %v1805_v35 = vadd.f32 %v1804_v31, %v1471_v21  ;;  %3183 = vmatprep.subr.mxu1 %v2200_v26  ;;  %3218 = vmatprep.subr.mxu0 %v2232_v27  ;;  %v2175_v20 = vld [vmem:[%s4851_s9 + $0x220] sm:$0xff]  ;;  %v2222_v26 = vld [vmem:[%s4851_s9 + $0x398] sm:$0xff]  ;;  %v1459_v27 = vrot.slane %v4175_v56, %v1458_v1  ;;  %v2189_v1 = vld [vmem:[%s4851_s9 + $0x290] sm:$0xff] }
 0x96f   : > { %3184 = vmatpush3.msra.mxu1 %v2184_v28  ;;  %3219 = vmatpush3.msra.mxu0 %v2216_v29  ;;  %v2207_v21 = vld [vmem:[%s4851_s9 + $0x320] sm:$0xff]  ;;  %v1467_v28 = vrot.slane %v4175_v56, %v1466_v52  ;;  %v2174_v30 = vld [vmem:[%s4851_s9 + $0x218] sm:$0xff]  ;;  %v2221_v52 = vld [vmem:[%s4851_s9 + $0x390] sm:$0xff]  ;;  %v1479_v56 = vrot.slane %v4157_v50, %v1446_v57 }
 0x970   : > { %v2096_v5 = vmax.f32 %v1734_v34, 0.0  ;;  %v2098_v38 = vmax.f32 %v1805_v35, 0.0  ;;  %3185 = vmatprep.subr.mxu1 %v2199_v32  ;;  %3220 = vmatprep.subr.mxu0 %v2231_v33  ;;  %v2206_v31 = vld [vmem:[%s4851_s9 + $0x318] sm:$0xff]  ;;  %v2173_v32 = vld [vmem:[%s4851_s9 + $0x210] sm:$0xff]  ;;  %v1487_v35 = vrot.slane %v4157_v50, %v1454_v58  ;;  %v2188_v57 = vld [vmem:[%s4851_s9 + $0x288] sm:$0xff] }
 0x971   : > { %3186 = vmatpush3.msra.mxu1 %v2183_v36  ;;  %3221 = vmatpush3.msra.mxu0 %v2215_v37  ;;  %v2205_v33 = vld [vmem:[%s4851_s9 + $0x310] sm:$0xff]  ;;  %v2220_v36 = vld [vmem:[%s4851_s9 + $0x388] sm:$0xff]  ;;  %v1732_v37 = vadd.f32 %v4217_v24, %v1459_v27  ;;  %v2219_v24 = vld [vmem:[%s4851_s9 + $0x380] sm:$0xff] }
 0x972   : > { %2574 = vmatprep.mubr.f32.mxu1 %v2096_v5  ;;  %2644 = vmatprep.mubr.f32.mxu0 %v2098_v38  ;;  %v1803_v5 = vadd.f32 %v4219_v25, %v1467_v28  ;;  %v2172_v58 = vld [vmem:[%s4851_s9 + $0x208] sm:$0xff] }
 0x973   : > { %3187 = vmatprep.subr.mxu1 %v2198_v39  ;;  %3222 = vmatprep.subr.mxu0 %v2230_v40  ;;  %v2204_v39 = vld [vmem:[%s4851_s9 + $0x308] sm:$0xff]  ;;  %v2187_v40 = vld [vmem:[%s4851_s9 + $0x280] sm:$0xff] }
 0x974   : > { %3188 = vmatpush3.msra.mxu1 %v2182_v41  ;;  %3223 = vmatpush3.msra.mxu0 %v2214_v42  ;;  %v2171_v41 = vld [vmem:[%s4851_s9 + $0x200] sm:$0xff]  ;;  %v2292_v27 = vld [vmem:[%s4851_s9 + $0x5c8] sm:$0xff] }
 0x975   : > { %3189 = vmatprep.subr.mxu1 %v2197_v43  ;;  %3224 = vmatprep.subr.mxu0 %v2229_v44  ;;  %v4341_v22 = vpop.f32.mrf.mxu1  ;;  %v4355_v29 = vpop.f32.mrf.mxu0  ;;  %v2203_v42 = vld [vmem:[%s4851_s9 + $0x300] sm:$0xff]  ;;  %v2095_v44 = vmax.f32 %v1732_v37, 0.0  ;;  %v2244_v28 = vld [vmem:[%s4851_s9 + $0x448] sm:$0xff]  ;;  %v2241_v37 = vld [vmem:[%s4851_s9 + $0x430] sm:$0xff] }
 0x976   : > { %3190 = vmatpush3.msra.mxu1 %v2181_v45  ;;  %3225 = vmatpush3.msra.mxu0 %v2213_v46  ;;  %v2097_v45 = vmax.f32 %v1803_v5, 0.0  ;;  %v2266_v46 = vld [vmem:[%s4851_s9 + $0x4f8] sm:$0xff]  ;;  %v2273_v5 = vld [vmem:[%s4851_s9 + $0x530] sm:$0xff] }
 0x977   : > { %3191 = vmatprep.subr.mxu1 %v2196_v47  ;;  %3226 = vmatprep.subr.mxu0 %v2228_v48  ;;  %v1875_v34 = vpop.f32.mrf.mxu1  ;;  %v1946_v38 = vpop.f32.mrf.mxu0  ;;  %v2298_v47 = vld [vmem:[%s4851_s9 + $0x5f8] sm:$0xff] }
 0x978   : > { %3192 = vmatpush3.msra.mxu1 %v2180_v59  ;;  %3227 = vmatpush3.msra.mxu0 %v2212_v60  ;;  %v1876_v25 = vadd.f32 %v1875_v34, %v1479_v56  ;;  %v1947_v43 = vadd.f32 %v1946_v38, %v1487_v35  ;;  %v2250_v48 = vld [vmem:[%s4851_s9 + $0x478] sm:$0xff]  ;;  %v2275_v56 = vld [vmem:[%s4851_s9 + $0x540] sm:$0xff]  ;;  %v2256_v38 = vld [vmem:[%s4851_s9 + $0x4a8] sm:$0xff] }
 0x979   : > { %3193 = vmatprep.subr.mxu1 %v2195_v62  ;;  %3228 = vmatprep.subr.mxu0 %v2227_v63  ;;  %v2282_v60 = vld [vmem:[%s4851_s9 + $0x578] sm:$0xff]  ;;  %v2265_v63 = vld [vmem:[%s4851_s9 + $0x4f0] sm:$0xff] }
 0x97a   : > { %3194 = vmatpush3.msra.mxu1 %v2179_v0  ;;  %3229 = vmatpush3.msra.mxu0 %v2211_v2  ;;  %v2100_v59 = vmax.f32 %v1876_v25, 0.0  ;;  %v2102_v62 = vmax.f32 %v1947_v43, 0.0  ;;  %v2297_v0 = vld [vmem:[%s4851_s9 + $0x5f0] sm:$0xff]  ;;  %v2242_v34 = vld [vmem:[%s4851_s9 + $0x438] sm:$0xff]  ;;  %v2287_v25 = vld [vmem:[%s4851_s9 + $0x5a0] sm:$0xff] }
 0x97b   : > { %3195 = vmatprep.subr.mxu1 %v2194_v3  ;;  %3230 = vmatprep.subr.mxu0 %v2226_v4  ;;  %v2249_v2 = vld [vmem:[%s4851_s9 + $0x470] sm:$0xff]  ;;  %v2264_v4 = vld [vmem:[%s4851_s9 + $0x4e8] sm:$0xff]  ;;  %v2274_v35 = vld [vmem:[%s4851_s9 + $0x538] sm:$0xff] }
 0x97c   : > { %3196 = vmatpush3.msra.mxu1 %v2178_v6  ;;  %3231 = vmatpush3.msra.mxu0 %v2210_v7  ;;  %v2281_v3 = vld [vmem:[%s4851_s9 + $0x570] sm:$0xff]  ;;  %v2296_v6 = vld [vmem:[%s4851_s9 + $0x5e8] sm:$0xff] }
 0x97d   : > { %3197 = vmatprep.subr.mxu1 %v2193_v8  ;;  %3232 = vmatprep.subr.mxu0 %v2225_v9  ;;  %v2248_v7 = vld [vmem:[%s4851_s9 + $0x468] sm:$0xff]  ;;  %v2263_v9 = vld [vmem:[%s4851_s9 + $0x4e0] sm:$0xff] }
 0x97e   : > { %3198 = vmatpush3.msra.mxu1 %v2177_v12  ;;  %3233 = vmatpush3.msra.mxu0 %v2209_v13  ;;  %v2280_v8 = vld [vmem:[%s4851_s9 + $0x568] sm:$0xff]  ;;  %v2295_v12 = vld [vmem:[%s4851_s9 + $0x5e0] sm:$0xff] }
 0x97f   : > { %3199 = vmatprep.subr.mxu1 %v2192_v14  ;;  %3234 = vmatprep.subr.mxu0 %v2224_v15  ;;  %v2247_v13 = vld [vmem:[%s4851_s9 + $0x460] sm:$0xff]  ;;  %v2262_v15 = vld [vmem:[%s4851_s9 + $0x4d8] sm:$0xff]  ;;  %v4551_v43 = vpop.f32.mrf.mxu1 }
 0x980   : > { %3200 = vmatpush3.msra.mxu1 %v2176_v16  ;;  %3235 = vmatpush3.msra.mxu0 %v2208_v17  ;;  %v2279_v14 = vld [vmem:[%s4851_s9 + $0x560] sm:$0xff]  ;;  %v2294_v16 = vld [vmem:[%s4851_s9 + $0x5d8] sm:$0xff] }
 0x981   : > { %3201 = vmatprep.subr.mxu1 %v2191_v18  ;;  %3236 = vmatprep.subr.mxu0 %v2223_v19  ;;  %v2246_v17 = vld [vmem:[%s4851_s9 + $0x458] sm:$0xff]  ;;  %v2261_v19 = vld [vmem:[%s4851_s9 + $0x4d0] sm:$0xff] }
 0x982   : > { %3202 = vmatpush3.msra.mxu1 %v2175_v20  ;;  %3237 = vmatpush3.msra.mxu0 %v2207_v21  ;;  %v2278_v18 = vld [vmem:[%s4851_s9 + $0x558] sm:$0xff]  ;;  %v2293_v20 = vld [vmem:[%s4851_s9 + $0x5d0] sm:$0xff] }
 0x983   : > { %3203 = vmatprep.subr.mxu1 %v2190_v23  ;;  %3238 = vmatprep.subr.mxu0 %v2222_v26  ;;  %v2245_v21 = vld [vmem:[%s4851_s9 + $0x450] sm:$0xff]  ;;  %v2260_v26 = vld [vmem:[%s4851_s9 + $0x4c8] sm:$0xff] }
 0x984   : > { %3204 = vmatpush3.msra.mxu1 %v2174_v30  ;;  %3239 = vmatpush3.msra.mxu0 %v2206_v31  ;;  %v2277_v23 = vld [vmem:[%s4851_s9 + $0x550] sm:$0xff]  ;;  %v2276_v30 = vld [vmem:[%s4851_s9 + $0x548] sm:$0xff]  ;;  %v2259_v31 = vld [vmem:[%s4851_s9 + $0x4c0] sm:$0xff] }
 0x985   : > { %3205 = vmatprep.subr.mxu1 %v2189_v1  ;;  %3240 = vmatprep.subr.mxu0 %v2221_v52  ;;  %v2291_v1 = vld [vmem:[%s4851_s9 + $0x5c0] sm:$0xff] }
 0x986   : > { %3206 = vmatpush3.msra.mxu1 %v2173_v32  ;;  %3241 = vmatpush3.msra.mxu0 %v2205_v33  ;;  %v2243_v52 = vld [vmem:[%s4851_s9 + $0x440] sm:$0xff]  ;;  %v2258_v32 = vld [vmem:[%s4851_s9 + $0x4b8] sm:$0xff] }
 0x987   : > { %3207 = vmatprep.subr.mxu1 %v2188_v57  ;;  %3242 = vmatprep.subr.mxu0 %v2220_v36  ;;  %v2290_v33 = vld [vmem:[%s4851_s9 + $0x5b8] sm:$0xff]  ;;  %v2257_v57 = vld [vmem:[%s4851_s9 + $0x4b0] sm:$0xff] }
 0x988   : > { %3208 = vmatpush3.msra.mxu1 %v2172_v58  ;;  %3243 = vmatpush3.msra.mxu0 %v2204_v39  ;;  %v2289_v36 = vld [vmem:[%s4851_s9 + $0x5b0] sm:$0xff]  ;;  %v2288_v58 = vld [vmem:[%s4851_s9 + $0x5a8] sm:$0xff] }
 0x989   : > { %3209 = vmatprep.subr.mxu1 %v2187_v40  ;;  %3244 = vmatprep.subr.mxu0 %v2219_v24  ;;  %v2240_v39 = vld [vmem:[%s4851_s9 + $0x428] sm:$0xff]  ;;  %v2255_v24 = vld [vmem:[%s4851_s9 + $0x4a0] sm:$0xff] }
 0x98a   : > { %3210 = vmatpush3.msra.mxu1 %v2171_v41  ;;  %3245 = vmatpush3.msra.mxu0 %v2203_v42  ;;  %v2272_v40 = vld [vmem:[%s4851_s9 + $0x528] sm:$0xff]  ;;  %v2239_v41 = vld [vmem:[%s4851_s9 + $0x420] sm:$0xff] }
 0x98b   : > { %2575 = vmatmul.mubr.f32.vlgmr.msra.gmra.mxu1 %v2095_v44  ;;  %2645 = vmatmul.mubr.f32.vlgmr.msra.gmra.mxu0 %v2097_v45  ;;  %v2271_v42 = vld [vmem:[%s4851_s9 + $0x520] sm:$0xff]  ;;  %v2254_v44 = vld [vmem:[%s4851_s9 + $0x498] sm:$0xff] }
 0x98c   : > { %3249 = vmatprep.subr.mxu1 %v2266_v46  ;;  %3284 = vmatprep.subr.mxu0 %v2298_v47  ;;  %v2286_v45 = vld [vmem:[%s4851_s9 + $0x598] sm:$0xff]  ;;  %v1475_v46 = vrot.slane %v4157_v50, %v1442_v54  ;;  %v1483_v47 = vrot.slane %v4157_v50, %v1450_v55  ;;  %v2253_v54 = vld [vmem:[%s4851_s9 + $0x490] sm:$0xff] }
 0x98d   : > { %3250 = vmatpush3.msra.mxu1 %v2250_v48  ;;  %2714 = vmatprep.mubr.f32.mxu1 %v2100_v59  ;;  %v4565_v48 = vpop.f32.mrf.mxu0  ;;  %v2238_v59 = vld [vmem:[%s4851_s9 + $0x418] sm:$0xff]  ;;  %v2285_v55 = vld [vmem:[%s4851_s9 + $0x590] sm:$0xff] }
 0x98e   : > { %3285 = vmatpush3.msra.mxu0 %v2282_v60  ;;  %2784 = vmatprep.mubr.f32.mxu0 %v2102_v62  ;;  %v2270_v60 = vld [vmem:[%s4851_s9 + $0x518] sm:$0xff]  ;;  %v1495_v62 = vrot.slane %v4157_v50, %v1462_v10  ;;  %v2252_v10 = vld [vmem:[%s4851_s9 + $0x488] sm:$0xff] }
 0x98f   : > { %3251 = vmatprep.subr.mxu1 %v2265_v63  ;;  %3286 = vmatprep.subr.mxu0 %v2297_v0  ;;  %v2237_v63 = vld [vmem:[%s4851_s9 + $0x410] sm:$0xff] }
 0x990   : > { %3252 = vmatpush3.msra.mxu1 %v2249_v2  ;;  %3287 = vmatpush3.msra.mxu0 %v2281_v3  ;;  %v2269_v0 = vld [vmem:[%s4851_s9 + $0x510] sm:$0xff]  ;;  %v2017_v2 = vpop.f32.mrf.mxu1  ;;  %v1503_v3 = vrot.slane %v4157_v50, %v1470_v11  ;;  %v2268_v50 = vld [vmem:[%s4851_s9 + $0x508] sm:$0xff]  ;;  %v2251_v11 = vld [vmem:[%s4851_s9 + $0x480] sm:$0xff] }
 0x991   : > { %3253 = vmatprep.subr.mxu1 %v2264_v4  ;;  %3288 = vmatprep.subr.mxu0 %v2296_v6  ;;  %v2284_v4 = vld [vmem:[%s4851_s9 + $0x588] sm:$0xff]  ;;  %v1874_v6 = vadd.f32 %v4341_v22, %v1475_v46  ;;  %v2283_v22 = vld [vmem:[%s4851_s9 + $0x580] sm:$0xff] }
 0x992   : > { %3254 = vmatpush3.msra.mxu1 %v2248_v7  ;;  %3289 = vmatpush3.msra.mxu0 %v2280_v8  ;;  %v1945_v7 = vadd.f32 %v4355_v29, %v1483_v47  ;;  %v2088_v8 = vpop.f32.mrf.mxu0  ;;  %v2018_v29 = vadd.f32 %v2017_v2, %v1495_v62  ;;  %v2339_v46 = vld [vmem:[%s4851_s9 + $0x740] sm:$0xff]  ;;  %v2322_v47 = vld [vmem:[%s4851_s9 + $0x6b8] sm:$0xff]  ;;  %v2353_v62 = vld [vmem:[%s4851_s9 + $0x7b0] sm:$0xff] }
 0x993   : > { %3255 = vmatprep.subr.mxu1 %v2263_v9  ;;  %3290 = vmatprep.subr.mxu0 %v2295_v12  ;;  %v2235_v9 = vld [vmem:[%s4851_s9 + $0x400] sm:$0xff]  ;;  %v2320_v2 = vld [vmem:[%s4851_s9 + $0x6a8] sm:$0xff] }
 0x994   : > { %3256 = vmatpush3.msra.mxu1 %v2247_v13  ;;  %3291 = vmatpush3.msra.mxu0 %v2279_v14  ;;  %v2267_v12 = vld [vmem:[%s4851_s9 + $0x500] sm:$0xff]  ;;  %v2089_v13 = vadd.f32 %v2088_v8, %v1503_v3  ;;  %v2099_v14 = vmax.f32 %v1874_v6, 0.0  ;;  %v2352_v3 = vld [vmem:[%s4851_s9 + $0x7a8] sm:$0xff] }
 0x995   : > { %3257 = vmatprep.subr.mxu1 %v2262_v15  ;;  %3292 = vmatprep.subr.mxu0 %v2294_v16  ;;  %v2101_v15 = vmax.f32 %v1945_v7, 0.0  ;;  %v2330_v16 = vld [vmem:[%s4851_s9 + $0x6f8] sm:$0xff]  ;;  %v2319_v6 = vld [vmem:[%s4851_s9 + $0x6a0] sm:$0xff] }
 0x996   : > { %3258 = vmatpush3.msra.mxu1 %v2246_v17  ;;  %3293 = vmatpush3.msra.mxu0 %v2278_v18  ;;  %v2362_v17 = vld [vmem:[%s4851_s9 + $0x7f8] sm:$0xff]  ;;  %v2351_v7 = vld [vmem:[%s4851_s9 + $0x7a0] sm:$0xff] }
 0x997   : > { %3259 = vmatprep.subr.mxu1 %v2261_v19  ;;  %3294 = vmatprep.subr.mxu0 %v2293_v20  ;;  %v2314_v18 = vld [vmem:[%s4851_s9 + $0x678] sm:$0xff]  ;;  %v2104_v19 = vmax.f32 %v2018_v29, 0.0  ;;  %v2303_v8 = vld [vmem:[%s4851_s9 + $0x620] sm:$0xff] }
 0x998   : > { %3260 = vmatpush3.msra.mxu1 %v2245_v21  ;;  %3295 = vmatpush3.msra.mxu0 %v2277_v23  ;;  %v2346_v20 = vld [vmem:[%s4851_s9 + $0x778] sm:$0xff]  ;;  %v2106_v21 = vmax.f32 %v2089_v13, 0.0  ;;  %v2329_v23 = vld [vmem:[%s4851_s9 + $0x6f0] sm:$0xff] }
 0x999   : > { %3261 = vmatprep.subr.mxu1 %v2260_v26  ;;  %3296 = vmatprep.subr.mxu0 %v2292_v27  ;;  %v2361_v26 = vld [vmem:[%s4851_s9 + $0x7f0] sm:$0xff]  ;;  %v2334_v29 = vld [vmem:[%s4851_s9 + $0x718] sm:$0xff] }
 0x99a   : > { %3262 = vmatpush3.msra.mxu1 %v2244_v28  ;;  %3297 = vmatpush3.msra.mxu0 %v2276_v30  ;;  %v2313_v27 = vld [vmem:[%s4851_s9 + $0x670] sm:$0xff]  ;;  %v2328_v30 = vld [vmem:[%s4851_s9 + $0x6e8] sm:$0xff] }
 0x99b   : > { %3263 = vmatprep.subr.mxu1 %v2259_v31  ;;  %3298 = vmatprep.subr.mxu0 %v2291_v1  ;;  %v2345_v28 = vld [vmem:[%s4851_s9 + $0x770] sm:$0xff]  ;;  %v2360_v31 = vld [vmem:[%s4851_s9 + $0x7e8] sm:$0xff] }
 0x99c   : > { %3264 = vmatpush3.msra.mxu1 %v2243_v52  ;;  %3299 = vmatpush3.msra.mxu0 %v2275_v56  ;;  %v2312_v1 = vld [vmem:[%s4851_s9 + $0x668] sm:$0xff]  ;;  %v2327_v56 = vld [vmem:[%s4851_s9 + $0x6e0] sm:$0xff]  ;;  %v2301_v13 = vld [vmem:[%s4851_s9 + $0x610] sm:$0xff] }
 0x99d   : > { %3265 = vmatprep.subr.mxu1 %v2258_v32  ;;  %3300 = vmatprep.subr.mxu0 %v2290_v33  ;;  %v2344_v52 = vld [vmem:[%s4851_s9 + $0x768] sm:$0xff]  ;;  %v2359_v32 = vld [vmem:[%s4851_s9 + $0x7e0] sm:$0xff] }
 0x99e   : > { %3266 = vmatpush3.msra.mxu1 %v2242_v34  ;;  %3301 = vmatpush3.msra.mxu0 %v2274_v35  ;;  %v2311_v33 = vld [vmem:[%s4851_s9 + $0x660] sm:$0xff]  ;;  %v2326_v35 = vld [vmem:[%s4851_s9 + $0x6d8] sm:$0xff] }
 0x99f   : > { %3267 = vmatprep.subr.mxu1 %v2257_v57  ;;  %3302 = vmatprep.subr.mxu0 %v2289_v36  ;;  %v2343_v34 = vld [vmem:[%s4851_s9 + $0x760] sm:$0xff]  ;;  %v2358_v57 = vld [vmem:[%s4851_s9 + $0x7d8] sm:$0xff] }
 0x9a0   : > { %3268 = vmatpush3.msra.mxu1 %v2241_v37  ;;  %3303 = vmatpush3.msra.mxu0 %v2273_v5  ;;  %v2310_v36 = vld [vmem:[%s4851_s9 + $0x658] sm:$0xff]  ;;  %v2325_v5 = vld [vmem:[%s4851_s9 + $0x6d0] sm:$0xff] }
 0x9a1   : > { %3269 = vmatprep.subr.mxu1 %v2256_v38  ;;  %3304 = vmatprep.subr.mxu0 %v2288_v58  ;;  %v2342_v37 = vld [vmem:[%s4851_s9 + $0x758] sm:$0xff]  ;;  %v2357_v38 = vld [vmem:[%s4851_s9 + $0x7d0] sm:$0xff] }
 0x9a2   : > { %3270 = vmatpush3.msra.mxu1 %v2240_v39  ;;  %3305 = vmatpush3.msra.mxu0 %v2272_v40  ;;  %v2309_v58 = vld [vmem:[%s4851_s9 + $0x650] sm:$0xff]  ;;  %v2324_v40 = vld [vmem:[%s4851_s9 + $0x6c8] sm:$0xff] }
 0x9a3   : > { %3271 = vmatprep.subr.mxu1 %v2255_v24  ;;  %3306 = vmatprep.subr.mxu0 %v2287_v25  ;;  %v2341_v39 = vld [vmem:[%s4851_s9 + $0x750] sm:$0xff]  ;;  %v2356_v24 = vld [vmem:[%s4851_s9 + $0x7c8] sm:$0xff] }
 0x9a4   : > { %3272 = vmatpush3.msra.mxu1 %v2239_v41  ;;  %3307 = vmatpush3.msra.mxu0 %v2271_v42  ;;  %v2308_v25 = vld [vmem:[%s4851_s9 + $0x648] sm:$0xff]  ;;  %v2323_v42 = vld [vmem:[%s4851_s9 + $0x6c0] sm:$0xff] }
 0x9a5   : > { %3273 = vmatprep.subr.mxu1 %v2254_v44  ;;  %3308 = vmatprep.subr.mxu0 %v2286_v45  ;;  %v2340_v41 = vld [vmem:[%s4851_s9 + $0x748] sm:$0xff]  ;;  %v2355_v44 = vld [vmem:[%s4851_s9 + $0x7c0] sm:$0xff] }
 0x9a6   : > { %3274 = vmatpush3.msra.mxu1 %v2238_v59  ;;  %3309 = vmatpush3.msra.mxu0 %v2270_v60  ;;  %v2307_v45 = vld [vmem:[%s4851_s9 + $0x640] sm:$0xff]  ;;  %v2354_v59 = vld [vmem:[%s4851_s9 + $0x7b8] sm:$0xff] }
 0x9a7   : > { %3275 = vmatprep.subr.mxu1 %v2253_v54  ;;  %3310 = vmatprep.subr.mxu0 %v2285_v55  ;;  %v2306_v60 = vld [vmem:[%s4851_s9 + $0x638] sm:$0xff]  ;;  %v2321_v55 = vld [vmem:[%s4851_s9 + $0x6b0] sm:$0xff] }
 0x9a8   : > { %3276 = vmatpush3.msra.mxu1 %v2237_v63  ;;  %3311 = vmatpush3.msra.mxu0 %v2269_v0  ;;  %v2338_v54 = vld [vmem:[%s4851_s9 + $0x738] sm:$0xff]  ;;  %v2305_v63 = vld [vmem:[%s4851_s9 + $0x630] sm:$0xff] }
 0x9a9   : > { %3277 = vmatprep.subr.mxu1 %v2252_v10  ;;  %3312 = vmatprep.subr.mxu0 %v2284_v4  ;;  %v2337_v0 = vld [vmem:[%s4851_s9 + $0x730] sm:$0xff]  ;;  %v2304_v10 = vld [vmem:[%s4851_s9 + $0x628] sm:$0xff] }
 0x9aa   : > { %3278 = vmatpush3.msra.mxu1 %v2236_v49  ;;  %3313 = vmatpush3.msra.mxu0 %v2268_v50  ;;  %v2336_v4 = vld [vmem:[%s4851_s9 + $0x728] sm:$0xff]  ;;  %v2335_v49 = vld [vmem:[%s4851_s9 + $0x720] sm:$0xff]  ;;  %v2318_v50 = vld [vmem:[%s4851_s9 + $0x698] sm:$0xff] }
 0x9ab   : > { %3279 = vmatprep.subr.mxu1 %v2251_v11  ;;  %3314 = vmatprep.subr.mxu0 %v2283_v22  ;;  %v2350_v11 = vld [vmem:[%s4851_s9 + $0x798] sm:$0xff] }
 0x9ac   : > { %3280 = vmatpush3.msra.mxu1 %v2235_v9  ;;  %3315 = vmatpush3.msra.mxu0 %v2267_v12  ;;  %v2302_v22 = vld [vmem:[%s4851_s9 + $0x618] sm:$0xff]  ;;  %v2317_v9 = vld [vmem:[%s4851_s9 + $0x690] sm:$0xff] }
 0x9ad   : > { %2715 = vmatmul.mubr.f32.vlgmr.msra.gmra.mxu1 %v2099_v14  ;;  %2785 = vmatmul.mubr.f32.vlgmr.msra.gmra.mxu0 %v2101_v15  ;;  %v2349_v12 = vld [vmem:[%s4851_s9 + $0x790] sm:$0xff]  ;;  %v2316_v15 = vld [vmem:[%s4851_s9 + $0x688] sm:$0xff] }
 0x9ae   : > { %3319 = vmatprep.subr.mxu1 %v2330_v16  ;;  %3354 = vmatprep.subr.mxu0 %v2362_v17  ;;  %v2333_v14 = vld [vmem:[%s4851_s9 + $0x710] sm:$0xff]  ;;  %v2348_v16 = vld [vmem:[%s4851_s9 + $0x788] sm:$0xff]  ;;  %v2016_v17 = vadd.f32 %v4551_v43, %v4162_v51  ;;  %v2347_v51 = vld [vmem:[%s4851_s9 + $0x780] sm:$0xff] }
 0x9af   : > { %3320 = vmatpush3.msra.mxu1 %v2314_v18  ;;  %2854 = vmatprep.mubr.f32.mxu1 %v2104_v19  ;;  %v2087_v18 = vadd.f32 %v4565_v48, %v4168_v53  ;;  %v2300_v19 = vld [vmem:[%s4851_s9 + $0x608] sm:$0xff]  ;;  %v2299_v53 = vld [vmem:[%s4851_s9 + $0x600] sm:$0xff] }
 0x9b0   : > { %3355 = vmatpush3.msra.mxu0 %v2346_v20  ;;  %2924 = vmatprep.mubr.f32.mxu0 %v2106_v21  ;;  %v2332_v20 = vld [vmem:[%s4851_s9 + $0x708] sm:$0xff]  ;;  %v2315_v21 = vld [vmem:[%s4851_s9 + $0x680] sm:$0xff]  ;;  %v2103_v48 = vmax.f32 %v2016_v17, 0.0 }
 0x9b1   : > { %3321 = vmatprep.subr.mxu1 %v2329_v23  ;;  %3356 = vmatprep.subr.mxu0 %v2361_v26  ;;  %v2331_v43 = vld [vmem:[%s4851_s9 + $0x700] sm:$0xff]  ;;  %v2105_v23 = vmax.f32 %v2087_v18, 0.0 }
 0x9b2   : > { %3322 = vmatpush3.msra.mxu1 %v2313_v27  ;;  %3357 = vmatpush3.msra.mxu0 %v2345_v28 }
 0x9b3   : > { %3323 = vmatprep.subr.mxu1 %v2328_v30  ;;  %3358 = vmatprep.subr.mxu0 %v2360_v31 }
 0x9b4   : > { %3324 = vmatpush3.msra.mxu1 %v2312_v1  ;;  %3359 = vmatpush3.msra.mxu0 %v2344_v52  ;;  %v3076_v1 = vld [vmem:[%s4852_s10] ss:$0 sm:$0xff] }
 0x9b5   : > { %3325 = vmatprep.subr.mxu1 %v2327_v56  ;;  %3360 = vmatprep.subr.mxu0 %v2359_v32 }
 0x9b6   : > { %3326 = vmatpush3.msra.mxu1 %v2311_v33  ;;  %3361 = vmatpush3.msra.mxu0 %v2343_v34 }
 0x9b7   : > { %3327 = vmatprep.subr.mxu1 %v2326_v35  ;;  %3362 = vmatprep.subr.mxu0 %v2358_v57 }
 0x9b8   : > { %3328 = vmatpush3.msra.mxu1 %v2310_v36  ;;  %3363 = vmatpush3.msra.mxu0 %v2342_v37 }
 0x9b9   : > { %3329 = vmatprep.subr.mxu1 %v2325_v5  ;;  %3364 = vmatprep.subr.mxu0 %v2357_v38 }
 0x9ba   : > { %3330 = vmatpush3.msra.mxu1 %v2309_v58  ;;  %3365 = vmatpush3.msra.mxu0 %v2341_v39 }
 0x9bb   : > { %3331 = vmatprep.subr.mxu1 %v2324_v40  ;;  %3366 = vmatprep.subr.mxu0 %v2356_v24 }
 0x9bc   : > { %3332 = vmatpush3.msra.mxu1 %v2308_v25  ;;  %3367 = vmatpush3.msra.mxu0 %v2340_v41 }
 0x9bd   : > { %3333 = vmatprep.subr.mxu1 %v2323_v42  ;;  %3368 = vmatprep.subr.mxu0 %v2355_v44 }
 0x9be   : > { %3334 = vmatpush3.msra.mxu1 %v2307_v45  ;;  %3369 = vmatpush3.msra.mxu0 %v2339_v46 }
 0x9bf   : > { %3335 = vmatprep.subr.mxu1 %v2322_v47  ;;  %3370 = vmatprep.subr.mxu0 %v2354_v59 }
 0x9c0   : > { %3336 = vmatpush3.msra.mxu1 %v2306_v60  ;;  %3371 = vmatpush3.msra.mxu0 %v2338_v54 }
 0x9c1   : > { %3337 = vmatprep.subr.mxu1 %v2321_v55  ;;  %3372 = vmatprep.subr.mxu0 %v2353_v62 }
 0x9c2   : > { %3338 = vmatpush3.msra.mxu1 %v2305_v63  ;;  %3373 = vmatpush3.msra.mxu0 %v2337_v0 }
 0x9c3   : > { %3339 = vmatprep.subr.mxu1 %v2320_v2  ;;  %3374 = vmatprep.subr.mxu0 %v2352_v3 }
 0x9c4   : > { %3340 = vmatpush3.msra.mxu1 %v2304_v10  ;;  %3375 = vmatpush3.msra.mxu0 %v2336_v4 }
 0x9c5   : > { %3341 = vmatprep.subr.mxu1 %v2319_v6  ;;  %3376 = vmatprep.subr.mxu0 %v2351_v7 }
 0x9c6   : > { %3342 = vmatpush3.msra.mxu1 %v2303_v8  ;;  %3377 = vmatpush3.msra.mxu0 %v2335_v49 }
 0x9c7   : > { %3343 = vmatprep.subr.mxu1 %v2318_v50  ;;  %3378 = vmatprep.subr.mxu0 %v2350_v11  ;;  %v3077_v11 = vld [vmem:[%s4853_s11] ss:$0 sm:$0xff] }
 0x9c8   : > { %3344 = vmatpush3.msra.mxu1 %v2302_v22  ;;  %3379 = vmatpush3.msra.mxu0 %v2334_v29  ;;  %v3078_v22 = vld [vmem:[%s4854_s12] ss:$0 sm:$0xff] }
 0x9c9   : > { %3345 = vmatprep.subr.mxu1 %v2317_v9  ;;  %3380 = vmatprep.subr.mxu0 %v2349_v12 }
 0x9ca   : > { %3346 = vmatpush3.msra.mxu1 %v2301_v13  ;;  %3381 = vmatpush3.msra.mxu0 %v2333_v14 }
 0x9cb   : > { %3347 = vmatprep.subr.mxu1 %v2316_v15  ;;  %3382 = vmatprep.subr.mxu0 %v2348_v16 }
 0x9cc   : > { %3348 = vmatpush3.msra.mxu1 %v2300_v19  ;;  %3383 = vmatpush3.msra.mxu0 %v2332_v20 }
 0x9cd   : > { %3349 = vmatprep.subr.mxu1 %v2315_v21  ;;  %3384 = vmatprep.subr.mxu0 %v2347_v51  ;;  %v3079_v51 = vld [vmem:[%s4855_s13] ss:$0 sm:$0xff] }
 0x9ce   : > { %3350 = vmatpush3.msra.mxu1 %v2299_v53  ;;  %3385 = vmatpush3.msra.mxu0 %v2331_v43  ;;  %v3080_v43 = vld [vmem:[%s4856_s14] ss:$0 sm:$0xff] }
 0x9cf   : > { %2855 = vmatmul.mubr.f32.vlgmr.msra.gmra.mxu1 %v2103_v48  ;;  %2925 = vmatmul.mubr.f32.vlgmr.msra.gmra.mxu0 %v2105_v23 }
 0xa2a   : > { %v3141_v26 = vpop.f32.mrf.mxu1  ;;  %v3176_v28 = vpop.f32.mrf.mxu0 }
 0xa2c   : > { %v3142_v27 = vpop.f32.mrf.mxu1  ;;  %v3177_v52 = vpop.f32.mrf.mxu0 }
 0xa2d   : > { %v3143_v31 = vadd.f32 %v3142_v27, %v3141_v26  ;;  %v3178_v35 = vadd.f32 %v3177_v52, %v3176_v28 }
 0xa2f   : > { %v2437_v32 = vadd.f32 %v3143_v31, %v3076_v1 }
 0xa31   : > { %v2507_v36 = vadd.f32 %v3178_v35, %v2437_v32 }
 0xa4b   : > { %v3211_v30 = vpop.f32.mrf.mxu1  ;;  %v3246_v33 = vpop.f32.mrf.mxu0 }
 0xa4d   : > { %v3212_v56 = vpop.f32.mrf.mxu1  ;;  %v3247_v37 = vpop.f32.mrf.mxu0 }
 0xa4e   : > { %v3213_v57 = vadd.f32 %v3212_v56, %v3211_v30  ;;  %v3248_v39 = vadd.f32 %v3247_v37, %v3246_v33 }
 0xa50   : > { %v2577_v38 = vadd.f32 %v3213_v57, %v2507_v36 }
 0xa52   : > { %v2647_v24 = vadd.f32 %v3248_v39, %v2577_v38 }
 0xa6d   : > { %v3281_v34 = vpop.f32.mrf.mxu1  ;;  %v3316_v58 = vpop.f32.mrf.mxu0 }
 0xa6f   : > { %v3282_v5 = vpop.f32.mrf.mxu1  ;;  %v3317_v25 = vpop.f32.mrf.mxu0 }
 0xa70   : > { %v3283_v40 = vadd.f32 %v3282_v5, %v3281_v34  ;;  %v3318_v45 = vadd.f32 %v3317_v25, %v3316_v58 }
 0xa72   : > { %v2717_v41 = vadd.f32 %v3283_v40, %v2647_v24 }
 0xa74   : > { %v2787_v59 = vadd.f32 %v3318_v45, %v2717_v41 }
 0xa8f   : > { %v3351_v42 = vpop.f32.mrf.mxu1  ;;  %v3386_v44 = vpop.f32.mrf.mxu0 }
 0xa91   : > { %v3352_v46 = vpop.f32.mrf.mxu1  ;;  %v3387_v47 = vpop.f32.mrf.mxu0 }
 0xa92   : > { %v3353_v60 = vadd.f32 %v3352_v46, %v3351_v42  ;;  %v3388_v55 = vadd.f32 %v3387_v47, %v3386_v44 }
 0xa94   : > { %v2857_v54 = vadd.f32 %v3353_v60, %v2787_v59 }
 0xa96   : > { %v2927_v62 = vadd.f32 %v3388_v55, %v2857_v54 }
 0xa98   : > { %v2930_v63 = vadd.f32 %v2927_v62, %v3791_v61 }
 0xa9a   : > { %v2933_v0 = vsel %vm502_vm1, %v2930_v63, 0.0 }
 0xa9b   : > { %2934 = vadd.xlane.f32.xlu0 %v2933_v0 }
 0xb24   : > { %v2935_v2 = vpop.xlane.xlu0 %2934 }
 0xb25   : > { %v2936_v3 = vmul.f32 0.03125, %v2935_v2 }
 0xb27   : > { %v2937_v10 = vsub.f32 %v2930_v63, %v2936_v3 }
 0xb29   : > { %v2938_v4 = vmul.f32 %v2937_v10, %v2937_v10 }
 0xb2b   : > { %v2939_v6 = vsel %vm502_vm1, %v2938_v4, 0.0 }
 0xb2c   : > { %2940 = vadd.xlane.f32.xlu0 %v2939_v6 }
 0xbb5   : > { %v2941_v7 = vpop.xlane.xlu0 %2940 }
 0xbb6   : > { %v2942_v8 = vmul.f32 0.03125, %v2941_v7 }
 0xbb8   : > { %v2943_v49 = vadd.f32 1e-05, %v2942_v8 }
 0xbba   : > { %3493 = vrsqrt.f32 %v2943_v49 }
 0xbc7   : > { %v3494_v50 = vpop.eup %3493 }
 0xbc8   : > { %v2945_v61 = vmul.f32 %v3494_v50, %v2937_v10 }
 0xbca   : > { %v2952_v29 = vmul.f32 %v3077_v11, %v2945_v61 }
 0xbcc   : > { %v2959_v9 = vadd.f32 %v3078_v22, %v2952_v29 }
 0xbce   : > { %v2962_v12 = vsel %vm502_vm1, %v2959_v9, 0.0 }
 0xbcf   : > { %2963 = vadd.xlane.f32.xlu1 %v2962_v12 }
 0xc58   : > { %v2964_v13 = vpop.xlane.xlu1 %2963 }
 0xc59   : > { %v2965_v14 = vmul.f32 0.03125, %v2964_v13 }
 0xc5b   : > { %v2966_v15 = vsub.f32 %v2959_v9, %v2965_v14 }
 0xc5d   : > { %v2967_v16 = vmul.f32 %v2966_v15, %v2966_v15 }
 0xc5f   : > { %v2968_v17 = vsel %vm502_vm1, %v2967_v16, 0.0 }
 0xc60   : > { %2969 = vadd.xlane.f32.xlu0 %v2968_v17 }
 0xce9   : > { %v2970_v18 = vpop.xlane.xlu0 %2969 }
 0xcea   : > { %v2971_v19 = vmul.f32 0.03125, %v2970_v18 }
 0xcec   : > { %v2972_v20 = vadd.f32 1e-05, %v2971_v19 }
 0xcee   : > { %3495 = vrsqrt.f32 %v2972_v20 }
 0xcfb   : > { %v3496_v21 = vpop.eup %3495 }
 0xcfc   : > { %v2974_v53 = vmul.f32 %v3496_v21, %v2966_v15 }
 0xcfe   : > { %v2981_v48 = vmul.f32 %v3079_v51, %v2974_v53 }
 0xd00   : > { %v2988_v23 = vadd.f32 %v3080_v43, %v2981_v48 }
 0xd02   : > { %2989 = vst.msk [vmem:[%s489_s21] sm:$0xff] %vm502_vm1, %v2988_v23 }
 0xd03 PF: > { %s25_s18 = sadd.s32 1, %s3503_s18  }
 0xd04   : > { %p22_p4 = scmp.ge.s32.totalorder %s25_s18, 4  }
 0xd06   :  { %24 = sbr.rel (!%p22_p4) target bundleno = 1 (0x1), region = 110 }

// kernel: transformer_fcst_forward.8
= control target key start
LH: loop header
LB: loop body
LE: loop exit
PB: predicated region body
PF: predicated region fallthrough
CT: control target
= control target key end

     0   :  { %s6330_s0 = inlined_call_operand.vmem [shape: f32[2,8,32], index: 0, kind: input, shape index: {}]   ;;  %s6331_s1 = inlined_call_operand.vmem [shape: f32[2,8,32], index: 1, kind: input, shape index: {}]   ;;  %s6332_s2 = inlined_call_operand.vmem [shape: f32[32,96], index: 2, kind: input, shape index: {}]   ;;  %s6333_s3 = inlined_call_operand.vmem [shape: f32[1,96], index: 3, kind: input, shape index: {}]   ;;  %s6334_s4 = inlined_call_operand.vmem [shape: f32[32,32], index: 4, kind: input, shape index: {}]   ;;  %s6335_s5 = inlined_call_operand.vmem [shape: f32[1,32], index: 5, kind: input, shape index: {}]   ;;  %s6336_s6 = inlined_call_operand.vmem [shape: f32[1,32], index: 6, kind: input, shape index: {}]   ;;  %s6337_s7 = inlined_call_operand.vmem [shape: f32[1,32], index: 7, kind: input, shape index: {}]   ;;  %s6338_s8 = inlined_call_operand.vmem [shape: f32[32,32], index: 8, kind: input, shape index: {}]   ;;  %s6339_s9 = inlined_call_operand.vmem [shape: f32[1,32], index: 9, kind: input, shape index: {}]   ;;  %s6340_s10 = inlined_call_operand.vmem [shape: f32[32,64], index: 10, kind: input, shape index: {}]   ;;  %s6341_s11 = inlined_call_operand.vmem [shape: f32[1,64], index: 11, kind: input, shape index: {}]   ;;  %s6342_s12 = inlined_call_operand.vmem [shape: f32[32,32], index: 12, kind: input, shape index: {}]   ;;  %s6343_s13 = inlined_call_operand.vmem [shape: f32[1,32], index: 13, kind: input, shape index: {}]   ;;  %s6344_s14 = inlined_call_operand.vmem [shape: f32[1,32], index: 14, kind: input, shape index: {}]   ;;  %s6345_s15 = inlined_call_operand.vmem [shape: f32[1,32], index: 15, kind: input, shape index: {}]   ;;  %s6346_s16 = inlined_call_operand.vmem [shape: f32[32,2048], index: 16, kind: input, shape index: {}]   ;;  %s6347_s17 = inlined_call_operand.vmem [shape: f32[1,2048], index: 17, kind: input, shape index: {}]   ;;  %s6348_s18 = inlined_call_operand.vmem [shape: f32[2048,32], index: 18, kind: input, shape index: {}]   ;;  %s6349_s19 = inlined_call_operand.vmem [shape: f32[1,32], index: 19, kind: input, shape index: {}]   ;;  %s6350_s20 = inlined_call_operand.vmem [shape: f32[1,32], index: 20, kind: input, shape index: {}]   ;;  %s6351_s21 = inlined_call_operand.vmem [shape: f32[1,32], index: 21, kind: input, shape index: {}]   ;;  %s6352_s22 = inlined_call_operand.vmem [shape: f32[2,8,32], index: 22, kind: output, shape index: {}]  }
   0x1   :  { %6366 = sst [smem:[#allocation2_spill]] %s6330_s0 }
   0x2   :  { %6367 = sst [smem:[#allocation3_spill]] %s6331_s1 }
   0x3   :  { %6368 = sst [smem:[#allocation4_spill]] %s6332_s2 }
   0x4   :  { %6369 = sst [smem:[#allocation5_spill]] %s6333_s3  ;;  %s4934_s3 = smov 0  }
   0x5   :  { %6370 = sst [smem:[#allocation6_spill]] %s6334_s4 }
   0x6   :  { %6371 = sst [smem:[#allocation7_spill]] %s6335_s5 }
   0x7   :  { %6372 = sst [smem:[#allocation8_spill]] %s6336_s6 }
   0x8 LB: > { %s4202_s28 = sadd.s32 4294967295, %s4801_s3   ;;  %p4206_p0 = scmp.ge.s32.totalorder %s4801_s3, 1  ;;  %s4801_s3 = sphi %s4934_s3, %s32_s3  }
   0x9   : > { %p620_p1 = scmp.lt.s32.totalorder %s4801_s3, 3 }
   0xb   : > { %p621_p2 = pnand %p4206_p0, %p620_p1 }
   0xc   : > { %s6373_s4 = sld [smem:[#allocation4_spill]] (!%p621_p2)  ;;  %p684_p3 = scmp.lt.s32.totalorder (!%p621_p2), %s4202_s28, 1 }
   0xd   : > { %624 = sbr.rel (%p621_p2) target bundleno = 4673 (0x1241), region = 108  ;;  %s6374_s27 = sld [smem:[#allocation2_spill]] (!%p621_p2) }
   0xe   : > { %s6375_s0 = sld [smem:[#allocation5_spill]] (!%p621_p2)  ;;  %s4805_s23 = smov (!%p621_p2), 64  }
   0xf   : > { %s6361_s1 = smov (!%p621_p2), 96   ;;  %s6355_s5 = smov (!%p621_p2), 88  }
  0x10   : > { %s4808_s6 = smov (!%p621_p2), 120   ;;  %s6357_s25 = smov (!%p621_p2), 80  }
  0x11   : > { %s6356_s26 = smov (!%p621_p2), 72   ;;  %s6364_s2 = smov (!%p621_p2), 112  }
  0x12   : > { %v701_v0 = vld [vmem:[%s6373_s4 + $0x18] sm:$0xff]  ;;  %v4803_v1 = vmov 0.0   ;;  %v700_v2 = vld [vmem:[%s6373_s4 + $0x10] sm:$0xff]  ;;  %vm4804_vm0 = vmmov 0   ;;  %s6390_s28 = smov (!%p684_p3, %s4202_s28), 1  ;;  %v699_v3 = vld [vmem:[%s6373_s4 + $0x8] sm:$0xff]  ;;  %v783_v15 = vlaneseq }
  0x13   : > { %4598 = vmatprep.subr.mxu0 %v4803_v1  ;;  %4606 = vmatprep.mubr.msk.f32.mxu0 %vm4804_vm0, %v4803_v1  ;;  %s4958_s24 = sshll.u32 %s6390_s28, 3  ;;  %v698_v4 = vld [vmem:[%s6373_s4] sm:$0xff]  ;;  %vm709_vm1 = vcmask 261120   ;;  %vm792_vm2 = vcmask 64512   ;;  %s4814_s28 = smov 48   ;;  %vm1470_vm4 = vcmask 130048  }
  0x14   : > { %4599 = vmatpush3.msra.mxu0 %v701_v0  ;;  %4609 = vmatprep.subr.mxu1 %v4803_v1  ;;  %s687_s29 = scalar_lea.vmem %s6374_s27, %s4958_s24  ;;  %v4210_v6 = vld [vmem:[%s6375_s0] ss:$0 sm:$0xff]  ;;  %v4999_v16 = vshrl.u32 %v783_v15, 7  ;;  %v786_v17 = vand.u32 127, %v783_v15  ;;  %s6362_s27 = smov 104   ;;  %vm1472_vm5 = vcmask 195584  }
  0x15   : > { %4600 = vmatprep.subr.mxu0 %v4803_v1  ;;  %4611 = vmatprep.mubr.msk.f32.mxu1 %vm4804_vm0, %v4803_v1  ;;  %v4968_v5 = vld [vmem:[%s687_s29] sm:$0xff]  ;;  %s4813_s29 = smov 56   ;;  %s4815_s30 = smov 40  }
  0x16   : > { %4601 = vmatpush3.msra.mxu0 %v700_v2  ;;  %vm787_vm3 = vcmp.gt.s32.totalorder %v786_v17, %v4999_v16  ;;  %s6383_s0 = smov 80  }
  0x17   : > { %4602 = vmatprep.subr.mxu0 %v4803_v1  ;;  %v788_v19 = vsel %vm787_vm3, -1e+08, %v4803_v1 }
  0x18   : > { %4603 = vmatpush3.msra.mxu0 %v699_v3 }
  0x19   : > { %4604 = vmatprep.subr.mxu0 %v4803_v1 }
  0x1a   : > { %4605 = vmatpush3.msra.mxu0 %v698_v4 }
  0x1b   : > { %4607 = vmatmul.mubr.msk.f32.vlgmr.msra.gmra.mxu0 %vm709_vm1, %v4968_v5  ;;  %4629 = vmatprep.subr.mxu0 %v4803_v1 }
  0x1c   : > { %4631 = vmatprep.mubr.msk.f32.mxu0 %vm4804_vm0, %v4803_v1 }
  0xdb   : > { %v779_v7 = vpop.f32.mrf.mxu0 }
  0xdc   : > { %v4979_v8 = vadd.f32 %v4210_v6, %v779_v7 }
  0xdd   : > { %v4608_v9 = vpop.f32.mrf.mxu0 }
  0xde   : > { %880 = vrot.lane.b32.xlu1 %v4979_v8, %s4805_s23  ;;  %790 = vrot.lane.b32.xlu0 %v4979_v8, %s6361_s1  ;;  %s6360_s23 = smov 8  }
  0xe2   : > { %958 = vrot.lane.b32.xlu1 %v4979_v8, %s6355_s5  ;;  %s6359_s5 = smov 16  }
  0xe6   : > { %956 = vrot.lane.b32.xlu1 %v4979_v8, %s4808_s6 }
  0xea   : > { %1125 = vrot.lane.b32.xlu1 %v4979_v8, %s6357_s25  ;;  %s6385_s25 = smov 88  }
 0x150   : > { %v881_v10 = vpop.permute.xlu1 %880  ;;  %v791_v11 = vpop.permute.xlu0 %790 }
 0x151   : > { %4610 = vmatpush3.xpose.msk.msra.mxu1 %vm792_vm2, %v791_v11 }
 0x152   : > { %4614 = vmatprep.subr.mxu1 %v4803_v1 }
 0x154   : > { %v959_v12 = vpop.permute.xlu1 %958  ;;  %4612 = vmatmul.mubr.msk.f32.vlgmr.msra.gmra.mxu1 %vm792_vm2, %v4979_v8 }
 0x155   : > { %4615 = vmatpush3.msra.mxu1 %v881_v10  ;;  %4616 = vmatprep.mubr.msk.f32.mxu1 %vm4804_vm0, %v4803_v1 }
 0x156   : > { %4619 = vmatprep.subr.mxu1 %v4803_v1 }
 0x158   : > { %v957_v13 = vpop.permute.xlu1 %956 }
 0x15c   : > { %v1126_v14 = vpop.permute.xlu1 %1125 }
 0x15d   : > { %4630 = vmatpush3.xpose.msk.msra.mxu0 %vm792_vm2, %v1126_v14 }
 0x15e   : > { %4639 = vmatprep.subr.mxu0 %v4803_v1 }
 0x214   : > { %v863_v18 = vpop.f32.mrf.mxu1 }
 0x215   : > { %v867_v20 = vmul.f32 0.35355338, %v863_v18 }
 0x216   : > { %v4613_v21 = vpop.f32.mrf.mxu1 }
 0x217   : > { %v868_v22 = vadd.f32 %v867_v20, %v788_v19 }
 0x219   : > { %v869_v23 = vsel %vm792_vm2, %v868_v22, -inf }
 0x21a   : > { %870 = vmax.xlane.f32.xlu0 %v869_v23 }
 0x230   : > { %1292 = vrot.lane.b32.xlu0 %v4979_v8, %s6356_s26  ;;  %s6358_s26 = smov 24  }
 0x2a3   : > { %v871_v24 = vpop.xlane.xlu0 %870 }
 0x2a4   : > { %v872_v25 = vsub.f32 %v868_v22, %v871_v24 }
 0x2a6   : > { %v873_v26 = vmul.f32 1.442695, %v872_v25 }
 0x2a7   : > { %v1293_v31 = vpop.permute.xlu0 %1292 }
 0x2a8   : > { %4757 = vpow2.f32 %v873_v26 }
 0x2b5   : > { %v4758_v27 = vpop.eup %4757 }
 0x2b6   : > { %v875_v28 = vsel %vm792_vm2, %v4758_v27, 0.0 }
 0x2b7   : > { %876 = vadd.xlane.f32.xlu1 %v875_v28 }
 0x2c8   : > { %1123 = vrot.lane.b32.xlu1 %v4979_v8, %s6364_s2 }
 0x2cc   : > { %1290 = vrot.lane.b32.xlu1 %v4979_v8, %s6362_s27  ;;  %s6378_s27 = sld [smem:[#allocation3_spill]] }
 0x2d2   : > { %s691_s2 = scalar_lea.vmem %s6378_s27, %s4958_s24  ;;  %s6381_s27 = smov 104  }
 0x340   : > { %v877_v29 = vpop.xlane.xlu1 %876 }
 0x341   : > { %4759 = vrcp.f32 %v877_v29 }
 0x344   : > { %v1124_v30 = vpop.permute.xlu1 %1123 }
 0x345   : > { %4632 = vmatmul.mubr.msk.f32.vlgmr.msra.gmra.mxu0 %vm792_vm2, %v1124_v30 }
 0x346   : > { %4640 = vmatpush3.xpose.msk.msra.mxu0 %vm792_vm2, %v1293_v31  ;;  %4641 = vmatprep.mubr.msk.f32.mxu0 %vm4804_vm0, %v4803_v1 }
 0x347   : > { %4649 = vmatprep.subr.mxu0 %v4803_v1 }
 0x348   : > { %v1291_v32 = vpop.permute.xlu1 %1290 }
 0x349   : > { %4642 = vmatmul.mubr.msk.f32.vlgmr.msra.gmra.mxu0 %vm792_vm2, %v1291_v32 }
 0x34a   : > { %4657 = vmatprep.mubr.msk.f32.mxu0 %vm4804_vm0, %v4803_v1 }
 0x34e   : > { %v4760_v33 = vpop.eup %4759 }
 0x34f   : > { %v879_v34 = vmul.f32 %v4760_v33, %v4758_v27 }
 0x351   : > { %4617 = vmatmul.mubr.msk.f32.vlgmr.msra.gmra.mxu1 %vm792_vm2, %v879_v34 }
 0x352   : > { %4620 = vmatpush3.xpose.msk.msra.mxu1 %vm792_vm2, %v959_v12  ;;  %4621 = vmatprep.mubr.msk.f32.mxu1 %vm4804_vm0, %v4803_v1 }
 0x353   : > { %4624 = vmatprep.subr.mxu1 %v4803_v1 }
 0x355   : > { %4622 = vmatmul.mubr.msk.f32.vlgmr.msra.gmra.mxu1 %vm792_vm2, %v957_v13 }
 0x356   : > { %4626 = vmatprep.mubr.msk.f32.mxu1 %vm4804_vm0, %v4803_v1 }
 0x405   : > { %v1197_v35 = vpop.f32.mrf.mxu0 }
 0x406   : > { %v1201_v36 = vmul.f32 0.35355338, %v1197_v35 }
 0x407   : > { %v4633_v37 = vpop.f32.mrf.mxu0 }
 0x408   : > { %v1202_v38 = vadd.f32 %v1201_v36, %v788_v19 }
 0x409   : > { %v1364_v39 = vpop.f32.mrf.mxu0 }
 0x40a   : > { %v1203_v40 = vsel %vm792_vm2, %v1202_v38, -inf  ;;  %v1368_v45 = vmul.f32 0.35355338, %v1364_v39 }
 0x40b   : > { %1204 = vmax.xlane.f32.xlu0 %v1203_v40  ;;  %v4643_v41 = vpop.f32.mrf.mxu0 }
 0x40c   : > { %v1369_v50 = vadd.f32 %v1368_v45, %v788_v19  ;;  %v1676_v45 = vld [vmem:[%s6340_s10 + $0x18] sm:$0xff] }
 0x40e   : > { %v1370_v51 = vsel %vm792_vm2, %v1369_v50, -inf }
 0x411   : > { %v5028_v42 = vpop.f32.mrf.mxu1 }
 0x413   : > { %v4618_v43 = vpop.f32.mrf.mxu1 }
 0x415   : > { %v1030_v44 = vpop.f32.mrf.mxu1 }
 0x416   : > { %v1034_v46 = vmul.f32 0.35355338, %v1030_v44 }
 0x417   : > { %v4623_v47 = vpop.f32.mrf.mxu1 }
 0x418   : > { %v1035_v48 = vadd.f32 %v1034_v46, %v788_v19  ;;  %v1674_v46 = vld [vmem:[%s6340_s10 + $0x8] sm:$0xff]  ;;  %v1673_v47 = vld [vmem:[%s6340_s10] sm:$0xff] }
 0x41a   : > { %v1036_v49 = vsel %vm792_vm2, %v1035_v48, -inf }
 0x41b   : > { %1037 = vmax.xlane.f32.xlu1 %v1036_v49  ;;  %v1592_v49 = vld [vmem:[%s6338_s8 + $0x18] sm:$0xff] }
 0x41f   : > { %1371 = vmax.xlane.f32.xlu1 %v1370_v51  ;;  %v1590_v51 = vld [vmem:[%s6338_s8 + $0x8] sm:$0xff] }
 0x494   : > { %v1205_v52 = vpop.xlane.xlu0 %1204 }
 0x495   : > { %v1206_v53 = vsub.f32 %v1202_v38, %v1205_v52  ;;  %v1589_v52 = vld [vmem:[%s6338_s8] sm:$0xff] }
 0x497   : > { %v1207_v54 = vmul.f32 1.442695, %v1206_v53 }
 0x499   : > { %4761 = vpow2.f32 %v1207_v54 }
 0x4a4   : > { %v1038_v55 = vpop.xlane.xlu1 %1037 }
 0x4a5   : > { %v1039_v63 = vsub.f32 %v1035_v48, %v1038_v55  ;;  %v697_v48 = vld [vmem:[%s691_s2] sm:$0xff]  ;;  %s6380_s2 = smov 112  }
 0x4a6   : > { %v4762_v56 = vpop.eup %4761 }
 0x4a7   : > { %v1209_v57 = vsel %vm792_vm2, %v4762_v56, 0.0  ;;  %v1040_v0 = vmul.f32 1.442695, %v1039_v63 }
 0x4a8   : > { %1210 = vadd.xlane.f32.xlu1 %v1209_v57  ;;  %v1372_v58 = vpop.xlane.xlu1 %1371 }
 0x4a9   : > { %v1373_v59 = vsub.f32 %v1369_v50, %v1372_v58  ;;  %v1591_v50 = vld [vmem:[%s6338_s8 + $0x10] sm:$0xff] }
 0x4ab   : > { %v1374_v60 = vmul.f32 1.442695, %v1373_v59  ;;  %v4227_v59 = vld [vmem:[%s6337_s7] ss:$0 sm:$0xff] }
 0x4ad   : > { %4763 = vpow2.f32 %v1374_v60 }
 0x4ae   : > { %4765 = vpow2.f32 %v1040_v0 }
 0x4b9   : > { %1047 = vrot.lane.b32.xlu1 %v4979_v8, %s4813_s29  ;;  %s6376_s29 = sld [smem:[#allocation6_spill]] }
 0x4ba   : > { %v4764_v61 = vpop.eup %4763 }
 0x4bb   : > { %v1376_v62 = vsel %vm792_vm2, %v4764_v61, 0.0  ;;  %v4766_v2 = vpop.eup %4765 }
 0x4bc   : > { %1377 = vadd.xlane.f32.xlu0 %v1376_v62  ;;  %v1042_v3 = vsel %vm792_vm2, %v4766_v2, 0.0  ;;  %v4230_v62 = vld [vmem:[%s6341_s11] ss:$0 sm:$0xff] }
 0x4bf   : > { %v1477_v18 = vld [vmem:[%s6376_s29 + $0x18] sm:$0xff]  ;;  %v1476_v19 = vld [vmem:[%s6376_s29 + $0x10] sm:$0xff]  ;;  %v1475_v20 = vld [vmem:[%s6376_s29 + $0x8] sm:$0xff] }
 0x4c0   : > { %4650 = vmatpush3.msra.mxu0 %v1477_v18  ;;  %v1474_v21 = vld [vmem:[%s6376_s29] sm:$0xff] }
 0x4c1   : > { %4651 = vmatprep.subr.mxu0 %v4803_v1 }
 0x4c2   : > { %4652 = vmatpush3.msra.mxu0 %v1476_v19 }
 0x4c3   : > { %4653 = vmatprep.subr.mxu0 %v4803_v1 }
 0x4c4   : > { %4654 = vmatpush3.msra.mxu0 %v1475_v20 }
 0x4c5   : > { %4655 = vmatprep.subr.mxu0 %v4803_v1 }
 0x4c6   : > { %4656 = vmatpush3.msra.mxu0 %v1474_v21 }
 0x4c7   : > { %4671 = vmatprep.subr.mxu0 %v4803_v1 }
 0x4d2   : > { %1214 = vrot.lane.b32.xlu0 %v4979_v8, %s4814_s28 }
 0x4dd   : > { %1043 = vadd.xlane.f32.xlu1 %v1042_v3 }
 0x4ee   : > { %1381 = vrot.lane.b32.xlu1 %v4979_v8, %s4815_s30  ;;  %s6377_s30 = sld [smem:[#allocation7_spill]] }
 0x4f4   : > { %v4224_v34 = vld [vmem:[%s6377_s30] ss:$0 sm:$0xff] }
 0x531   : > { %v1211_v4 = vpop.xlane.xlu1 %1210 }
 0x535   : > { %v1048_v6 = vpop.permute.xlu1 %1047 }
 0x536   : > { %4625 = vmatpush3.msra.mxu1 %v1048_v6 }
 0x537   : > { %4634 = vmatprep.subr.mxu1 %v4803_v1 }
 0x545   : > { %v1378_v9 = vpop.xlane.xlu0 %1377 }
 0x549   : > { %v1215_v13 = vpop.permute.xlu0 %1214 }
 0x566   : > { %v1044_v7 = vpop.xlane.xlu1 %1043 }
 0x567   : > { %4767 = vrcp.f32 %v1044_v7 }
 0x568   : > { %4769 = vrcp.f32 %v1211_v4  ;;  %v4228_v4 = vld [vmem:[%s6339_s9] ss:$0 sm:$0xff] }
 0x569   : > { %4771 = vrcp.f32 %v1378_v9 }
 0x56a   : > { %v1382_v15 = vpop.permute.xlu1 %1381 }
 0x574   : > { %v4768_v10 = vpop.eup %4767 }
 0x575   : > { %v1046_v11 = vmul.f32 %v4768_v10, %v4766_v2  ;;  %v4770_v12 = vpop.eup %4769 }
 0x576   : > { %v1213_v8 = vmul.f32 %v4770_v12, %v4762_v56  ;;  %v4772_v14 = vpop.eup %4771 }
 0x577   : > { %4627 = vmatmul.mubr.msk.f32.vlgmr.msra.gmra.mxu1 %vm792_vm2, %v1046_v11  ;;  %v1380_v17 = vmul.f32 %v4772_v14, %v4764_v61 }
 0x578   : > { %4635 = vmatpush3.msra.mxu1 %v1215_v13  ;;  %4636 = vmatprep.mubr.msk.f32.mxu1 %vm4804_vm0, %v4803_v1 }
 0x579   : > { %4644 = vmatprep.subr.mxu1 %v4803_v1 }
 0x57b   : > { %4637 = vmatmul.mubr.msk.f32.vlgmr.msra.gmra.mxu1 %vm792_vm2, %v1213_v8 }
 0x57c   : > { %4645 = vmatpush3.msra.mxu1 %v1382_v15  ;;  %4646 = vmatprep.mubr.msk.f32.mxu1 %vm4804_vm0, %v4803_v1 }
 0x57d   : > { %4660 = vmatprep.subr.mxu1 %v4803_v1 }
 0x57f   : > { %4647 = vmatmul.mubr.msk.f32.vlgmr.msra.gmra.mxu1 %vm792_vm2, %v1380_v17 }
 0x580   : > { %4668 = vmatprep.mubr.msk.f32.mxu1 %vm4804_vm0, %v4803_v1  ;;  %4661 = vmatpush3.msra.mxu1 %v1592_v49 }
 0x581   : > { %4662 = vmatprep.subr.mxu1 %v4803_v1 }
 0x582   : > { %4663 = vmatpush3.msra.mxu1 %v1591_v50 }
 0x583   : > { %4664 = vmatprep.subr.mxu1 %v4803_v1 }
 0x584   : > { %4665 = vmatpush3.msra.mxu1 %v1590_v51 }
 0x585   : > { %4666 = vmatprep.subr.mxu1 %v4803_v1 }
 0x586   : > { %4667 = vmatpush3.msra.mxu1 %v1589_v52 }
 0x587   : > { %4682 = vmatprep.subr.mxu1 %v4803_v1 }
 0x637   : > { %v1119_v22 = vpop.f32.mrf.mxu1 }
 0x638   : > { %1458 = vrot.lane.b32.xlu1 %v1119_v22, %s6360_s23 }
 0x639   : > { %v4628_v23 = vpop.f32.mrf.mxu1 }
 0x63b   : > { %v1286_v24 = vpop.f32.mrf.mxu1 }
 0x63c   : > { %1462 = vrot.lane.b32.xlu0 %v1286_v24, %s6359_s5  ;;  %s6379_s5 = sld [smem:[#allocation8_spill]] }
 0x63d   : > { %v4638_v25 = vpop.f32.mrf.mxu1 }
 0x63f   : > { %v1453_v26 = vpop.f32.mrf.mxu1 }
 0x640   : > { %1466 = vrot.lane.b32.xlu1 %v1453_v26, %s6358_s26 }
 0x641   : > { %v4648_v27 = vpop.f32.mrf.mxu1 }
 0x642   : > { %v4226_v57 = vld [vmem:[%s6379_s5] ss:$0 sm:$0xff]  ;;  %s6384_s5 = smov 72  }
 0x6aa   : > { %v1459_v28 = vpop.permute.xlu1 %1458 }
 0x6ab   : > { %v1469_v30 = vsel %vm792_vm2, %v5028_v42, %v1459_v28 }
 0x6ae   : > { %v1463_v29 = vpop.permute.xlu0 %1462 }
 0x6af   : > { %v1471_v31 = vsel %vm1470_vm4, %v1469_v30, %v1463_v29 }
 0x6b2   : > { %v1467_v32 = vpop.permute.xlu1 %1466 }
 0x6b3   : > { %v1473_v33 = vsel %vm1472_vm5, %v1471_v31, %v1467_v32 }
 0x6b4   : > { %4658 = vmatmul.mubr.msk.f32.vlgmr.msra.gmra.mxu0 %vm709_vm1, %v1473_v33 }
 0x6b5   : > { %4679 = vmatprep.mubr.msk.f32.mxu0 %vm4804_vm0, %v4803_v1  ;;  %4672 = vmatpush3.msra.mxu0 %v1676_v45 }
 0x6b6   : > { %4673 = vmatprep.subr.mxu0 %v4803_v1 }
 0x774   : > { %v1554_v35 = vpop.f32.mrf.mxu0 }
 0x775   : > { %v1555_v36 = vadd.f32 %v4224_v34, %v1554_v35 }
 0x776   : > { %v4659_v37 = vpop.f32.mrf.mxu0 }
 0x777   : > { %v1558_v38 = vadd.f32 %v1555_v36, %v4968_v5  ;;  %v1675_v5 = vld [vmem:[%s6340_s10 + $0x10] sm:$0xff] }
 0x778   : > { %4674 = vmatpush3.msra.mxu0 %v1675_v5 }
 0x779   : > { %v1561_v39 = vsel %vm709_vm1, %v1558_v38, 0.0  ;;  %4675 = vmatprep.subr.mxu0 %v4803_v1 }
 0x77a   : > { %1562 = vadd.xlane.f32.xlu0 %v1561_v39  ;;  %4676 = vmatpush3.msra.mxu0 %v1674_v46 }
 0x77b   : > { %4677 = vmatprep.subr.mxu0 %v4803_v1 }
 0x77c   : > { %4678 = vmatpush3.msra.mxu0 %v1673_v47 }
 0x77d   : > { %4680 = vmatmul.mubr.msk.f32.vlgmr.msra.gmra.mxu0 %vm709_vm1, %v697_v48  ;;  %4692 = vmatprep.subr.mxu0 %v4803_v1 }
 0x77e   : > { %4694 = vmatprep.mubr.msk.f32.mxu0 %vm4804_vm0, %v4803_v1 }
 0x803   : > { %v1563_v40 = vpop.xlane.xlu0 %1562 }
 0x804   : > { %v1565_v41 = vmul.f32 0.03125, %v1563_v40 }
 0x806   : > { %v1566_v42 = vsub.f32 %v1558_v38, %v1565_v41 }
 0x808   : > { %v1567_v43 = vmul.f32 %v1566_v42, %v1566_v42 }
 0x80a   : > { %v1568_v44 = vsel %vm709_vm1, %v1567_v43, 0.0 }
 0x80b   : > { %1569 = vadd.xlane.f32.xlu1 %v1568_v44 }
 0x83d   : > { %v1753_v63 = vpop.f32.mrf.mxu0 }
 0x83e   : > { %v5136_v0 = vadd.f32 %v4230_v62, %v1753_v63 }
 0x83f   : > { %v4681_v2 = vpop.f32.mrf.mxu0 }
 0x840   : > { %1923 = vrot.lane.b32.xlu0 %v5136_v0, %s4808_s6 }
 0x844   : > { %2089 = vrot.lane.b32.xlu0 %v5136_v0, %s6380_s2 }
 0x848   : > { %2255 = vrot.lane.b32.xlu0 %v5136_v0, %s6381_s27 }
 0x894   : > { %v1570_v53 = vpop.xlane.xlu1 %1569 }
 0x895   : > { %v1571_v54 = vmul.f32 0.03125, %v1570_v53 }
 0x897   : > { %v1572_v55 = vadd.f32 1e-05, %v1571_v54 }
 0x899   : > { %4773 = vrsqrt.f32 %v1572_v55 }
 0x8a6   : > { %v4774_v56 = vpop.eup %4773 }
 0x8a7   : > { %v1574_v58 = vmul.f32 %v4774_v56, %v1566_v42 }
 0x8a9   : > { %v1581_v60 = vmul.f32 %v4226_v57, %v1574_v58 }
 0x8ab   : > { %v5127_v61 = vadd.f32 %v4227_v59, %v1581_v60 }
 0x8ad   : > { %4669 = vmatmul.mubr.msk.f32.vlgmr.msra.gmra.mxu1 %vm709_vm1, %v5127_v61 }
 0x8ae   : > { %4684 = vmatprep.mubr.msk.f32.mxu1 %vm4804_vm0, %v4803_v1  ;;  %4683 = vmatpush3.xpose.msk.msra.mxu1 %vm792_vm2, %v5136_v0 }
 0x8af   : > { %4687 = vmatprep.subr.mxu1 %v4803_v1 }
 0x8b2   : > { %v1924_v3 = vpop.permute.xlu0 %1923 }
 0x8b3   : > { %4693 = vmatpush3.xpose.msk.msra.mxu0 %vm792_vm2, %v1924_v3 }
 0x8b4   : > { %4702 = vmatprep.subr.mxu0 %v4803_v1 }
 0x8b6   : > { %v2090_v10 = vpop.permute.xlu0 %2089 }
 0x8ba   : > { %v2256_v13 = vpop.permute.xlu0 %2255 }
 0x96d   : > { %v1669_v6 = vpop.f32.mrf.mxu1 }
 0x96e   : > { %v1670_v7 = vadd.f32 %v4228_v4, %v1669_v6 }
 0x96f   : > { %v4670_v9 = vpop.f32.mrf.mxu1 }
 0x970   : > { %1921 = vrot.lane.b32.xlu1 %v1670_v7, %s4808_s6  ;;  %4685 = vmatmul.mubr.msk.f32.vlgmr.msra.gmra.mxu1 %vm792_vm2, %v1670_v7  ;;  %s6382_s6 = smov 96   ;;  %v2436_v9 = vld [vmem:[%s6342_s12 + $0x10] sm:$0xff] }
 0x971   : > { %4689 = vmatprep.mubr.msk.f32.mxu1 %vm4804_vm0, %v4803_v1 }
 0x974   : > { %2087 = vrot.lane.b32.xlu1 %v1670_v7, %s6380_s2 }
 0x978   : > { %2253 = vrot.lane.b32.xlu1 %v1670_v7, %s6381_s27  ;;  %v2437_v7 = vld [vmem:[%s6342_s12 + $0x18] sm:$0xff] }
 0x9e2   : > { %v1922_v11 = vpop.permute.xlu1 %1921 }
 0x9e3   : > { %4695 = vmatmul.mubr.msk.f32.vlgmr.msra.gmra.mxu0 %vm792_vm2, %v1922_v11  ;;  %v2434_v11 = vld [vmem:[%s6342_s12] sm:$0xff] }
 0x9e4   : > { %4703 = vmatpush3.xpose.msk.msra.mxu0 %vm792_vm2, %v2090_v10  ;;  %4704 = vmatprep.mubr.msk.f32.mxu0 %vm4804_vm0, %v4803_v1  ;;  %v2435_v10 = vld [vmem:[%s6342_s12 + $0x8] sm:$0xff] }
 0x9e5   : > { %4712 = vmatprep.subr.mxu0 %v4803_v1 }
 0x9e6   : > { %v2088_v12 = vpop.permute.xlu1 %2087 }
 0x9e7   : > { %4705 = vmatmul.mubr.msk.f32.vlgmr.msra.gmra.mxu0 %vm792_vm2, %v2088_v12 }
 0x9e8   : > { %4713 = vmatpush3.xpose.msk.msra.mxu0 %vm792_vm2, %v2256_v13  ;;  %4714 = vmatprep.mubr.msk.f32.mxu0 %vm4804_vm0, %v4803_v1 }
 0x9e9   : > { %4722 = vmatprep.subr.mxu0 %v4803_v1 }
 0x9ea   : > { %v2254_v8 = vpop.permute.xlu1 %2253 }
 0x9eb   : > { %4715 = vmatmul.mubr.msk.f32.vlgmr.msra.gmra.mxu0 %vm792_vm2, %v2254_v8 }
 0x9ec   : > { %4730 = vmatprep.mubr.msk.f32.mxu0 %vm4804_vm0, %v4803_v1  ;;  %4723 = vmatpush3.msra.mxu0 %v2437_v7  ;;  %v2568_v7 = vld [vmem:[%s6346_s16 + $0xa0] sm:$0xff] }
 0x9ed   : > { %4724 = vmatprep.subr.mxu0 %v4803_v1 }
 0x9ee   : > { %4725 = vmatpush3.msra.mxu0 %v2436_v9  ;;  %v2570_v9 = vld [vmem:[%s6346_s16 + $0xb0] sm:$0xff] }
 0x9ef   : > { %4726 = vmatprep.subr.mxu0 %v4803_v1 }
 0x9f0   : > { %4727 = vmatpush3.msra.mxu0 %v2435_v10  ;;  %v2553_v10 = vld [vmem:[%s6346_s16 + $0x28] sm:$0xff] }
 0x9f1   : > { %4728 = vmatprep.subr.mxu0 %v4803_v1 }
 0x9f2   : > { %4729 = vmatpush3.msra.mxu0 %v2434_v11  ;;  %v2555_v11 = vld [vmem:[%s6346_s16 + $0x38] sm:$0xff] }
 0xa30   : > { %v1829_v14 = vpop.f32.mrf.mxu1 }
 0xa31   : > { %v1833_v15 = vmul.f32 0.35355338, %v1829_v14 }
 0xa32   : > { %v4686_v17 = vpop.f32.mrf.mxu1 }
 0xa33   : > { %v1834_v18 = vsel %vm792_vm2, %v1833_v15, -inf }
 0xa34   : > { %1835 = vmax.xlane.f32.xlu0 %v1834_v18 }
 0xaa3   : > { %v1995_v19 = vpop.f32.mrf.mxu0 }
 0xaa4   : > { %v1999_v20 = vmul.f32 0.35355338, %v1995_v19 }
 0xaa5   : > { %v4696_v21 = vpop.f32.mrf.mxu0 }
 0xaa6   : > { %v2000_v22 = vsel %vm792_vm2, %v1999_v20, -inf }
 0xaa7   : > { %2001 = vmax.xlane.f32.xlu1 %v2000_v22  ;;  %v2161_v23 = vpop.f32.mrf.mxu0 }
 0xaa8   : > { %v2165_v24 = vmul.f32 0.35355338, %v2161_v23 }
 0xaa9   : > { %v4706_v25 = vpop.f32.mrf.mxu0 }
 0xaaa   : > { %v2166_v26 = vsel %vm792_vm2, %v2165_v24, -inf }
 0xaab   : > { %2167 = vmax.xlane.f32.xlu0 %v2166_v26  ;;  %v2327_v27 = vpop.f32.mrf.mxu0 }
 0xaac   : > { %v2331_v28 = vmul.f32 0.35355338, %v2327_v27 }
 0xaad   : > { %v4716_v29 = vpop.f32.mrf.mxu0 }
 0xaae   : > { %v2332_v30 = vsel %vm792_vm2, %v2331_v28, -inf }
 0xaaf   : > { %2333 = vmax.xlane.f32.xlu0 %v2332_v30 }
 0xab8   : > { %1845 = vrot.lane.b32.xlu1 %v5136_v0, %s6382_s6 }
 0xabd   : > { %v1836_v31 = vpop.xlane.xlu0 %1835 }
 0xabe   : > { %v1837_v32 = vsub.f32 %v1833_v15, %v1836_v31 }
 0xac0   : > { %v1838_v33 = vmul.f32 1.442695, %v1837_v32 }
 0xac2   : > { %4775 = vpow2.f32 %v1838_v33 }
 0xacf   : > { %v4776_v34 = vpop.eup %4775 }
 0xad0   : > { %v1840_v35 = vsel %vm792_vm2, %v4776_v34, 0.0 }
 0xadc   : > { %1841 = vadd.xlane.f32.xlu1 %v1840_v35  ;;  %v2597_v35 = vld [vmem:[%s6346_s16 + $0x188] sm:$0xff] }
 0xb30   : > { %v2002_v36 = vpop.xlane.xlu1 %2001 }
 0xb31   : > { %v2003_v37 = vsub.f32 %v1999_v20, %v2002_v36  ;;  %v2599_v36 = vld [vmem:[%s6346_s16 + $0x198] sm:$0xff] }
 0xb32   : > { %2794 = vmatprep.subr.mxu0 %v2599_v36  ;;  %v2592_v36 = vld [vmem:[%s6346_s16 + $0x160] sm:$0xff] }
 0xb33   : > { %v2004_v38 = vmul.f32 1.442695, %v2003_v37  ;;  %v2598_v37 = vld [vmem:[%s6346_s16 + $0x190] sm:$0xff] }
 0xb34   : > { %v1846_v39 = vpop.permute.xlu1 %1845  ;;  %v2168_v40 = vpop.xlane.xlu0 %2167 }
 0xb35   : > { %4777 = vpow2.f32 %v2004_v38  ;;  %v2169_v41 = vsub.f32 %v2165_v24, %v2168_v40  ;;  %4688 = vmatpush3.msra.mxu1 %v1846_v39  ;;  %v4244_v24 = vld [vmem:[%s6343_s13] ss:$0 sm:$0xff]  ;;  %v2581_v38 = vld [vmem:[%s6346_s16 + $0x108] sm:$0xff]  ;;  %v2583_v39 = vld [vmem:[%s6346_s16 + $0x118] sm:$0xff] }
 0xb36   : > { %4697 = vmatprep.subr.mxu1 %v4803_v1  ;;  %v2580_v40 = vld [vmem:[%s6346_s16 + $0x100] sm:$0xff] }
 0xb37   : > { %v2170_v42 = vmul.f32 1.442695, %v2169_v41  ;;  %v2582_v41 = vld [vmem:[%s6346_s16 + $0x110] sm:$0xff] }
 0xb38   : > { %v2334_v43 = vpop.xlane.xlu0 %2333 }
 0xb39   : > { %4779 = vpow2.f32 %v2170_v42  ;;  %v2335_v44 = vsub.f32 %v2331_v28, %v2334_v43  ;;  %v2565_v42 = vld [vmem:[%s6346_s16 + $0x88] sm:$0xff]  ;;  %v2567_v43 = vld [vmem:[%s6346_s16 + $0x98] sm:$0xff] }
 0xb3b   : > { %v2336_v45 = vmul.f32 1.442695, %v2335_v44  ;;  %v2564_v44 = vld [vmem:[%s6346_s16 + $0x80] sm:$0xff] }
 0xb3d   : > { %4781 = vpow2.f32 %v2336_v45  ;;  %v2566_v45 = vld [vmem:[%s6346_s16 + $0x90] sm:$0xff] }
 0xb42   : > { %v4778_v5 = vpop.eup %4777 }
 0xb43   : > { %v2006_v46 = vsel %vm792_vm2, %v4778_v5, 0.0 }
 0xb44   : > { %2007 = vadd.xlane.f32.xlu0 %v2006_v46  ;;  %v2551_v46 = vld [vmem:[%s6346_s16 + $0x18] sm:$0xff] }
 0xb46   : > { %v4780_v47 = vpop.eup %4779 }
 0xb47   : > { %v2172_v48 = vsel %vm792_vm2, %v4780_v47, 0.0 }
 0xb48   : > { %2173 = vadd.xlane.f32.xlu1 %v2172_v48  ;;  %v2550_v48 = vld [vmem:[%s6346_s16 + $0x10] sm:$0xff] }
 0xb4a   : > { %v4782_v49 = vpop.eup %4781 }
 0xb4b   : > { %v2338_v50 = vsel %vm792_vm2, %v4782_v49, 0.0 }
 0xb4c   : > { %2339 = vadd.xlane.f32.xlu0 %v2338_v50  ;;  %v2603_v50 = vld [vmem:[%s6346_s16 + $0x1b8] sm:$0xff] }
 0xb59   : > { %2177 = vrot.lane.b32.xlu1 %v5136_v0, %s6383_s0  ;;  %s6386_s0 = smov 8  }
 0xb5d   : > { %2343 = vrot.lane.b32.xlu1 %v5136_v0, %s6384_s5  ;;  %s6387_s5 = smov 16  }
 0xb62   : > { %2011 = vrot.lane.b32.xlu0 %v5136_v0, %s6385_s25  ;;  %s6388_s25 = smov 24  }
 0xb65   : > { %v1842_v51 = vpop.xlane.xlu1 %1841 }
 0xb66   : > { %4783 = vrcp.f32 %v1842_v51 }
 0xb73   : > { %v4784_v52 = vpop.eup %4783 }
 0xb74   : > { %v1844_v53 = vmul.f32 %v4784_v52, %v4776_v34 }
 0xb76   : > { %4690 = vmatmul.mubr.msk.f32.vlgmr.msra.gmra.mxu1 %vm792_vm2, %v1844_v53 }
 0xb77   : > { %4699 = vmatprep.mubr.msk.f32.mxu1 %vm4804_vm0, %v4803_v1 }
 0xbcd   : > { %v2008_v54 = vpop.xlane.xlu0 %2007 }
 0xbce   : > { %4785 = vrcp.f32 %v2008_v54 }
 0xbd1   : > { %v2174_v55 = vpop.xlane.xlu1 %2173 }
 0xbd2   : > { %4787 = vrcp.f32 %v2174_v55  ;;  %v4246_v55 = vld [vmem:[%s6344_s14] ss:$0 sm:$0xff] }
 0xbd5   : > { %v2340_v56 = vpop.xlane.xlu0 %2339  ;;  %v2178_v59 = vpop.permute.xlu1 %2177 }
 0xbd6   : > { %4789 = vrcp.f32 %v2340_v56 }
 0xbd9   : > { %v2012_v57 = vpop.permute.xlu0 %2011  ;;  %v2344_v0 = vpop.permute.xlu1 %2343 }
 0xbda   : > { %4698 = vmatpush3.msra.mxu1 %v2012_v57  ;;  %v4247_v57 = vld [vmem:[%s6345_s15] ss:$0 sm:$0xff] }
 0xbdb   : > { %v4786_v58 = vpop.eup %4785  ;;  %4707 = vmatprep.subr.mxu1 %v4803_v1 }
 0xbdc   : > { %v2010_v60 = vmul.f32 %v4786_v58, %v4778_v5  ;;  %v2549_v5 = vld [vmem:[%s6346_s16 + $0x8] sm:$0xff] }
 0xbde   : > { %4700 = vmatmul.mubr.msk.f32.vlgmr.msra.gmra.mxu1 %vm792_vm2, %v2010_v60  ;;  %v2600_v60 = vld [vmem:[%s6346_s16 + $0x1a0] sm:$0xff] }
 0xbdf   : > { %v4788_v62 = vpop.eup %4787  ;;  %4708 = vmatpush3.msra.mxu1 %v2178_v59  ;;  %4709 = vmatprep.mubr.msk.f32.mxu1 %vm4804_vm0, %v4803_v1 }
 0xbe0   : > { %4717 = vmatprep.subr.mxu1 %v4803_v1  ;;  %v2176_v63 = vmul.f32 %v4788_v62, %v4780_v47  ;;  %v2548_v47 = vld [vmem:[%s6346_s16] sm:$0xff]  ;;  %v2602_v62 = vld [vmem:[%s6346_s16 + $0x1b0] sm:$0xff] }
 0xbe2   : > { %4710 = vmatmul.mubr.msk.f32.vlgmr.msra.gmra.mxu1 %vm792_vm2, %v2176_v63  ;;  %v2585_v63 = vld [vmem:[%s6346_s16 + $0x128] sm:$0xff] }
 0xbe3   : > { %v4790_v2 = vpop.eup %4789  ;;  %4718 = vmatpush3.msra.mxu1 %v2344_v0  ;;  %4719 = vmatprep.mubr.msk.f32.mxu1 %vm4804_vm0, %v4803_v1  ;;  %v2587_v0 = vld [vmem:[%s6346_s16 + $0x138] sm:$0xff] }
 0xbe4   : > { %v2342_v3 = vmul.f32 %v4790_v2, %v4782_v49  ;;  %2723 = vmatprep.subr.mxu1 %v2597_v35  ;;  %v2601_v49 = vld [vmem:[%s6346_s16 + $0x1a8] sm:$0xff]  ;;  %v2584_v2 = vld [vmem:[%s6346_s16 + $0x120] sm:$0xff]  ;;  %v2595_v35 = vld [vmem:[%s6346_s16 + $0x178] sm:$0xff] }
 0xbe6   : > { %4720 = vmatmul.mubr.msk.f32.vlgmr.msra.gmra.mxu1 %vm792_vm2, %v2342_v3  ;;  %v2586_v3 = vld [vmem:[%s6346_s16 + $0x130] sm:$0xff] }
 0xbe7   : > { %2763 = vmatprep.mubr.f32.mxu1 %v4803_v1 }
 0xc36   : > { %v1917_v4 = vpop.f32.mrf.mxu1 }
 0xc38   : > { %v4691_v6 = vpop.f32.mrf.mxu1 }
 0xc39   : > { %v2571_v6 = vld [vmem:[%s6346_s16 + $0xb8] sm:$0xff] }
 0xc9e   : > { %v2083_v12 = vpop.f32.mrf.mxu1 }
 0xc9f   : > { %2420 = vrot.lane.b32.xlu0 %v2083_v12, %s6386_s0  ;;  %v2552_v12 = vld [vmem:[%s6346_s16 + $0x20] sm:$0xff] }
 0xca0   : > { %v4701_v13 = vpop.f32.mrf.mxu1 }
 0xca1   : > { %v2554_v13 = vld [vmem:[%s6346_s16 + $0x30] sm:$0xff] }
 0xca2   : > { %v2249_v8 = vpop.f32.mrf.mxu1 }
 0xca3   : > { %2424 = vrot.lane.b32.xlu1 %v2249_v8, %s6387_s5  ;;  %v2605_v8 = vld [vmem:[%s6346_s16 + $0x1c8] sm:$0xff]  ;;  %s695_s5 = scalar_lea.vmem %s6352_s22, %s4958_s24 }
 0xca4   : > { %v4711_v14 = vpop.f32.mrf.mxu1 }
 0xca5   : > { %v2607_v14 = vld [vmem:[%s6346_s16 + $0x1d8] sm:$0xff] }
 0xca6   : > { %v2415_v15 = vpop.f32.mrf.mxu1 }
 0xca7   : > { %2428 = vrot.lane.b32.xlu0 %v2415_v15, %s6388_s25  ;;  %v2604_v15 = vld [vmem:[%s6346_s16 + $0x1c0] sm:$0xff] }
 0xca8   : > { %v4721_v17 = vpop.f32.mrf.mxu1 }
 0xca9   : > { %v2606_v17 = vld [vmem:[%s6346_s16 + $0x1d0] sm:$0xff] }
 0xd11   : > { %v2421_v18 = vpop.permute.xlu0 %2420 }
 0xd12   : > { %v2431_v20 = vsel %vm792_vm2, %v1917_v4, %v2421_v18  ;;  %v2569_v4 = vld [vmem:[%s6346_s16 + $0xa8] sm:$0xff] }
 0xd13   : > { %v2589_v18 = vld [vmem:[%s6346_s16 + $0x148] sm:$0xff] }
 0xd15   : > { %v2425_v19 = vpop.permute.xlu1 %2424 }
 0xd16   : > { %v2432_v21 = vsel %vm1470_vm4, %v2431_v20, %v2425_v19  ;;  %v2591_v19 = vld [vmem:[%s6346_s16 + $0x158] sm:$0xff]  ;;  %v2588_v20 = vld [vmem:[%s6346_s16 + $0x140] sm:$0xff] }
 0xd19   : > { %v2429_v22 = vpop.permute.xlu0 %2428 }
 0xd1a   : > { %v2433_v23 = vsel %vm1472_vm5, %v2432_v21, %v2429_v22  ;;  %v2590_v21 = vld [vmem:[%s6346_s16 + $0x150] sm:$0xff]  ;;  %v2573_v22 = vld [vmem:[%s6346_s16 + $0xc8] sm:$0xff] }
 0xd1b   : > { %4731 = vmatmul.mubr.msk.f32.vlgmr.msra.gmra.mxu0 %vm709_vm1, %v2433_v23  ;;  %v2575_v23 = vld [vmem:[%s6346_s16 + $0xd8] sm:$0xff] }
 0xd1c   : > { %2834 = vmatprep.mubr.f32.mxu0 %v4803_v1  ;;  %2795 = vmatpush1.msra.mxu0 %v2598_v37  ;;  %v2577_v37 = vld [vmem:[%s6346_s16 + $0xe8] sm:$0xff] }
 0xd1d   : > { %2796 = vmatprep.subr.mxu0 %v2583_v39  ;;  %v2576_v39 = vld [vmem:[%s6346_s16 + $0xe0] sm:$0xff] }
 0xd1e   : > { %2797 = vmatpush1.msra.mxu0 %v2582_v41  ;;  %v2561_v41 = vld [vmem:[%s6346_s16 + $0x68] sm:$0xff] }
 0xd1f   : > { %2798 = vmatprep.subr.mxu0 %v2567_v43  ;;  %v2560_v43 = vld [vmem:[%s6346_s16 + $0x60] sm:$0xff] }
 0xd20   : > { %2799 = vmatpush1.msra.mxu0 %v2566_v45  ;;  %v3314_v45 = vld [vmem:[%s6348_s18 + $0xf8] sm:$0xff] }
 0xd21   : > { %2800 = vmatprep.subr.mxu0 %v2551_v46  ;;  %v3298_v46 = vld [vmem:[%s6348_s18 + $0x78] sm:$0xff] }
 0xd22   : > { %2801 = vmatpush1.msra.mxu0 %v2550_v48  ;;  %v3313_v48 = vld [vmem:[%s6348_s18 + $0xf0] sm:$0xff] }
 0xd23   : > { %2936 = vmatprep.subr.mxu0 %v2603_v50  ;;  %v3329_v50 = vld [vmem:[%s6348_s18 + $0x170] sm:$0xff] }
 0xddb   : > { %v2514_v25 = vpop.f32.mrf.mxu0 }
 0xddc   : > { %v2515_v26 = vadd.f32 %v4244_v24, %v2514_v25  ;;  %v2572_v24 = vld [vmem:[%s6346_s16 + $0xc0] sm:$0xff]  ;;  %v2574_v25 = vld [vmem:[%s6346_s16 + $0xd0] sm:$0xff] }
 0xddd   : > { %v4732_v27 = vpop.f32.mrf.mxu0 }
 0xdde   : > { %v2518_v28 = vadd.f32 %v2515_v26, %v5127_v61  ;;  %v2596_v61 = vld [vmem:[%s6346_s16 + $0x180] sm:$0xff]  ;;  %v2557_v26 = vld [vmem:[%s6346_s16 + $0x48] sm:$0xff]  ;;  %v2559_v27 = vld [vmem:[%s6346_s16 + $0x58] sm:$0xff] }
 0xddf   : > { %2724 = vmatpush1.msra.mxu1 %v2596_v61  ;;  %v2594_v61 = vld [vmem:[%s6346_s16 + $0x170] sm:$0xff] }
 0xde0   : > { %v2521_v29 = vsel %vm709_vm1, %v2518_v28, 0.0  ;;  %2725 = vmatprep.subr.mxu1 %v2581_v38  ;;  %v2579_v38 = vld [vmem:[%s6346_s16 + $0xf8] sm:$0xff] }
 0xde1   : > { %2522 = vadd.xlane.f32.xlu1 %v2521_v29  ;;  %2726 = vmatpush1.msra.mxu1 %v2580_v40  ;;  %v2558_v29 = vld [vmem:[%s6346_s16 + $0x50] sm:$0xff] }
 0xde2   : > { %2727 = vmatprep.subr.mxu1 %v2565_v42  ;;  %v2578_v40 = vld [vmem:[%s6346_s16 + $0xf0] sm:$0xff]  ;;  %v2563_v42 = vld [vmem:[%s6346_s16 + $0x78] sm:$0xff] }
 0xde3   : > { %2728 = vmatpush1.msra.mxu1 %v2564_v44  ;;  %v2562_v44 = vld [vmem:[%s6346_s16 + $0x70] sm:$0xff] }
 0xde4   : > { %2729 = vmatprep.subr.mxu1 %v2549_v5  ;;  %v3346_v5 = vld [vmem:[%s6348_s18 + $0x1f8] sm:$0xff] }
 0xde5   : > { %2730 = vmatpush1.msra.mxu1 %v2548_v47  ;;  %v3330_v47 = vld [vmem:[%s6348_s18 + $0x178] sm:$0xff] }
 0xde6   : > { %2865 = vmatprep.subr.mxu1 %v2601_v49  ;;  %v3297_v49 = vld [vmem:[%s6348_s18 + $0x70] sm:$0xff] }
 0xe6a   : > { %v2523_v30 = vpop.xlane.xlu1 %2522 }
 0xe6b   : > { %v2524_v31 = vmul.f32 0.03125, %v2523_v30  ;;  %v2609_v30 = vld [vmem:[%s6346_s16 + $0x1e8] sm:$0xff] }
 0xe6d   : > { %v2525_v32 = vsub.f32 %v2518_v28, %v2524_v31  ;;  %v2556_v28 = vld [vmem:[%s6346_s16 + $0x40] sm:$0xff]  ;;  %v2611_v31 = vld [vmem:[%s6346_s16 + $0x1f8] sm:$0xff] }
 0xe6f   : > { %v2526_v33 = vmul.f32 %v2525_v32, %v2525_v32 }
 0xe71   : > { %v2527_v34 = vsel %vm709_vm1, %v2526_v33, 0.0  ;;  %v2610_v33 = vld [vmem:[%s6346_s16 + $0x1f0] sm:$0xff] }
 0xe72   : > { %2528 = vadd.xlane.f32.xlu0 %v2527_v34  ;;  %v2593_v34 = vld [vmem:[%s6346_s16 + $0x168] sm:$0xff] }
 0xefb   : > { %v2529_v51 = vpop.xlane.xlu0 %2528 }
 0xefc   : > { %v2530_v52 = vmul.f32 0.03125, %v2529_v51  ;;  %v3312_v51 = vld [vmem:[%s6348_s18 + $0xe8] sm:$0xff] }
 0xefe   : > { %v2531_v53 = vadd.f32 1e-05, %v2530_v52  ;;  %v3344_v52 = vld [vmem:[%s6348_s18 + $0x1e8] sm:$0xff] }
 0xf00   : > { %4791 = vrsqrt.f32 %v2531_v53  ;;  %v3296_v53 = vld [vmem:[%s6348_s18 + $0x68] sm:$0xff] }
 0xf0d   : > { %v4792_v54 = vpop.eup %4791 }
 0xf0e   : > { %v2533_v56 = vmul.f32 %v4792_v54, %v2525_v32  ;;  %v2608_v32 = vld [vmem:[%s6346_s16 + $0x1e0] sm:$0xff]  ;;  %v3328_v54 = vld [vmem:[%s6348_s18 + $0x168] sm:$0xff] }
 0xf10   : > { %v2540_v58 = vmul.f32 %v4246_v55, %v2533_v56  ;;  %v3311_v55 = vld [vmem:[%s6348_s18 + $0xe0] sm:$0xff] }
 0xf11   : > { %v3343_v56 = vld [vmem:[%s6348_s18 + $0x1e0] sm:$0xff] }
 0xf12   : > { %v5290_v59 = vadd.f32 %v4247_v57, %v2540_v58  ;;  %v3295_v57 = vld [vmem:[%s6348_s18 + $0x60] sm:$0xff] }
 0xf13   : > { %v3327_v58 = vld [vmem:[%s6348_s18 + $0x160] sm:$0xff] }
 0xf14   : > { %4248 = vmatmul.mubr.msk.f32.vlgmr.msra.gmra.mxu1 %vm709_vm1, %v5290_v59  ;;  %4249 = vmatmul.mubr.msk.f32.vlgmr.msra.gmra.mxu0 %vm709_vm1, %v5290_v59 }
 0xf15   : > { %2866 = vmatpush1.msra.mxu1 %v2600_v60  ;;  %2937 = vmatpush1.msra.mxu0 %v2602_v62  ;;  %v3310_v60 = vld [vmem:[%s6348_s18 + $0xd8] sm:$0xff] }
 0xf16   : > { %2867 = vmatprep.subr.mxu1 %v2585_v63  ;;  %2938 = vmatprep.subr.mxu0 %v2587_v0  ;;  %v3342_v62 = vld [vmem:[%s6348_s18 + $0x1d8] sm:$0xff] }
 0xf17   : > { %2868 = vmatpush1.msra.mxu1 %v2584_v2  ;;  %2939 = vmatpush1.msra.mxu0 %v2586_v3  ;;  %v3294_v63 = vld [vmem:[%s6348_s18 + $0x58] sm:$0xff]  ;;  %v3309_v2 = vld [vmem:[%s6348_s18 + $0xd0] sm:$0xff] }
 0xf18   : > { %2869 = vmatprep.subr.mxu1 %v2569_v4  ;;  %2940 = vmatprep.subr.mxu0 %v2571_v6  ;;  %v3326_v0 = vld [vmem:[%s6348_s18 + $0x158] sm:$0xff]  ;;  %v3341_v3 = vld [vmem:[%s6348_s18 + $0x1d0] sm:$0xff] }
 0xf19   : > { %2870 = vmatpush1.msra.mxu1 %v2568_v7  ;;  %2941 = vmatpush1.msra.mxu0 %v2570_v9  ;;  %v3293_v4 = vld [vmem:[%s6348_s18 + $0x50] sm:$0xff]  ;;  %v3308_v7 = vld [vmem:[%s6348_s18 + $0xc8] sm:$0xff] }
 0xf1a   : > { %2871 = vmatprep.subr.mxu1 %v2553_v10  ;;  %2942 = vmatprep.subr.mxu0 %v2555_v11  ;;  %v3325_v6 = vld [vmem:[%s6348_s18 + $0x150] sm:$0xff]  ;;  %v3340_v9 = vld [vmem:[%s6348_s18 + $0x1c8] sm:$0xff] }
 0xf1b   : > { %2872 = vmatpush1.msra.mxu1 %v2552_v12  ;;  %2905 = vmatprep.mubr.f32.mxu1 %v4803_v1  ;;  %v3292_v10 = vld [vmem:[%s6348_s18 + $0x48] sm:$0xff]  ;;  %v3307_v12 = vld [vmem:[%s6348_s18 + $0xc0] sm:$0xff] }
 0xf1c   : > { %2943 = vmatpush1.msra.mxu0 %v2554_v13  ;;  %2976 = vmatprep.mubr.f32.mxu0 %v4803_v1  ;;  %v3324_v11 = vld [vmem:[%s6348_s18 + $0x148] sm:$0xff]  ;;  %v3339_v13 = vld [vmem:[%s6348_s18 + $0x1c0] sm:$0xff] }
 0xf1d   : > { %4250 = vmatmul.mubr.msk.f32.vlgmr.msra.gmra.mxu1 %vm709_vm1, %v5290_v59  ;;  %4251 = vmatmul.mubr.msk.f32.vlgmr.msra.gmra.mxu0 %vm709_vm1, %v5290_v59 }
 0xf1e   : > { %3007 = vmatprep.subr.mxu1 %v2605_v8  ;;  %3078 = vmatprep.subr.mxu0 %v2607_v14  ;;  %v3291_v8 = vld [vmem:[%s6348_s18 + $0x40] sm:$0xff] }
 0xf1f   : > { %3008 = vmatpush1.msra.mxu1 %v2604_v15  ;;  %3079 = vmatpush1.msra.mxu0 %v2606_v17  ;;  %v3323_v14 = vld [vmem:[%s6348_s18 + $0x140] sm:$0xff]  ;;  %v3306_v15 = vld [vmem:[%s6348_s18 + $0xb8] sm:$0xff] }
 0xf20   : > { %3009 = vmatprep.subr.mxu1 %v2589_v18  ;;  %3080 = vmatprep.subr.mxu0 %v2591_v19  ;;  %v3338_v17 = vld [vmem:[%s6348_s18 + $0x1b8] sm:$0xff] }
 0xf21   : > { %3010 = vmatpush1.msra.mxu1 %v2588_v20  ;;  %3081 = vmatpush1.msra.mxu0 %v2590_v21  ;;  %v3290_v18 = vld [vmem:[%s6348_s18 + $0x38] sm:$0xff]  ;;  %v3305_v20 = vld [vmem:[%s6348_s18 + $0xb0] sm:$0xff] }
 0xf22   : > { %3011 = vmatprep.subr.mxu1 %v2573_v22  ;;  %3082 = vmatprep.subr.mxu0 %v2575_v23  ;;  %v3322_v19 = vld [vmem:[%s6348_s18 + $0x138] sm:$0xff]  ;;  %v3337_v21 = vld [vmem:[%s6348_s18 + $0x1b0] sm:$0xff] }
 0xf23   : > { %3012 = vmatpush1.msra.mxu1 %v2572_v24  ;;  %3083 = vmatpush1.msra.mxu0 %v2574_v25  ;;  %v3289_v22 = vld [vmem:[%s6348_s18 + $0x30] sm:$0xff]  ;;  %v3304_v24 = vld [vmem:[%s6348_s18 + $0xa8] sm:$0xff] }
 0xf24   : > { %3013 = vmatprep.subr.mxu1 %v2557_v26  ;;  %3084 = vmatprep.subr.mxu0 %v2559_v27  ;;  %v3321_v23 = vld [vmem:[%s6348_s18 + $0x130] sm:$0xff]  ;;  %v3336_v25 = vld [vmem:[%s6348_s18 + $0x1a8] sm:$0xff] }
 0xf25   : > { %3014 = vmatpush1.msra.mxu1 %v2556_v28  ;;  %3047 = vmatprep.mubr.f32.mxu1 %v4803_v1  ;;  %v3288_v26 = vld [vmem:[%s6348_s18 + $0x28] sm:$0xff]  ;;  %v3303_v28 = vld [vmem:[%s6348_s18 + $0xa0] sm:$0xff] }
 0xf26   : > { %3085 = vmatpush1.msra.mxu0 %v2558_v29  ;;  %3118 = vmatprep.mubr.f32.mxu0 %v4803_v1  ;;  %v3320_v27 = vld [vmem:[%s6348_s18 + $0x128] sm:$0xff]  ;;  %v3335_v29 = vld [vmem:[%s6348_s18 + $0x1a0] sm:$0xff] }
 0xf27   : > { %4252 = vmatmul.mubr.msk.f32.vlgmr.msra.gmra.mxu1 %vm709_vm1, %v5290_v59  ;;  %4253 = vmatmul.mubr.msk.f32.vlgmr.msra.gmra.mxu0 %vm709_vm1, %v5290_v59 }
 0xf28   : > { %3149 = vmatprep.subr.mxu1 %v2609_v30  ;;  %3220 = vmatprep.subr.mxu0 %v2611_v31  ;;  %v3287_v30 = vld [vmem:[%s6348_s18 + $0x20] sm:$0xff] }
 0xf29   : > { %3150 = vmatpush1.msra.mxu1 %v2608_v32  ;;  %3221 = vmatpush1.msra.mxu0 %v2610_v33  ;;  %v3319_v31 = vld [vmem:[%s6348_s18 + $0x120] sm:$0xff]  ;;  %v3302_v32 = vld [vmem:[%s6348_s18 + $0x98] sm:$0xff] }
 0xf2a   : > { %3151 = vmatprep.subr.mxu1 %v2593_v34  ;;  %3222 = vmatprep.subr.mxu0 %v2595_v35  ;;  %v3334_v33 = vld [vmem:[%s6348_s18 + $0x198] sm:$0xff] }
 0xf2b   : > { %3152 = vmatpush1.msra.mxu1 %v2592_v36  ;;  %3223 = vmatpush1.msra.mxu0 %v2594_v61  ;;  %v3286_v34 = vld [vmem:[%s6348_s18 + $0x18] sm:$0xff]  ;;  %v3301_v36 = vld [vmem:[%s6348_s18 + $0x90] sm:$0xff] }
 0xf2c   : > { %3153 = vmatprep.subr.mxu1 %v2577_v37  ;;  %3224 = vmatprep.subr.mxu0 %v2579_v38  ;;  %v3318_v35 = vld [vmem:[%s6348_s18 + $0x118] sm:$0xff]  ;;  %v3333_v61 = vld [vmem:[%s6348_s18 + $0x190] sm:$0xff] }
 0xf2d   : > { %3154 = vmatpush1.msra.mxu1 %v2576_v39  ;;  %3225 = vmatpush1.msra.mxu0 %v2578_v40  ;;  %v3285_v37 = vld [vmem:[%s6348_s18 + $0x10] sm:$0xff]  ;;  %v3300_v39 = vld [vmem:[%s6348_s18 + $0x88] sm:$0xff] }
 0xf2e   : > { %3155 = vmatprep.subr.mxu1 %v2561_v41  ;;  %3226 = vmatprep.subr.mxu0 %v2563_v42  ;;  %v3317_v38 = vld [vmem:[%s6348_s18 + $0x110] sm:$0xff]  ;;  %v3332_v40 = vld [vmem:[%s6348_s18 + $0x188] sm:$0xff] }
 0xf2f   : > { %3156 = vmatpush1.msra.mxu1 %v2560_v43  ;;  %3189 = vmatprep.mubr.f32.mxu1 %v4803_v1  ;;  %v3284_v41 = vld [vmem:[%s6348_s18 + $0x8] sm:$0xff]  ;;  %v3299_v43 = vld [vmem:[%s6348_s18 + $0x80] sm:$0xff] }
 0xf30   : > { %3227 = vmatpush1.msra.mxu0 %v2562_v44  ;;  %3260 = vmatprep.mubr.f32.mxu0 %v4803_v1  ;;  %v3345_v1 = vld [vmem:[%s6348_s18 + $0x1f0] sm:$0xff]  ;;  %v3316_v42 = vld [vmem:[%s6348_s18 + $0x108] sm:$0xff]  ;;  %v3331_v44 = vld [vmem:[%s6348_s18 + $0x180] sm:$0xff] }
 0xf31   : > { %4254 = vmatmul.mubr.msk.f32.vlgmr.msra.gmra.mxu1 %vm709_vm1, %v5290_v59  ;;  %4255 = vmatmul.mubr.msk.f32.vlgmr.msra.gmra.mxu0 %vm709_vm1, %v5290_v59 }
 0xf32   : > { %4318 = vmatprep.subr.mxu1 %v3314_v45  ;;  %4353 = vmatprep.subr.mxu0 %v3346_v5  ;;  %v3283_v45 = vld [vmem:[%s6348_s18] sm:$0xff] }
 0xf33   : > { %4319 = vmatpush3.msra.mxu1 %v3298_v46  ;;  %4354 = vmatpush3.msra.mxu0 %v3330_v47  ;;  %v3315_v5 = vld [vmem:[%s6348_s18 + $0x100] sm:$0xff]  ;;  %v3378_v46 = vld [vmem:[%s6348_s18 + $0x2f8] sm:$0xff] }
 0xf34   : > { %4320 = vmatprep.subr.mxu1 %v3313_v48  ;;  %4355 = vmatprep.subr.mxu0 %v3345_v1  ;;  %v3410_v47 = vld [vmem:[%s6348_s18 + $0x3f8] sm:$0xff]  ;;  %v2634_v48 = vsub.s32 4, %v4999_v16  ;;  %v5654_v1 = vld [vmem:[%s6347_s17 + $0x8] sm:$0xff] }
 0xf35   : > { %4321 = vmatpush3.msra.mxu1 %v3297_v49  ;;  %4356 = vmatpush3.msra.mxu0 %v3329_v50  ;;  %v2642_v50 = vsub.s32 6, %v4999_v16 }
 0xf36   : > { %4322 = vmatprep.subr.mxu1 %v3312_v51  ;;  %4357 = vmatprep.subr.mxu0 %v3344_v52  ;;  %v5659_v49 = vrot.slane %v5654_v1, %v2634_v48  ;;  %v2618_v52 = vsub.s32 0, %v4999_v16 }
 0xf37   : > { %4323 = vmatpush3.msra.mxu1 %v3296_v53  ;;  %4358 = vmatpush3.msra.mxu0 %v3328_v54  ;;  %v5665_v51 = vrot.slane %v5654_v1, %v2642_v50  ;;  %v2626_v53 = vsub.s32 2, %v4999_v16  ;;  %v5672_v54 = vld [vmem:[%s6347_s17] sm:$0xff] }
 0xf38   : > { %4324 = vmatprep.subr.mxu1 %v3311_v55  ;;  %4359 = vmatprep.subr.mxu0 %v3343_v56  ;;  %v2622_v55 = vsub.s32 1, %v4999_v16  ;;  %v2630_v56 = vsub.s32 3, %v4999_v16 }
 0xf39   : > { %4325 = vmatpush3.msra.mxu1 %v3295_v57  ;;  %4360 = vmatpush3.msra.mxu0 %v3327_v58  ;;  %v2619_v57 = vrot.slane %v5672_v54, %v2618_v52  ;;  %v2627_v58 = vrot.slane %v5672_v54, %v2626_v53 }
 0xf3a   : > { %4326 = vmatprep.subr.mxu1 %v3310_v60  ;;  %4361 = vmatprep.subr.mxu0 %v3342_v62  ;;  %v2623_v60 = vrot.slane %v5672_v54, %v2622_v55  ;;  %v2631_v62 = vrot.slane %v5672_v54, %v2630_v56 }
 0xf3b   : > { %4327 = vmatpush3.msra.mxu1 %v3294_v63  ;;  %4362 = vmatpush3.msra.mxu0 %v3326_v0 }
 0xf3c   : > { %4328 = vmatprep.subr.mxu1 %v3309_v2  ;;  %4363 = vmatprep.subr.mxu0 %v3341_v3 }
 0xf3d   : > { %4329 = vmatpush3.msra.mxu1 %v3293_v4  ;;  %4364 = vmatpush3.msra.mxu0 %v3325_v6 }
 0xf3e   : > { %4330 = vmatprep.subr.mxu1 %v3308_v7  ;;  %4365 = vmatprep.subr.mxu0 %v3340_v9 }
 0xf3f   : > { %4331 = vmatpush3.msra.mxu1 %v3292_v10  ;;  %4366 = vmatpush3.msra.mxu0 %v3324_v11  ;;  %v2638_v10 = vsub.s32 5, %v4999_v16  ;;  %v2646_v11 = vsub.s32 7, %v4999_v16  ;;  %v3412_v16 = vld [vmem:[%s6348_s18 + $0x408] sm:$0xff] }
 0xf40   : > { %4332 = vmatprep.subr.mxu1 %v3307_v12  ;;  %4367 = vmatprep.subr.mxu0 %v3339_v13 }
 0xf41   : > { %4333 = vmatpush3.msra.mxu1 %v3291_v8  ;;  %4368 = vmatpush3.msra.mxu0 %v3323_v14 }
 0xf42   : > { %4334 = vmatprep.subr.mxu1 %v3306_v15  ;;  %4369 = vmatprep.subr.mxu0 %v3338_v17  ;;  %v3362_v15 = vld [vmem:[%s6348_s18 + $0x278] sm:$0xff] }
 0xf43   : > { %4335 = vmatpush3.msra.mxu1 %v3290_v18  ;;  %4370 = vmatpush3.msra.mxu0 %v3322_v19  ;;  %v3394_v17 = vld [vmem:[%s6348_s18 + $0x378] sm:$0xff]  ;;  %v3377_v18 = vld [vmem:[%s6348_s18 + $0x2f0] sm:$0xff] }
 0xf44   : > { %4336 = vmatprep.subr.mxu1 %v3305_v20  ;;  %4371 = vmatprep.subr.mxu0 %v3337_v21  ;;  %v3409_v19 = vld [vmem:[%s6348_s18 + $0x3f0] sm:$0xff]  ;;  %v2639_v20 = vrot.slane %v5672_v54, %v2638_v10  ;;  %v2647_v21 = vrot.slane %v5672_v54, %v2646_v11 }
 0xf45   : > { %4337 = vmatpush3.msra.mxu1 %v3289_v22  ;;  %4372 = vmatpush3.msra.mxu0 %v3321_v23  ;;  %v3361_v22 = vld [vmem:[%s6348_s18 + $0x270] sm:$0xff] }
 0xf46   : > { %4338 = vmatprep.subr.mxu1 %v3304_v24  ;;  %4373 = vmatprep.subr.mxu0 %v3336_v25  ;;  %v3393_v23 = vld [vmem:[%s6348_s18 + $0x370] sm:$0xff] }
 0xf47   : > { %4339 = vmatpush3.msra.mxu1 %v3288_v26  ;;  %4374 = vmatpush3.msra.mxu0 %v3320_v27  ;;  %v3376_v26 = vld [vmem:[%s6348_s18 + $0x2e8] sm:$0xff] }
 0xf48   : > { %4340 = vmatprep.subr.mxu1 %v3303_v28  ;;  %4375 = vmatprep.subr.mxu0 %v3335_v29  ;;  %v3408_v27 = vld [vmem:[%s6348_s18 + $0x3e8] sm:$0xff] }
 0xf49   : > { %4341 = vmatpush3.msra.mxu1 %v3287_v30  ;;  %4376 = vmatpush3.msra.mxu0 %v3319_v31  ;;  %v3360_v28 = vld [vmem:[%s6348_s18 + $0x268] sm:$0xff] }
 0xf4a   : > { %4342 = vmatprep.subr.mxu1 %v3302_v32  ;;  %4377 = vmatprep.subr.mxu0 %v3334_v33  ;;  %v3392_v29 = vld [vmem:[%s6348_s18 + $0x368] sm:$0xff]  ;;  %v3375_v32 = vld [vmem:[%s6348_s18 + $0x2e0] sm:$0xff] }
 0xf4b   : > { %4343 = vmatpush3.msra.mxu1 %v3286_v34  ;;  %4378 = vmatpush3.msra.mxu0 %v3318_v35  ;;  %v3407_v33 = vld [vmem:[%s6348_s18 + $0x3e0] sm:$0xff] }
 0xf4c   : > { %4344 = vmatprep.subr.mxu1 %v3301_v36  ;;  %4379 = vmatprep.subr.mxu0 %v3333_v61  ;;  %v3359_v36 = vld [vmem:[%s6348_s18 + $0x260] sm:$0xff] }
 0xf4d   : > { %4345 = vmatpush3.msra.mxu1 %v3285_v37  ;;  %4380 = vmatpush3.msra.mxu0 %v3317_v38  ;;  %v3391_v61 = vld [vmem:[%s6348_s18 + $0x360] sm:$0xff] }
 0xf4e   : > { %4346 = vmatprep.subr.mxu1 %v3300_v39  ;;  %4381 = vmatprep.subr.mxu0 %v3332_v40  ;;  %v3374_v39 = vld [vmem:[%s6348_s18 + $0x2d8] sm:$0xff] }
 0xf4f   : > { %4347 = vmatpush3.msra.mxu1 %v3284_v41  ;;  %4382 = vmatpush3.msra.mxu0 %v3316_v42  ;;  %v3406_v40 = vld [vmem:[%s6348_s18 + $0x3d8] sm:$0xff] }
 0xf50   : > { %4348 = vmatprep.subr.mxu1 %v3299_v43  ;;  %4383 = vmatprep.subr.mxu0 %v3331_v44  ;;  %v3358_v41 = vld [vmem:[%s6348_s18 + $0x258] sm:$0xff]  ;;  %v3373_v43 = vld [vmem:[%s6348_s18 + $0x2d0] sm:$0xff] }
 0xf51   : > { %4349 = vmatpush3.msra.mxu1 %v3283_v45  ;;  %4384 = vmatpush3.msra.mxu0 %v3315_v5  ;;  %v3390_v42 = vld [vmem:[%s6348_s18 + $0x358] sm:$0xff]  ;;  %v3405_v44 = vld [vmem:[%s6348_s18 + $0x3d0] sm:$0xff] }
 0xf52   : > { %4388 = vmatprep.subr.mxu1 %v3378_v46  ;;  %4423 = vmatprep.subr.mxu0 %v3410_v47  ;;  %v3357_v45 = vld [vmem:[%s6348_s18 + $0x250] sm:$0xff]  ;;  %v3372_v46 = vld [vmem:[%s6348_s18 + $0x2c8] sm:$0xff] }
 0xf53   : > { %v3389_v5 = vld [vmem:[%s6348_s18 + $0x350] sm:$0xff]  ;;  %v3404_v47 = vld [vmem:[%s6348_s18 + $0x3c8] sm:$0xff] }
 0xfd4   : > { %v2765_v63 = vpop.f32.mrf.mxu1  ;;  %v2836_v0 = vpop.f32.mrf.mxu0 }
 0xfd5   : > { %v2766_v2 = vadd.f32 %v2765_v63, %v2619_v57  ;;  %v2837_v3 = vadd.f32 %v2836_v0, %v2627_v58  ;;  %v3356_v57 = vld [vmem:[%s6348_s18 + $0x248] sm:$0xff]  ;;  %v3355_v63 = vld [vmem:[%s6348_s18 + $0x240] sm:$0xff] }
 0xfd6   : > { %v2767_v4 = vpop.f32.mrf.mxu1  ;;  %v2838_v6 = vpop.f32.mrf.mxu0  ;;  %v3388_v58 = vld [vmem:[%s6348_s18 + $0x348] sm:$0xff]  ;;  %v3387_v0 = vld [vmem:[%s6348_s18 + $0x340] sm:$0xff] }
 0xfd7   : > { %v2768_v7 = vadd.f32 %v2767_v4, %v2623_v60  ;;  %v2839_v9 = vadd.f32 %v2838_v6, %v2631_v62  ;;  %v3267_v8 = vmax.f32 %v2766_v2, 0.0  ;;  %v3269_v14 = vmax.f32 %v2837_v3, 0.0  ;;  %v3371_v60 = vld [vmem:[%s6348_s18 + $0x2c0] sm:$0xff]  ;;  %v3370_v2 = vld [vmem:[%s6348_s18 + $0x2b8] sm:$0xff] }
 0xfd8   : > { %v3403_v62 = vld [vmem:[%s6348_s18 + $0x3c0] sm:$0xff]  ;;  %v3402_v3 = vld [vmem:[%s6348_s18 + $0x3b8] sm:$0xff] }
 0xfd9   : > { %v3268_v12 = vmax.f32 %v2768_v7, 0.0  ;;  %v3270_v13 = vmax.f32 %v2839_v9, 0.0  ;;  %v3354_v4 = vld [vmem:[%s6348_s18 + $0x238] sm:$0xff]  ;;  %v3369_v7 = vld [vmem:[%s6348_s18 + $0x2b0] sm:$0xff] }
 0xfda   : > { %v3386_v6 = vld [vmem:[%s6348_s18 + $0x338] sm:$0xff]  ;;  %v3401_v9 = vld [vmem:[%s6348_s18 + $0x3b0] sm:$0xff] }
 0xfdb   : > { %3610 = vmatprep.mubr.f32.mxu1 %v3268_v12  ;;  %3680 = vmatprep.mubr.f32.mxu0 %v3270_v13  ;;  %v3353_v12 = vld [vmem:[%s6348_s18 + $0x230] sm:$0xff] }
 0xfdc   : > { %3611 = vmatmul.mubr.f32.vlgmr.msra.gmra.mxu1 %v3267_v8  ;;  %3681 = vmatmul.mubr.f32.vlgmr.msra.gmra.mxu0 %v3269_v14  ;;  %v3385_v13 = vld [vmem:[%s6348_s18 + $0x330] sm:$0xff]  ;;  %v3368_v8 = vld [vmem:[%s6348_s18 + $0x2a8] sm:$0xff] }
 0xfdd   : > { %v5714_v24 = vpop.f32.mrf.mxu1  ;;  %v5716_v25 = vpop.f32.mrf.mxu0  ;;  %4389 = vmatpush3.msra.mxu1 %v3362_v15  ;;  %4424 = vmatpush3.msra.mxu0 %v3394_v17  ;;  %v3400_v14 = vld [vmem:[%s6348_s18 + $0x3a8] sm:$0xff] }
 0xfde   : > { %4390 = vmatprep.subr.mxu1 %v3377_v18  ;;  %4425 = vmatprep.subr.mxu0 %v3409_v19  ;;  %v3352_v15 = vld [vmem:[%s6348_s18 + $0x228] sm:$0xff]  ;;  %v3367_v18 = vld [vmem:[%s6348_s18 + $0x2a0] sm:$0xff] }
 0xfdf   : > { %v2909_v30 = vpop.f32.mrf.mxu1  ;;  %v2980_v31 = vpop.f32.mrf.mxu0  ;;  %4391 = vmatpush3.msra.mxu1 %v3361_v22  ;;  %4426 = vmatpush3.msra.mxu0 %v3393_v23  ;;  %v3384_v17 = vld [vmem:[%s6348_s18 + $0x328] sm:$0xff]  ;;  %v3399_v19 = vld [vmem:[%s6348_s18 + $0x3a0] sm:$0xff]  ;;  %v3366_v23 = vld [vmem:[%s6348_s18 + $0x298] sm:$0xff] }
 0xfe0   : > { %v2910_v34 = vadd.f32 %v2909_v30, %v2639_v20  ;;  %v2981_v35 = vadd.f32 %v2980_v31, %v2647_v21  ;;  %4392 = vmatprep.subr.mxu1 %v3376_v26  ;;  %4427 = vmatprep.subr.mxu0 %v3408_v27  ;;  %v3351_v20 = vld [vmem:[%s6348_s18 + $0x220] sm:$0xff]  ;;  %v3398_v26 = vld [vmem:[%s6348_s18 + $0x398] sm:$0xff]  ;;  %v2635_v27 = vrot.slane %v5672_v54, %v2634_v48  ;;  %v3365_v48 = vld [vmem:[%s6348_s18 + $0x290] sm:$0xff] }
 0xfe1   : > { %4393 = vmatpush3.msra.mxu1 %v3360_v28  ;;  %4428 = vmatpush3.msra.mxu0 %v3392_v29  ;;  %v3383_v21 = vld [vmem:[%s6348_s18 + $0x320] sm:$0xff]  ;;  %v2643_v28 = vrot.slane %v5672_v54, %v2642_v50  ;;  %v3350_v30 = vld [vmem:[%s6348_s18 + $0x218] sm:$0xff]  ;;  %v3397_v50 = vld [vmem:[%s6348_s18 + $0x390] sm:$0xff]  ;;  %v2655_v54 = vrot.slane %v5654_v1, %v2622_v55 }
 0xfe2   : > { %v3272_v37 = vmax.f32 %v2910_v34, 0.0  ;;  %v3274_v38 = vmax.f32 %v2981_v35, 0.0  ;;  %4394 = vmatprep.subr.mxu1 %v3375_v32  ;;  %4429 = vmatprep.subr.mxu0 %v3407_v33  ;;  %v3382_v31 = vld [vmem:[%s6348_s18 + $0x318] sm:$0xff]  ;;  %v3349_v32 = vld [vmem:[%s6348_s18 + $0x210] sm:$0xff]  ;;  %v2663_v35 = vrot.slane %v5654_v1, %v2630_v56  ;;  %v3364_v55 = vld [vmem:[%s6348_s18 + $0x288] sm:$0xff] }
 0xfe3   : > { %4395 = vmatpush3.msra.mxu1 %v3359_v36  ;;  %4430 = vmatpush3.msra.mxu0 %v3391_v61  ;;  %v3381_v33 = vld [vmem:[%s6348_s18 + $0x310] sm:$0xff]  ;;  %v3396_v36 = vld [vmem:[%s6348_s18 + $0x388] sm:$0xff]  ;;  %v2908_v61 = vadd.f32 %v5714_v24, %v2635_v27  ;;  %v3395_v24 = vld [vmem:[%s6348_s18 + $0x380] sm:$0xff] }
 0xfe4   : > { %3750 = vmatprep.mubr.f32.mxu1 %v3272_v37  ;;  %3820 = vmatprep.mubr.f32.mxu0 %v3274_v38  ;;  %v2979_v37 = vadd.f32 %v5716_v25, %v2643_v28  ;;  %v3348_v56 = vld [vmem:[%s6348_s18 + $0x208] sm:$0xff] }
 0xfe5   : > { %4396 = vmatprep.subr.mxu1 %v3374_v39  ;;  %4431 = vmatprep.subr.mxu0 %v3406_v40  ;;  %v3380_v39 = vld [vmem:[%s6348_s18 + $0x308] sm:$0xff]  ;;  %v3363_v40 = vld [vmem:[%s6348_s18 + $0x280] sm:$0xff] }
 0xfe6   : > { %4397 = vmatpush3.msra.mxu1 %v3358_v41  ;;  %4432 = vmatpush3.msra.mxu0 %v3390_v42  ;;  %v3347_v41 = vld [vmem:[%s6348_s18 + $0x200] sm:$0xff]  ;;  %v3468_v27 = vld [vmem:[%s6348_s18 + $0x5c8] sm:$0xff] }
 0xfe7   : > { %4398 = vmatprep.subr.mxu1 %v3373_v43  ;;  %4433 = vmatprep.subr.mxu0 %v3405_v44  ;;  %v5838_v22 = vpop.f32.mrf.mxu1  ;;  %v5852_v29 = vpop.f32.mrf.mxu0  ;;  %v3379_v42 = vld [vmem:[%s6348_s18 + $0x300] sm:$0xff]  ;;  %v3271_v44 = vmax.f32 %v2908_v61, 0.0  ;;  %v3420_v28 = vld [vmem:[%s6348_s18 + $0x448] sm:$0xff]  ;;  %v3417_v61 = vld [vmem:[%s6348_s18 + $0x430] sm:$0xff] }
 0xfe8   : > { %4399 = vmatpush3.msra.mxu1 %v3357_v45  ;;  %4434 = vmatpush3.msra.mxu0 %v3389_v5  ;;  %v3273_v45 = vmax.f32 %v2979_v37, 0.0  ;;  %v3442_v5 = vld [vmem:[%s6348_s18 + $0x4f8] sm:$0xff]  ;;  %v3449_v37 = vld [vmem:[%s6348_s18 + $0x530] sm:$0xff] }
 0xfe9   : > { %4400 = vmatprep.subr.mxu1 %v3372_v46  ;;  %4435 = vmatprep.subr.mxu0 %v3404_v47  ;;  %v3051_v34 = vpop.f32.mrf.mxu1  ;;  %v3122_v38 = vpop.f32.mrf.mxu0  ;;  %v3474_v46 = vld [vmem:[%s6348_s18 + $0x5f8] sm:$0xff] }
 0xfea   : > { %4401 = vmatpush3.msra.mxu1 %v3356_v57  ;;  %4436 = vmatpush3.msra.mxu0 %v3388_v58  ;;  %v3052_v25 = vadd.f32 %v3051_v34, %v2655_v54  ;;  %v3123_v43 = vadd.f32 %v3122_v38, %v2663_v35  ;;  %v3426_v47 = vld [vmem:[%s6348_s18 + $0x478] sm:$0xff]  ;;  %v3451_v54 = vld [vmem:[%s6348_s18 + $0x540] sm:$0xff]  ;;  %v3432_v38 = vld [vmem:[%s6348_s18 + $0x4a8] sm:$0xff] }
 0xfeb   : > { %4402 = vmatprep.subr.mxu1 %v3371_v60  ;;  %4437 = vmatprep.subr.mxu0 %v3403_v62  ;;  %v3458_v58 = vld [vmem:[%s6348_s18 + $0x578] sm:$0xff]  ;;  %v3441_v62 = vld [vmem:[%s6348_s18 + $0x4f0] sm:$0xff] }
 0xfec   : > { %4403 = vmatpush3.msra.mxu1 %v3355_v63  ;;  %4438 = vmatpush3.msra.mxu0 %v3387_v0  ;;  %v3276_v57 = vmax.f32 %v3052_v25, 0.0  ;;  %v3278_v60 = vmax.f32 %v3123_v43, 0.0  ;;  %v3473_v63 = vld [vmem:[%s6348_s18 + $0x5f0] sm:$0xff]  ;;  %v3418_v34 = vld [vmem:[%s6348_s18 + $0x438] sm:$0xff]  ;;  %v3463_v25 = vld [vmem:[%s6348_s18 + $0x5a0] sm:$0xff] }
 0xfed   : > { %4404 = vmatprep.subr.mxu1 %v3370_v2  ;;  %4439 = vmatprep.subr.mxu0 %v3402_v3  ;;  %v3425_v0 = vld [vmem:[%s6348_s18 + $0x470] sm:$0xff]  ;;  %v3440_v3 = vld [vmem:[%s6348_s18 + $0x4e8] sm:$0xff]  ;;  %v3450_v35 = vld [vmem:[%s6348_s18 + $0x538] sm:$0xff] }
 0xfee   : > { %4405 = vmatpush3.msra.mxu1 %v3354_v4  ;;  %4440 = vmatpush3.msra.mxu0 %v3386_v6  ;;  %v3457_v2 = vld [vmem:[%s6348_s18 + $0x570] sm:$0xff]  ;;  %v3472_v4 = vld [vmem:[%s6348_s18 + $0x5e8] sm:$0xff] }
 0xfef   : > { %4406 = vmatprep.subr.mxu1 %v3369_v7  ;;  %4441 = vmatprep.subr.mxu0 %v3401_v9  ;;  %v3424_v6 = vld [vmem:[%s6348_s18 + $0x468] sm:$0xff]  ;;  %v3439_v9 = vld [vmem:[%s6348_s18 + $0x4e0] sm:$0xff] }
 0xff0   : > { %4407 = vmatpush3.msra.mxu1 %v3353_v12  ;;  %4442 = vmatpush3.msra.mxu0 %v3385_v13  ;;  %v3456_v7 = vld [vmem:[%s6348_s18 + $0x568] sm:$0xff]  ;;  %v3471_v12 = vld [vmem:[%s6348_s18 + $0x5e0] sm:$0xff] }
 0xff1   : > { %4408 = vmatprep.subr.mxu1 %v3368_v8  ;;  %4443 = vmatprep.subr.mxu0 %v3400_v14  ;;  %v3423_v13 = vld [vmem:[%s6348_s18 + $0x460] sm:$0xff]  ;;  %v3438_v14 = vld [vmem:[%s6348_s18 + $0x4d8] sm:$0xff]  ;;  %v6048_v43 = vpop.f32.mrf.mxu1 }
 0xff2   : > { %4409 = vmatpush3.msra.mxu1 %v3352_v15  ;;  %4444 = vmatpush3.msra.mxu0 %v3384_v17  ;;  %v3455_v8 = vld [vmem:[%s6348_s18 + $0x560] sm:$0xff]  ;;  %v3470_v15 = vld [vmem:[%s6348_s18 + $0x5d8] sm:$0xff] }
 0xff3   : > { %4410 = vmatprep.subr.mxu1 %v3367_v18  ;;  %4445 = vmatprep.subr.mxu0 %v3399_v19  ;;  %v3422_v17 = vld [vmem:[%s6348_s18 + $0x458] sm:$0xff]  ;;  %v3437_v19 = vld [vmem:[%s6348_s18 + $0x4d0] sm:$0xff] }
 0xff4   : > { %4411 = vmatpush3.msra.mxu1 %v3351_v20  ;;  %4446 = vmatpush3.msra.mxu0 %v3383_v21  ;;  %v3454_v18 = vld [vmem:[%s6348_s18 + $0x558] sm:$0xff]  ;;  %v3469_v20 = vld [vmem:[%s6348_s18 + $0x5d0] sm:$0xff] }
 0xff5   : > { %4412 = vmatprep.subr.mxu1 %v3366_v23  ;;  %4447 = vmatprep.subr.mxu0 %v3398_v26  ;;  %v3421_v21 = vld [vmem:[%s6348_s18 + $0x450] sm:$0xff]  ;;  %v3436_v26 = vld [vmem:[%s6348_s18 + $0x4c8] sm:$0xff] }
 0xff6   : > { %4413 = vmatpush3.msra.mxu1 %v3350_v30  ;;  %4448 = vmatpush3.msra.mxu0 %v3382_v31  ;;  %v3453_v23 = vld [vmem:[%s6348_s18 + $0x550] sm:$0xff]  ;;  %v3452_v30 = vld [vmem:[%s6348_s18 + $0x548] sm:$0xff]  ;;  %v3435_v31 = vld [vmem:[%s6348_s18 + $0x4c0] sm:$0xff] }
 0xff7   : > { %4414 = vmatprep.subr.mxu1 %v3365_v48  ;;  %4449 = vmatprep.subr.mxu0 %v3397_v50  ;;  %v3467_v48 = vld [vmem:[%s6348_s18 + $0x5c0] sm:$0xff] }
 0xff8   : > { %4415 = vmatpush3.msra.mxu1 %v3349_v32  ;;  %4450 = vmatpush3.msra.mxu0 %v3381_v33  ;;  %v3419_v50 = vld [vmem:[%s6348_s18 + $0x440] sm:$0xff]  ;;  %v3434_v32 = vld [vmem:[%s6348_s18 + $0x4b8] sm:$0xff] }
 0xff9   : > { %4416 = vmatprep.subr.mxu1 %v3364_v55  ;;  %4451 = vmatprep.subr.mxu0 %v3396_v36  ;;  %v3466_v33 = vld [vmem:[%s6348_s18 + $0x5b8] sm:$0xff]  ;;  %v3433_v55 = vld [vmem:[%s6348_s18 + $0x4b0] sm:$0xff] }
 0xffa   : > { %4417 = vmatpush3.msra.mxu1 %v3348_v56  ;;  %4452 = vmatpush3.msra.mxu0 %v3380_v39  ;;  %v3465_v36 = vld [vmem:[%s6348_s18 + $0x5b0] sm:$0xff]  ;;  %v3464_v56 = vld [vmem:[%s6348_s18 + $0x5a8] sm:$0xff] }
 0xffb   : > { %4418 = vmatprep.subr.mxu1 %v3363_v40  ;;  %4453 = vmatprep.subr.mxu0 %v3395_v24  ;;  %v3416_v39 = vld [vmem:[%s6348_s18 + $0x428] sm:$0xff]  ;;  %v3431_v24 = vld [vmem:[%s6348_s18 + $0x4a0] sm:$0xff] }
 0xffc   : > { %4419 = vmatpush3.msra.mxu1 %v3347_v41  ;;  %4454 = vmatpush3.msra.mxu0 %v3379_v42  ;;  %v3448_v40 = vld [vmem:[%s6348_s18 + $0x528] sm:$0xff]  ;;  %v3415_v41 = vld [vmem:[%s6348_s18 + $0x420] sm:$0xff] }
 0xffd   : > { %3751 = vmatmul.mubr.f32.vlgmr.msra.gmra.mxu1 %v3271_v44  ;;  %3821 = vmatmul.mubr.f32.vlgmr.msra.gmra.mxu0 %v3273_v45  ;;  %v3447_v42 = vld [vmem:[%s6348_s18 + $0x520] sm:$0xff]  ;;  %v3430_v44 = vld [vmem:[%s6348_s18 + $0x498] sm:$0xff] }
 0xffe   : > { %4458 = vmatprep.subr.mxu1 %v3442_v5  ;;  %4493 = vmatprep.subr.mxu0 %v3474_v46  ;;  %v3462_v45 = vld [vmem:[%s6348_s18 + $0x598] sm:$0xff]  ;;  %v2651_v5 = vrot.slane %v5654_v1, %v2618_v52  ;;  %v2659_v46 = vrot.slane %v5654_v1, %v2626_v53  ;;  %v3429_v52 = vld [vmem:[%s6348_s18 + $0x490] sm:$0xff] }
 0xfff   : > { %4459 = vmatpush3.msra.mxu1 %v3426_v47  ;;  %3890 = vmatprep.mubr.f32.mxu1 %v3276_v57  ;;  %v6062_v47 = vpop.f32.mrf.mxu0  ;;  %v3414_v57 = vld [vmem:[%s6348_s18 + $0x418] sm:$0xff]  ;;  %v3461_v53 = vld [vmem:[%s6348_s18 + $0x590] sm:$0xff] }
0x1000   : > { %4494 = vmatpush3.msra.mxu0 %v3458_v58  ;;  %3960 = vmatprep.mubr.f32.mxu0 %v3278_v60  ;;  %v3446_v58 = vld [vmem:[%s6348_s18 + $0x518] sm:$0xff]  ;;  %v2671_v60 = vrot.slane %v5654_v1, %v2638_v10  ;;  %v3428_v10 = vld [vmem:[%s6348_s18 + $0x488] sm:$0xff] }
0x1001   : > { %4460 = vmatprep.subr.mxu1 %v3441_v62  ;;  %4495 = vmatprep.subr.mxu0 %v3473_v63  ;;  %v3413_v62 = vld [vmem:[%s6348_s18 + $0x410] sm:$0xff] }
0x1002   : > { %4461 = vmatpush3.msra.mxu1 %v3425_v0  ;;  %4496 = vmatpush3.msra.mxu0 %v3457_v2  ;;  %v3445_v63 = vld [vmem:[%s6348_s18 + $0x510] sm:$0xff]  ;;  %v3193_v0 = vpop.f32.mrf.mxu1  ;;  %v2679_v2 = vrot.slane %v5654_v1, %v2646_v11  ;;  %v3444_v1 = vld [vmem:[%s6348_s18 + $0x508] sm:$0xff]  ;;  %v3427_v11 = vld [vmem:[%s6348_s18 + $0x480] sm:$0xff] }
0x1003   : > { %4462 = vmatprep.subr.mxu1 %v3440_v3  ;;  %4497 = vmatprep.subr.mxu0 %v3472_v4  ;;  %v3460_v3 = vld [vmem:[%s6348_s18 + $0x588] sm:$0xff]  ;;  %v3050_v4 = vadd.f32 %v5838_v22, %v2651_v5  ;;  %v3459_v22 = vld [vmem:[%s6348_s18 + $0x580] sm:$0xff] }
0x1004   : > { %4463 = vmatpush3.msra.mxu1 %v3424_v6  ;;  %4498 = vmatpush3.msra.mxu0 %v3456_v7  ;;  %v3121_v6 = vadd.f32 %v5852_v29, %v2659_v46  ;;  %v3264_v7 = vpop.f32.mrf.mxu0  ;;  %v3194_v29 = vadd.f32 %v3193_v0, %v2671_v60  ;;  %v3515_v5 = vld [vmem:[%s6348_s18 + $0x740] sm:$0xff]  ;;  %v3498_v46 = vld [vmem:[%s6348_s18 + $0x6b8] sm:$0xff]  ;;  %v3529_v60 = vld [vmem:[%s6348_s18 + $0x7b0] sm:$0xff] }
0x1005   : > { %4464 = vmatprep.subr.mxu1 %v3439_v9  ;;  %4499 = vmatprep.subr.mxu0 %v3471_v12  ;;  %v3411_v9 = vld [vmem:[%s6348_s18 + $0x400] sm:$0xff]  ;;  %v3496_v0 = vld [vmem:[%s6348_s18 + $0x6a8] sm:$0xff] }
0x1006   : > { %4465 = vmatpush3.msra.mxu1 %v3423_v13  ;;  %4500 = vmatpush3.msra.mxu0 %v3455_v8  ;;  %v3443_v12 = vld [vmem:[%s6348_s18 + $0x500] sm:$0xff]  ;;  %v3265_v13 = vadd.f32 %v3264_v7, %v2679_v2  ;;  %v3275_v8 = vmax.f32 %v3050_v4, 0.0  ;;  %v3528_v2 = vld [vmem:[%s6348_s18 + $0x7a8] sm:$0xff] }
0x1007   : > { %4466 = vmatprep.subr.mxu1 %v3438_v14  ;;  %4501 = vmatprep.subr.mxu0 %v3470_v15  ;;  %v3277_v14 = vmax.f32 %v3121_v6, 0.0  ;;  %v3506_v15 = vld [vmem:[%s6348_s18 + $0x6f8] sm:$0xff]  ;;  %v3495_v4 = vld [vmem:[%s6348_s18 + $0x6a0] sm:$0xff] }
0x1008   : > { %4467 = vmatpush3.msra.mxu1 %v3422_v17  ;;  %4502 = vmatpush3.msra.mxu0 %v3454_v18  ;;  %v3538_v17 = vld [vmem:[%s6348_s18 + $0x7f8] sm:$0xff]  ;;  %v3527_v6 = vld [vmem:[%s6348_s18 + $0x7a0] sm:$0xff] }
0x1009   : > { %4468 = vmatprep.subr.mxu1 %v3437_v19  ;;  %4503 = vmatprep.subr.mxu0 %v3469_v20  ;;  %v3490_v18 = vld [vmem:[%s6348_s18 + $0x678] sm:$0xff]  ;;  %v3280_v19 = vmax.f32 %v3194_v29, 0.0  ;;  %v3479_v7 = vld [vmem:[%s6348_s18 + $0x620] sm:$0xff] }
0x100a   : > { %4469 = vmatpush3.msra.mxu1 %v3421_v21  ;;  %4504 = vmatpush3.msra.mxu0 %v3453_v23  ;;  %v3522_v20 = vld [vmem:[%s6348_s18 + $0x778] sm:$0xff]  ;;  %v3282_v21 = vmax.f32 %v3265_v13, 0.0  ;;  %v3505_v23 = vld [vmem:[%s6348_s18 + $0x6f0] sm:$0xff] }
0x100b   : > { %4470 = vmatprep.subr.mxu1 %v3436_v26  ;;  %4505 = vmatprep.subr.mxu0 %v3468_v27  ;;  %v3537_v26 = vld [vmem:[%s6348_s18 + $0x7f0] sm:$0xff]  ;;  %v3510_v29 = vld [vmem:[%s6348_s18 + $0x718] sm:$0xff] }
0x100c   : > { %4471 = vmatpush3.msra.mxu1 %v3420_v28  ;;  %4506 = vmatpush3.msra.mxu0 %v3452_v30  ;;  %v3489_v27 = vld [vmem:[%s6348_s18 + $0x670] sm:$0xff]  ;;  %v3504_v30 = vld [vmem:[%s6348_s18 + $0x6e8] sm:$0xff] }
0x100d   : > { %4472 = vmatprep.subr.mxu1 %v3435_v31  ;;  %4507 = vmatprep.subr.mxu0 %v3467_v48  ;;  %v3521_v28 = vld [vmem:[%s6348_s18 + $0x770] sm:$0xff]  ;;  %v3536_v31 = vld [vmem:[%s6348_s18 + $0x7e8] sm:$0xff] }
0x100e   : > { %4473 = vmatpush3.msra.mxu1 %v3419_v50  ;;  %4508 = vmatpush3.msra.mxu0 %v3451_v54  ;;  %v3488_v48 = vld [vmem:[%s6348_s18 + $0x668] sm:$0xff]  ;;  %v3503_v54 = vld [vmem:[%s6348_s18 + $0x6e0] sm:$0xff]  ;;  %v3477_v13 = vld [vmem:[%s6348_s18 + $0x610] sm:$0xff] }
0x100f   : > { %4474 = vmatprep.subr.mxu1 %v3434_v32  ;;  %4509 = vmatprep.subr.mxu0 %v3466_v33  ;;  %v3520_v50 = vld [vmem:[%s6348_s18 + $0x768] sm:$0xff]  ;;  %v3535_v32 = vld [vmem:[%s6348_s18 + $0x7e0] sm:$0xff] }
0x1010   : > { %4475 = vmatpush3.msra.mxu1 %v3418_v34  ;;  %4510 = vmatpush3.msra.mxu0 %v3450_v35  ;;  %v3487_v33 = vld [vmem:[%s6348_s18 + $0x660] sm:$0xff]  ;;  %v3502_v35 = vld [vmem:[%s6348_s18 + $0x6d8] sm:$0xff] }
0x1011   : > { %4476 = vmatprep.subr.mxu1 %v3433_v55  ;;  %4511 = vmatprep.subr.mxu0 %v3465_v36  ;;  %v3519_v34 = vld [vmem:[%s6348_s18 + $0x760] sm:$0xff]  ;;  %v3534_v55 = vld [vmem:[%s6348_s18 + $0x7d8] sm:$0xff] }
0x1012   : > { %4477 = vmatpush3.msra.mxu1 %v3417_v61  ;;  %4512 = vmatpush3.msra.mxu0 %v3449_v37  ;;  %v3486_v36 = vld [vmem:[%s6348_s18 + $0x658] sm:$0xff]  ;;  %v3501_v37 = vld [vmem:[%s6348_s18 + $0x6d0] sm:$0xff] }
0x1013   : > { %4478 = vmatprep.subr.mxu1 %v3432_v38  ;;  %4513 = vmatprep.subr.mxu0 %v3464_v56  ;;  %v3518_v61 = vld [vmem:[%s6348_s18 + $0x758] sm:$0xff]  ;;  %v3533_v38 = vld [vmem:[%s6348_s18 + $0x7d0] sm:$0xff] }
0x1014   : > { %4479 = vmatpush3.msra.mxu1 %v3416_v39  ;;  %4514 = vmatpush3.msra.mxu0 %v3448_v40  ;;  %v3485_v56 = vld [vmem:[%s6348_s18 + $0x650] sm:$0xff]  ;;  %v3500_v40 = vld [vmem:[%s6348_s18 + $0x6c8] sm:$0xff] }
0x1015   : > { %4480 = vmatprep.subr.mxu1 %v3431_v24  ;;  %4515 = vmatprep.subr.mxu0 %v3463_v25  ;;  %v3517_v39 = vld [vmem:[%s6348_s18 + $0x750] sm:$0xff]  ;;  %v3532_v24 = vld [vmem:[%s6348_s18 + $0x7c8] sm:$0xff] }
0x1016   : > { %4481 = vmatpush3.msra.mxu1 %v3415_v41  ;;  %4516 = vmatpush3.msra.mxu0 %v3447_v42  ;;  %v3484_v25 = vld [vmem:[%s6348_s18 + $0x648] sm:$0xff]  ;;  %v3499_v42 = vld [vmem:[%s6348_s18 + $0x6c0] sm:$0xff] }
0x1017   : > { %4482 = vmatprep.subr.mxu1 %v3430_v44  ;;  %4517 = vmatprep.subr.mxu0 %v3462_v45  ;;  %v3516_v41 = vld [vmem:[%s6348_s18 + $0x748] sm:$0xff]  ;;  %v3531_v44 = vld [vmem:[%s6348_s18 + $0x7c0] sm:$0xff] }
0x1018   : > { %4483 = vmatpush3.msra.mxu1 %v3414_v57  ;;  %4518 = vmatpush3.msra.mxu0 %v3446_v58  ;;  %v3483_v45 = vld [vmem:[%s6348_s18 + $0x640] sm:$0xff]  ;;  %v3530_v57 = vld [vmem:[%s6348_s18 + $0x7b8] sm:$0xff] }
0x1019   : > { %4484 = vmatprep.subr.mxu1 %v3429_v52  ;;  %4519 = vmatprep.subr.mxu0 %v3461_v53  ;;  %v3482_v58 = vld [vmem:[%s6348_s18 + $0x638] sm:$0xff]  ;;  %v3497_v53 = vld [vmem:[%s6348_s18 + $0x6b0] sm:$0xff] }
0x101a   : > { %4485 = vmatpush3.msra.mxu1 %v3413_v62  ;;  %4520 = vmatpush3.msra.mxu0 %v3445_v63  ;;  %v3514_v52 = vld [vmem:[%s6348_s18 + $0x738] sm:$0xff]  ;;  %v3481_v62 = vld [vmem:[%s6348_s18 + $0x630] sm:$0xff] }
0x101b   : > { %4486 = vmatprep.subr.mxu1 %v3428_v10  ;;  %4521 = vmatprep.subr.mxu0 %v3460_v3  ;;  %v3513_v63 = vld [vmem:[%s6348_s18 + $0x730] sm:$0xff]  ;;  %v3480_v10 = vld [vmem:[%s6348_s18 + $0x628] sm:$0xff] }
0x101c   : > { %4487 = vmatpush3.msra.mxu1 %v3412_v16  ;;  %4522 = vmatpush3.msra.mxu0 %v3444_v1  ;;  %v3512_v3 = vld [vmem:[%s6348_s18 + $0x728] sm:$0xff]  ;;  %v3511_v16 = vld [vmem:[%s6348_s18 + $0x720] sm:$0xff]  ;;  %v3494_v1 = vld [vmem:[%s6348_s18 + $0x698] sm:$0xff] }
0x101d   : > { %4488 = vmatprep.subr.mxu1 %v3427_v11  ;;  %4523 = vmatprep.subr.mxu0 %v3459_v22  ;;  %v3526_v11 = vld [vmem:[%s6348_s18 + $0x798] sm:$0xff] }
0x101e   : > { %4489 = vmatpush3.msra.mxu1 %v3411_v9  ;;  %4524 = vmatpush3.msra.mxu0 %v3443_v12  ;;  %v3478_v22 = vld [vmem:[%s6348_s18 + $0x618] sm:$0xff]  ;;  %v3493_v9 = vld [vmem:[%s6348_s18 + $0x690] sm:$0xff] }
0x101f   : > { %3891 = vmatmul.mubr.f32.vlgmr.msra.gmra.mxu1 %v3275_v8  ;;  %3961 = vmatmul.mubr.f32.vlgmr.msra.gmra.mxu0 %v3277_v14  ;;  %v3525_v12 = vld [vmem:[%s6348_s18 + $0x790] sm:$0xff]  ;;  %v3492_v14 = vld [vmem:[%s6348_s18 + $0x688] sm:$0xff] }
0x1020   : > { %4528 = vmatprep.subr.mxu1 %v3506_v15  ;;  %4563 = vmatprep.subr.mxu0 %v3538_v17  ;;  %v3509_v8 = vld [vmem:[%s6348_s18 + $0x710] sm:$0xff]  ;;  %v3524_v15 = vld [vmem:[%s6348_s18 + $0x788] sm:$0xff]  ;;  %v3192_v17 = vadd.f32 %v6048_v43, %v5659_v49  ;;  %v3523_v49 = vld [vmem:[%s6348_s18 + $0x780] sm:$0xff] }
0x1021   : > { %4529 = vmatpush3.msra.mxu1 %v3490_v18  ;;  %4030 = vmatprep.mubr.f32.mxu1 %v3280_v19  ;;  %v3263_v18 = vadd.f32 %v6062_v47, %v5665_v51  ;;  %v3476_v19 = vld [vmem:[%s6348_s18 + $0x608] sm:$0xff]  ;;  %v3475_v51 = vld [vmem:[%s6348_s18 + $0x600] sm:$0xff] }
0x1022   : > { %4564 = vmatpush3.msra.mxu0 %v3522_v20  ;;  %4100 = vmatprep.mubr.f32.mxu0 %v3282_v21  ;;  %v3508_v20 = vld [vmem:[%s6348_s18 + $0x708] sm:$0xff]  ;;  %v3491_v21 = vld [vmem:[%s6348_s18 + $0x680] sm:$0xff]  ;;  %v3279_v47 = vmax.f32 %v3192_v17, 0.0 }
0x1023   : > { %4530 = vmatprep.subr.mxu1 %v3505_v23  ;;  %4565 = vmatprep.subr.mxu0 %v3537_v26  ;;  %v3507_v43 = vld [vmem:[%s6348_s18 + $0x700] sm:$0xff]  ;;  %v3281_v23 = vmax.f32 %v3263_v18, 0.0 }
0x1024   : > { %4531 = vmatpush3.msra.mxu1 %v3489_v27  ;;  %4566 = vmatpush3.msra.mxu0 %v3521_v28 }
0x1025   : > { %4532 = vmatprep.subr.mxu1 %v3504_v30  ;;  %4567 = vmatprep.subr.mxu0 %v3536_v31 }
0x1026   : > { %4533 = vmatpush3.msra.mxu1 %v3488_v48  ;;  %4568 = vmatpush3.msra.mxu0 %v3520_v50  ;;  %v4256_v48 = vld [vmem:[%s6349_s19] ss:$0 sm:$0xff] }
0x1027   : > { %4534 = vmatprep.subr.mxu1 %v3503_v54  ;;  %4569 = vmatprep.subr.mxu0 %v3535_v32 }
0x1028   : > { %4535 = vmatpush3.msra.mxu1 %v3487_v33  ;;  %4570 = vmatpush3.msra.mxu0 %v3519_v34 }
0x1029   : > { %4536 = vmatprep.subr.mxu1 %v3502_v35  ;;  %4571 = vmatprep.subr.mxu0 %v3534_v55 }
0x102a   : > { %4537 = vmatpush3.msra.mxu1 %v3486_v36  ;;  %4572 = vmatpush3.msra.mxu0 %v3518_v61 }
0x102b   : > { %4538 = vmatprep.subr.mxu1 %v3501_v37  ;;  %4573 = vmatprep.subr.mxu0 %v3533_v38 }
0x102c   : > { %4539 = vmatpush3.msra.mxu1 %v3485_v56  ;;  %4574 = vmatpush3.msra.mxu0 %v3517_v39 }
0x102d   : > { %4540 = vmatprep.subr.mxu1 %v3500_v40  ;;  %4575 = vmatprep.subr.mxu0 %v3532_v24 }
0x102e   : > { %4541 = vmatpush3.msra.mxu1 %v3484_v25  ;;  %4576 = vmatpush3.msra.mxu0 %v3516_v41 }
0x102f   : > { %4542 = vmatprep.subr.mxu1 %v3499_v42  ;;  %4577 = vmatprep.subr.mxu0 %v3531_v44 }
0x1030   : > { %4543 = vmatpush3.msra.mxu1 %v3483_v45  ;;  %4578 = vmatpush3.msra.mxu0 %v3515_v5 }
0x1031   : > { %4544 = vmatprep.subr.mxu1 %v3498_v46  ;;  %4579 = vmatprep.subr.mxu0 %v3530_v57 }
0x1032   : > { %4545 = vmatpush3.msra.mxu1 %v3482_v58  ;;  %4580 = vmatpush3.msra.mxu0 %v3514_v52 }
0x1033   : > { %4546 = vmatprep.subr.mxu1 %v3497_v53  ;;  %4581 = vmatprep.subr.mxu0 %v3529_v60 }
0x1034   : > { %4547 = vmatpush3.msra.mxu1 %v3481_v62  ;;  %4582 = vmatpush3.msra.mxu0 %v3513_v63 }
0x1035   : > { %4548 = vmatprep.subr.mxu1 %v3496_v0  ;;  %4583 = vmatprep.subr.mxu0 %v3528_v2 }
0x1036   : > { %4549 = vmatpush3.msra.mxu1 %v3480_v10  ;;  %4584 = vmatpush3.msra.mxu0 %v3512_v3 }
0x1037   : > { %4550 = vmatprep.subr.mxu1 %v3495_v4  ;;  %4585 = vmatprep.subr.mxu0 %v3527_v6 }
0x1038   : > { %4551 = vmatpush3.msra.mxu1 %v3479_v7  ;;  %4586 = vmatpush3.msra.mxu0 %v3511_v16 }
0x1039   : > { %4552 = vmatprep.subr.mxu1 %v3494_v1  ;;  %4587 = vmatprep.subr.mxu0 %v3526_v11 }
0x103a   : > { %4553 = vmatpush3.msra.mxu1 %v3478_v22  ;;  %4588 = vmatpush3.msra.mxu0 %v3510_v29  ;;  %v4258_v22 = vld [vmem:[%s6351_s21] ss:$0 sm:$0xff] }
0x103b   : > { %4554 = vmatprep.subr.mxu1 %v3493_v9  ;;  %4589 = vmatprep.subr.mxu0 %v3525_v12 }
0x103c   : > { %4555 = vmatpush3.msra.mxu1 %v3477_v13  ;;  %4590 = vmatpush3.msra.mxu0 %v3509_v8 }
0x103d   : > { %4556 = vmatprep.subr.mxu1 %v3492_v14  ;;  %4591 = vmatprep.subr.mxu0 %v3524_v15 }
0x103e   : > { %4557 = vmatpush3.msra.mxu1 %v3476_v19  ;;  %4592 = vmatpush3.msra.mxu0 %v3508_v20 }
0x103f   : > { %4558 = vmatprep.subr.mxu1 %v3491_v21  ;;  %4593 = vmatprep.subr.mxu0 %v3523_v49 }
0x1040   : > { %4559 = vmatpush3.msra.mxu1 %v3475_v51  ;;  %4594 = vmatpush3.msra.mxu0 %v3507_v43 }
0x1041   : > { %4031 = vmatmul.mubr.f32.vlgmr.msra.gmra.mxu1 %v3279_v47  ;;  %4101 = vmatmul.mubr.f32.vlgmr.msra.gmra.mxu0 %v3281_v23 }
0x109c   : > { %v4350_v26 = vpop.f32.mrf.mxu1  ;;  %v4385_v28 = vpop.f32.mrf.mxu0 }
0x109e   : > { %v4351_v27 = vpop.f32.mrf.mxu1  ;;  %v4386_v50 = vpop.f32.mrf.mxu0 }
0x109f   : > { %v4352_v31 = vadd.f32 %v4351_v27, %v4350_v26  ;;  %v4387_v35 = vadd.f32 %v4386_v50, %v4385_v28 }
0x10a1   : > { %v3613_v32 = vadd.f32 %v4352_v31, %v4256_v48 }
0x10a3   : > { %v3683_v36 = vadd.f32 %v4387_v35, %v3613_v32 }
0x10bd   : > { %v4420_v30 = vpop.f32.mrf.mxu1  ;;  %v4455_v33 = vpop.f32.mrf.mxu0 }
0x10bf   : > { %v4421_v54 = vpop.f32.mrf.mxu1  ;;  %v4456_v61 = vpop.f32.mrf.mxu0 }
0x10c0   : > { %v4422_v55 = vadd.f32 %v4421_v54, %v4420_v30  ;;  %v4457_v39 = vadd.f32 %v4456_v61, %v4455_v33 }
0x10c2   : > { %v3753_v38 = vadd.f32 %v4422_v55, %v3683_v36 }
0x10c4   : > { %v3823_v24 = vadd.f32 %v4457_v39, %v3753_v38 }
0x10df   : > { %v4490_v34 = vpop.f32.mrf.mxu1  ;;  %v4525_v56 = vpop.f32.mrf.mxu0 }
0x10e1   : > { %v4491_v37 = vpop.f32.mrf.mxu1  ;;  %v4526_v25 = vpop.f32.mrf.mxu0 }
0x10e2   : > { %v4492_v40 = vadd.f32 %v4491_v37, %v4490_v34  ;;  %v4527_v45 = vadd.f32 %v4526_v25, %v4525_v56 }
0x10e4   : > { %v3893_v41 = vadd.f32 %v4492_v40, %v3823_v24 }
0x10e6   : > { %v3963_v57 = vadd.f32 %v4527_v45, %v3893_v41 }
0x1101   : > { %v4560_v42 = vpop.f32.mrf.mxu1  ;;  %v4595_v44 = vpop.f32.mrf.mxu0 }
0x1103   : > { %v4561_v5 = vpop.f32.mrf.mxu1  ;;  %v4596_v46 = vpop.f32.mrf.mxu0 }
0x1104   : > { %v4562_v58 = vadd.f32 %v4561_v5, %v4560_v42  ;;  %v4597_v53 = vadd.f32 %v4596_v46, %v4595_v44 }
0x1106   : > { %v4033_v52 = vadd.f32 %v4562_v58, %v3963_v57 }
0x1108   : > { %v4103_v60 = vadd.f32 %v4597_v53, %v4033_v52 }
0x110a   : > { %v4106_v62 = vadd.f32 %v4103_v60, %v5290_v59  ;;  %v4257_v59 = vld [vmem:[%s6350_s20] ss:$0 sm:$0xff] }
0x110c   : > { %v4109_v63 = vsel %vm709_vm1, %v4106_v62, 0.0 }
0x110d   : > { %4110 = vadd.xlane.f32.xlu0 %v4109_v63 }
0x1196   : > { %v4111_v0 = vpop.xlane.xlu0 %4110 }
0x1197   : > { %v4112_v2 = vmul.f32 0.03125, %v4111_v0 }
0x1199   : > { %v4113_v10 = vsub.f32 %v4106_v62, %v4112_v2 }
0x119b   : > { %v4114_v3 = vmul.f32 %v4113_v10, %v4113_v10 }
0x119d   : > { %v4115_v4 = vsel %vm709_vm1, %v4114_v3, 0.0 }
0x119e   : > { %4116 = vadd.xlane.f32.xlu1 %v4115_v4 }
0x1227   : > { %v4117_v6 = vpop.xlane.xlu1 %4116 }
0x1228   : > { %v4118_v7 = vmul.f32 0.03125, %v4117_v6 }
0x122a   : > { %v4119_v16 = vadd.f32 1e-05, %v4118_v7 }
0x122c   : > { %4793 = vrsqrt.f32 %v4119_v16 }
0x1239   : > { %v4794_v1 = vpop.eup %4793 }
0x123a   : > { %v4121_v11 = vmul.f32 %v4794_v1, %v4113_v10 }
0x123c   : > { %v4128_v29 = vmul.f32 %v4257_v59, %v4121_v11 }
0x123e   : > { %v4135_v9 = vadd.f32 %v4258_v22, %v4128_v29 }
0x1240   : > { %4136 = vst.msk [vmem:[%s695_s5] sm:$0xff] %vm709_vm1, %v4135_v9 }
0x1241 PF: > { %s32_s3 = sadd.s32 1, %s4801_s3  }
0x1242   : > { %p29_p4 = scmp.ge.s32.totalorder %s32_s3, 4  }
0x1244   :  { %31 = sbr.rel (!%p29_p4) target bundleno = 8 (0x8), region = 141 }

</bundles_post_ra>
